<compile_context>
chip_gen: v7x
topology: tpu7x:2x2x1
jax: 0.10.0
libtpu: 0.0.40
codegen_flags: <defaults>
</compile_context>

<pallas_src>
import functools

import jax
import jax.numpy as jnp
import numpy as np
from jax import lax
from jax.experimental import pallas as pl
from jax.experimental.pallas import tpu as pltpu

EPS = 1e-5


def _round_up(x, m):
    return (x + m - 1) // m * m


# ----------------------------------------------------------------------------------
# Fused bottleneck kernel: one grid step == one batch element (full image in VMEM).
# ----------------------------------------------------------------------------------
def _bottleneck_kernel(x_ref, w1_ref, b1_ref, w2_ref, b2_ref, w3_ref, b3_ref,
                       o_ref, h1p_ref, *, H, W, pad_rows):
    HW = H * W
    midCp = w1_ref.shape[1]

    # ---- conv1 (1x1) + folded BN + ReLU ------------------------------------
    x_bf = x_ref[...].astype(jnp.bfloat16)                       # [HW, Cp]
    h1 = jnp.dot(x_bf, w1_ref[...], preferred_element_type=jnp.float32)
    h1 = jnp.maximum(h1 + b1_ref[...], 0.0)                      # [HW, midCp] f32

    # ---- stage h1 into a spatially zero-padded VMEM buffer ------------------
    # Rows [pad_rows, pad_rows+HW) hold h1; the pad rows stay zero and implement
    # the y-direction zero padding of the 3x3 conv automatically.
    h1p_ref[...] = jnp.zeros_like(h1p_ref)
    h1p_ref[pl.ds(pad_rows, HW), :] = h1

    # Output-position column index (for the dx = +-1 x-boundary masks).
    col = lax.broadcasted_iota(jnp.int32, (HW, midCp), 0) % W

    # ---- conv2 (3x3, pad=1, stride=1) as 9 shifted MXU matmuls --------------
    acc = jnp.zeros((HW, midCp), jnp.float32)
    t = 0
    for dy in (-1, 0, 1):
        for dx in (-1, 0, 1):
            s = dy * W + dx
            tap = h1p_ref[pl.ds(pad_rows + s, HW), :]             # [HW, midCp] f32
            if dx == -1:
                tap = jnp.where(col >= 1, tap, 0.0)               # x-1 >= 0
            elif dx == 1:
                tap = jnp.where(col <= W - 2, tap, 0.0)           # x+1 <= W-1
            acc = acc + jnp.dot(tap.astype(jnp.bfloat16), w2_ref[t],
                                preferred_element_type=jnp.float32)
            t += 1
    h2 = jnp.maximum(acc + b2_ref[...], 0.0).astype(jnp.bfloat16)  # [HW, midCp]

    # ---- conv3 (1x1) + folded BN + identity residual + ReLU -----------------
    out = jnp.dot(h2, w3_ref[...], preferred_element_type=jnp.float32)
    out = out + b3_ref[...] + x_ref[...]                          # residual in f32
    o_ref[...] = jnp.maximum(out, 0.0).astype(o_ref.dtype)


# ----------------------------------------------------------------------------------
# Parameters: BN folded into weights, channel-padded to lane multiples, bf16, once.
# ----------------------------------------------------------------------------------
def make_conv_bn(key, inC, outC, kh, kw):
    k1, k2 = jax.random.split(key)
    fan_in = kh * kw * inC
    w = jax.random.normal(k1, (kh, kw, inC, outC), jnp.float32) * np.sqrt(2.0 / fan_in)
    b = jax.random.uniform(k2, (outC,), jnp.float32,
                           minval=-1.0 / np.sqrt(fan_in), maxval=1.0 / np.sqrt(fan_in))
    # Inference BatchNorm with default-initialized statistics, folded in.
    gamma = jnp.ones((outC,), jnp.float32)
    beta = jnp.zeros((outC,), jnp.float32)
    mean = jnp.zeros((outC,), jnp.float32)
    var = jnp.ones((outC,), jnp.float32)
    scale = gamma / jnp.sqrt(var + EPS)
    w = w * scale                                   # fold scale into the weights
    b_f = beta + scale * (b - mean)                 # fused bias

    inP, outP = _round_up(inC, 128), _round_up(outC, 128)
    w_p = jnp.pad(w, ((0, 0), (0, 0), (0, inP - inC), (0, outP - outC)))
    if kh == 1 and kw == 1:
        w_p = w_p.reshape(inP, outP)                # 1x1 conv == plain matmul
    else:
        w_p = w_p.reshape(kh * kw, inP, outP)       # per-tap weights for 3x3
    b_p = jnp.pad(b_f, (0, outP - outC)).reshape(1, outP).astype(jnp.float32)
    return {'w': w_p.astype(jnp.bfloat16), 'b': b_p}


def make_bottleneck_params(key, channels):
    midC = channels // 4
    k1, k2, k3 = jax.random.split(key, 3)
    return {'c1': make_conv_bn(k1, channels, midC, 1, 1),
            'c2': make_conv_bn(k2, midC, midC, 3, 3),
            'c3': make_conv_bn(k3, midC, channels, 1, 1)}


# ----------------------------------------------------------------------------------
# Forward pass (matches torch Bottleneck.forward, eval-mode BN)
# ----------------------------------------------------------------------------------
def bottleneck_forward(params, x_nchw):
    N, C, H, W = x_nchw.shape                      # static under jit
    HW = H * W
    assert HW % 8 == 0 and W >= 2
    Cin_p = params['c1']['w'].shape[0]
    Cout_p = params['c3']['w'].shape[1]
    midCp = params['c1']['w'].shape[1]
    assert Cin_p == Cout_p                          # identity residual
    pad_rows = _round_up(W + 1, 8)

    # NCHW -> flattened [N*H*W, C]; single fused XLA copy (and its inverse below).
    x_flat = jnp.transpose(x_nchw, (0, 2, 3, 1)).reshape(N * HW, C).astype(jnp.float32)
    if Cin_p != C:
        x_flat = jnp.pad(x_flat, ((0, 0), (0, Cin_p - C)))

    kernel = functools.partial(_bottleneck_kernel, H=H, W=W, pad_rows=pad_rows)
    out = pl.pallas_call(
        kernel,
        out_shape=jax.ShapeDtypeStruct((N * HW, Cout_p), jnp.float32),
        grid_spec=pltpu.PrefetchScalarGridSpec(
            num_scalar_prefetch=0,
            grid=(N,),
            in_specs=[
                pl.BlockSpec((HW, Cin_p), lambda b: (b, 0)),
                pl.BlockSpec(params['c1']['w'].shape, lambda b: (0, 0)),
                pl.BlockSpec(params['c1']['b'].shape, lambda b: (0, 0)),
                pl.BlockSpec(params['c2']['w'].shape, lambda b: (0, 0, 0)),
                pl.BlockSpec(params['c2']['b'].shape, lambda b: (0, 0)),
                pl.BlockSpec(params['c3']['w'].shape, lambda b: (0, 0)),
                pl.BlockSpec(params['c3']['b'].shape, lambda b: (0, 0)),
            ],
            out_specs=pl.BlockSpec((HW, Cout_p), lambda b: (b, 0)),
            scratch_shapes=[
                pltpu.VMEM((HW + 2 * pad_rows, midCp), jnp.float32),  # padded h1
            ],
        ),
        compiler_params=pltpu.CompilerParams(
            dimension_semantics=("parallel",),      # one image per core on v7x
            vmem_limit_bytes=32 * 1024 * 1024,      # actual use ~2 MiB; safe on all gens
        ),
    )(x_flat,
      params['c1']['w'], params['c1']['b'],
      params['c2']['w'], params['c2']['b'],
      params['c3']['w'], params['c3']['b'])

    if Cout_p != C:
        out = out[:, :C]
    return jnp.transpose(out.reshape(N, H, W, C), (0, 3, 1, 2))    # back to NCHW


# ----------------------------------------------------------------------------------
# Pure-JAX f32 reference (uses the same folded / padded parameters).
# ----------------------------------------------------------------------------------
def _im2col_3x3(x):
    N, H, W, C = x.shape
    xp = jnp.pad(x, ((0, 0), (1, 1), (1, 1), (0, 0)))
    cols = [xp[:, i:i + H, j:j + W, :] for i in range(3) for j in range(3)]
    patches = jnp.stack(cols, axis=3)              # [N, H, W, 9, C]
    return patches.reshape(N * H * W, 9 * C)


def reference_forward(params, x_nchw):
    N, C, H, W = x_nchw.shape
    midC = C // 4
    x = jnp.transpose(x_nchw, (0, 2, 3, 1)).astype(jnp.float32)
    xf = x.reshape(N * H * W, C)

    w1 = params['c1']['w'][:C, :midC].astype(jnp.float32)
    b1 = params['c1']['b'][0, :midC]
    h1 = jnp.maximum(xf @ w1 + b1, 0.0)

    patches = _im2col_3x3(h1.reshape(N, H, W, midC))
    w2 = params['c2']['w'][:, :midC, :midC].astype(jnp.float32).reshape(9 * midC, midC)
    b2 = params['c2']['b'][0, :midC]
    h2 = jnp.maximum(patches @ w2 + b2, 0.0)

    w3 = params['c3']['w'][:midC, :C].astype(jnp.float32)
    b3 = params['c3']['b'][0, :C]
    o = jnp.maximum(h2 @ w3 + b3 + xf, 0.0)
    return jnp.transpose(o.reshape(N, H, W, C), (0, 3, 1, 2))


# ----------------------------------------------------------------------------------
if __name__ == "__main__":
    key = jax.random.PRNGKey(0)
    kx, kp = jax.random.split(key)

    # Small ResNet-bottleneck-like shape (channels divisible by 4 and by 128).
    N, C, H, W = 2, 256, 16, 16
    x = jax.random.normal(kx, (N, C, H, W), jnp.float32)      # NCHW, like PyTorch
    params = make_bottleneck_params(kp, C)

    fwd = jax.jit(bottleneck_forward)
    out = jax.block_until_ready(fwd(params, x))

    assert out.shape == (N, C, H, W), out.shape
    assert bool(jnp.all(jnp.isfinite(out)))

    # Loose numerical check vs. an f32 reference (kernel uses bf16 MXU operands).
    ref = reference_forward(params, x)
    rel_err = float(jnp.max(jnp.abs(out - ref)) / (jnp.max(jnp.abs(ref)) + 1e-6))
    assert rel_err < 5e-2, f"relative error too large: {rel_err}"

    print("KERNEL_OK")
</pallas_src>

<mosaic_0001>
module attributes {stable_mosaic.version = 11 : i64} {
  func.func @_bottleneck_kernel(%arg0: i32, %arg1: memref<256x256xf32, #tpu.memory_space<vmem>>, %arg2: memref<256x128xbf16, #tpu.memory_space<vmem>>, %arg3: memref<1x128xf32, #tpu.memory_space<vmem>>, %arg4: memref<9x128x128xbf16, #tpu.memory_space<vmem>>, %arg5: memref<1x128xf32, #tpu.memory_space<vmem>>, %arg6: memref<128x256xbf16, #tpu.memory_space<vmem>>, %arg7: memref<1x256xf32, #tpu.memory_space<vmem>>, %arg8: memref<256x256xf32, #tpu.memory_space<vmem>>, %arg9: memref<304x128xf32, #tpu.memory_space<vmem>>) attributes {dimension_semantics = [#tpu.dimension_semantics<parallel>], iteration_bounds = array<i64: 2>, scalar_prefetch = 0 : i64, scratch_operands = 1 : i64, tpu.core_type = #tpu.core_type<tc>, window_params = [{transform_indices = @transform_0, window_bounds = array<i64: 256, 256>}, {pipeline_mode = #tpu.pipeline_mode<synchronous>, transform_indices = @transform_1, window_bounds = array<i64: 256, 128>}, {pipeline_mode = #tpu.pipeline_mode<synchronous>, transform_indices = @transform_2, window_bounds = array<i64: 1, 128>}, {pipeline_mode = #tpu.pipeline_mode<synchronous>, transform_indices = @transform_3, window_bounds = array<i64: 9, 128, 128>}, {pipeline_mode = #tpu.pipeline_mode<synchronous>, transform_indices = @transform_4, window_bounds = array<i64: 1, 128>}, {pipeline_mode = #tpu.pipeline_mode<synchronous>, transform_indices = @transform_5, window_bounds = array<i64: 128, 256>}, {pipeline_mode = #tpu.pipeline_mode<synchronous>, transform_indices = @transform_6, window_bounds = array<i64: 1, 256>}, {transform_indices = @transform_7, window_bounds = array<i64: 256, 256>}]} {
    %c0 = arith.constant 0 : index
    %c0_0 = arith.constant 0 : index
    %0 = vector.load %arg1[%c0, %c0_0] : memref<256x256xf32, #tpu.memory_space<vmem>>, vector<256x256xf32>
    %1 = arith.truncf %0 : vector<256x256xf32> to vector<256x256xbf16>
    %c0_1 = arith.constant 0 : index
    %c0_2 = arith.constant 0 : index
    %2 = vector.load %arg2[%c0_1, %c0_2] : memref<256x128xbf16, #tpu.memory_space<vmem>>, vector<256x128xbf16>
    %cst = arith.constant dense<0.000000e+00> : vector<256x128xf32>
    %3 = tpu.matmul %1, %2, %cst {dimension_numbers = #tpu.dot_dimension_numbers<[1], [0], [0], [1], [0, 0, 1, 1], [], []>} : vector<256x256xbf16>, vector<256x128xbf16>, vector<256x128xf32> -> vector<256x128xf32>
    %c0_3 = arith.constant 0 : index
    %c0_4 = arith.constant 0 : index
    %4 = vector.load %arg3[%c0_3, %c0_4] : memref<1x128xf32, #tpu.memory_space<vmem>>, vector<1x128xf32>
    %5 = vector.broadcast %4 : vector<1x128xf32> to vector<256x128xf32>
    %6 = arith.addf %3, %5 : vector<256x128xf32>
    %cst_5 = arith.constant 0.000000e+00 : f32
    %7 = vector.broadcast %cst_5 : f32 to vector<256x128xf32>
    %8 = arith.maximumf %6, %7 : vector<256x128xf32>
    %cst_6 = arith.constant 0.000000e+00 : f32
    %9 = vector.broadcast %cst_6 : f32 to vector<304x128xf32>
    %c0_7 = arith.constant 0 : index
    %c0_8 = arith.constant 0 : index
    %10 = vector.load %arg9[%c0_7, %c0_8] : memref<304x128xf32, #tpu.memory_space<vmem>>, vector<304x128xf32>
    tpu.vector_store %arg9[%c0_7, %c0_8], %9 {strides = array<i32>} : memref<304x128xf32, #tpu.memory_space<vmem>>, vector<304x128xf32>,
    %c24 = arith.constant 24 : index
    %c0_9 = arith.constant 0 : index
    %11 = vector.load %arg9[%c24, %c0_9] : memref<304x128xf32, #tpu.memory_space<vmem>>, vector<256x128xf32>
    tpu.vector_store %arg9[%c24, %c0_9], %8 {strides = array<i32>} : memref<304x128xf32, #tpu.memory_space<vmem>>, vector<256x128xf32>,
    %12 = tpu.iota {dimensions = array<i32: 0>} : vector<256x128xi32>
    %c16_i32 = arith.constant 16 : i32
    %c0_i32 = arith.constant 0 : i32
    %13 = arith.cmpi eq, %c16_i32, %c0_i32 : i32
    %c1_i32 = arith.constant 1 : i32
    %14 = arith.select %13, %c1_i32, %c16_i32 : i32
    %15 = vector.broadcast %14 : i32 to vector<256x128xi32>
    %16 = arith.remsi %12, %15 : vector<256x128xi32>
    %c0_i32_10 = arith.constant 0 : i32
    %17 = vector.broadcast %c0_i32_10 : i32 to vector<256x128xi32>
    %18 = arith.cmpi ne, %16, %17 : vector<256x128xi32>
    %c0_i32_11 = arith.constant 0 : i32
    %19 = vector.broadcast %c0_i32_11 : i32 to vector<256x128xi32>
    %20 = arith.cmpi slt, %16, %19 : vector<256x128xi32>
    %c0_i32_12 = arith.constant 0 : i32
    %21 = arith.cmpi slt, %14, %c0_i32_12 : i32
    %22 = vector.broadcast %21 : i1 to vector<256x128xi1>
    %23 = vector.broadcast %22 : vector<256x128xi1> to vector<256x128xi1>
    %24 = arith.xori %20, %23 : vector<256x128xi1>
    %25 = arith.andi %24, %18 : vector<256x128xi1>
    %26 = vector.broadcast %14 : i32 to vector<256x128xi32>
    %27 = arith.addi %16, %26 : vector<256x128xi32>
    %28 = arith.select %25, %27, %16 : vector<256x128xi1>, vector<256x128xi32>
    %cst_13 = arith.constant 0.000000e+00 : f32
    %29 = vector.broadcast %cst_13 : f32 to vector<256x128xf32>
    %c7 = arith.constant 7 : index
    %c0_14 = arith.constant 0 : index
    %30 = vector.load %arg9[%c7, %c0_14] : memref<304x128xf32, #tpu.memory_space<vmem>>, vector<256x128xf32>
    %c1_i32_15 = arith.constant 1 : i32
    %31 = vector.broadcast %c1_i32_15 : i32 to vector<256x128xi32>
    %32 = arith.cmpi sge, %28, %31 : vector<256x128xi32>
    %cst_16 = arith.constant 0.000000e+00 : f32
    %33 = vector.broadcast %cst_16 : f32 to vector<256x128xf32>
    %34 = arith.select %32, %30, %33 : vector<256x128xi1>, vector<256x128xf32>
    %35 = arith.truncf %34 : vector<256x128xf32> to vector<256x128xbf16>
    %c0_17 = arith.constant 0 : index
    %c0_18 = arith.constant 0 : index
    %c0_19 = arith.constant 0 : index
    %36 = vector.load %arg4[%c0_17, %c0_18, %c0_19] : memref<9x128x128xbf16, #tpu.memory_space<vmem>>, vector<1x128x128xbf16>
    %37 = vector.shape_cast %36 : vector<1x128x128xbf16> to vector<128x128xbf16>
    %cst_20 = arith.constant dense<0.000000e+00> : vector<256x128xf32>
    %38 = tpu.matmul %35, %37, %cst_20 {dimension_numbers = #tpu.dot_dimension_numbers<[1], [0], [0], [1], [0, 0, 1, 1], [], []>} : vector<256x128xbf16>, vector<128x128xbf16>, vector<256x128xf32> -> vector<256x128xf32>
    %39 = arith.addf %29, %38 : vector<256x128xf32>
    %c8 = arith.constant 8 : index
    %c0_21 = arith.constant 0 : index
    %40 = vector.load %arg9[%c8, %c0_21] : memref<304x128xf32, #tpu.memory_space<vmem>>, vector<256x128xf32>
    %41 = arith.truncf %40 : vector<256x128xf32> to vector<256x128xbf16>
    %c1 = arith.constant 1 : index
    %c0_22 = arith.constant 0 : index
    %c0_23 = arith.constant 0 : index
    %42 = vector.load %arg4[%c1, %c0_22, %c0_23] : memref<9x128x128xbf16, #tpu.memory_space<vmem>>, vector<1x128x128xbf16>
    %43 = vector.shape_cast %42 : vector<1x128x128xbf16> to vector<128x128xbf16>
    %cst_24 = arith.constant dense<0.000000e+00> : vector<256x128xf32>
    %44 = tpu.matmul %41, %43, %cst_24 {dimension_numbers = #tpu.dot_dimension_numbers<[1], [0], [0], [1], [0, 0, 1, 1], [], []>} : vector<256x128xbf16>, vector<128x128xbf16>, vector<256x128xf32> -> vector<256x128xf32>
    %45 = arith.addf %39, %44 : vector<256x128xf32>
    %c9 = arith.constant 9 : index
    %c0_25 = arith.constant 0 : index
    %46 = vector.load %arg9[%c9, %c0_25] : memref<304x128xf32, #tpu.memory_space<vmem>>, vector<256x128xf32>
    %c14_i32 = arith.constant 14 : i32
    %47 = vector.broadcast %c14_i32 : i32 to vector<256x128xi32>
    %48 = arith.cmpi sle, %28, %47 : vector<256x128xi32>
    %cst_26 = arith.constant 0.000000e+00 : f32
    %49 = vector.broadcast %cst_26 : f32 to vector<256x128xf32>
    %50 = arith.select %48, %46, %49 : vector<256x128xi1>, vector<256x128xf32>
    %51 = arith.truncf %50 : vector<256x128xf32> to vector<256x128xbf16>
    %c2 = arith.constant 2 : index
    %c0_27 = arith.constant 0 : index
    %c0_28 = arith.constant 0 : index
    %52 = vector.load %arg4[%c2, %c0_27, %c0_28] : memref<9x128x128xbf16, #tpu.memory_space<vmem>>, vector<1x128x128xbf16>
    %53 = vector.shape_cast %52 : vector<1x128x128xbf16> to vector<128x128xbf16>
    %cst_29 = arith.constant dense<0.000000e+00> : vector<256x128xf32>
    %54 = tpu.matmul %51, %53, %cst_29 {dimension_numbers = #tpu.dot_dimension_numbers<[1], [0], [0], [1], [0, 0, 1, 1], [], []>} : vector<256x128xbf16>, vector<128x128xbf16>, vector<256x128xf32> -> vector<256x128xf32>
    %55 = arith.addf %45, %54 : vector<256x128xf32>
    %c23 = arith.constant 23 : index
    %c0_30 = arith.constant 0 : index
    %56 = vector.load %arg9[%c23, %c0_30] : memref<304x128xf32, #tpu.memory_space<vmem>>, vector<256x128xf32>
    %c1_i32_31 = arith.constant 1 : i32
    %57 = vector.broadcast %c1_i32_31 : i32 to vector<256x128xi32>
    %58 = arith.cmpi sge, %28, %57 : vector<256x128xi32>
    %cst_32 = arith.constant 0.000000e+00 : f32
    %59 = vector.broadcast %cst_32 : f32 to vector<256x128xf32>
    %60 = arith.select %58, %56, %59 : vector<256x128xi1>, vector<256x128xf32>
    %61 = arith.truncf %60 : vector<256x128xf32> to vector<256x128xbf16>
    %c3 = arith.constant 3 : index
    %c0_33 = arith.constant 0 : index
    %c0_34 = arith.constant 0 : index
    %62 = vector.load %arg4[%c3, %c0_33, %c0_34] : memref<9x128x128xbf16, #tpu.memory_space<vmem>>, vector<1x128x128xbf16>
    %63 = vector.shape_cast %62 : vector<1x128x128xbf16> to vector<128x128xbf16>
    %cst_35 = arith.constant dense<0.000000e+00> : vector<256x128xf32>
    %64 = tpu.matmul %61, %63, %cst_35 {dimension_numbers = #tpu.dot_dimension_numbers<[1], [0], [0], [1], [0, 0, 1, 1], [], []>} : vector<256x128xbf16>, vector<128x128xbf16>, vector<256x128xf32> -> vector<256x128xf32>
    %65 = arith.addf %55, %64 : vector<256x128xf32>
    %c24_36 = arith.constant 24 : index
    %c0_37 = arith.constant 0 : index
    %66 = vector.load %arg9[%c24_36, %c0_37] : memref<304x128xf32, #tpu.memory_space<vmem>>, vector<256x128xf32>
    %67 = arith.truncf %66 : vector<256x128xf32> to vector<256x128xbf16>
    %c4 = arith.constant 4 : index
    %c0_38 = arith.constant 0 : index
    %c0_39 = arith.constant 0 : index
    %68 = vector.load %arg4[%c4, %c0_38, %c0_39] : memref<9x128x128xbf16, #tpu.memory_space<vmem>>, vector<1x128x128xbf16>
    %69 = vector.shape_cast %68 : vector<1x128x128xbf16> to vector<128x128xbf16>
    %cst_40 = arith.constant dense<0.000000e+00> : vector<256x128xf32>
    %70 = tpu.matmul %67, %69, %cst_40 {dimension_numbers = #tpu.dot_dimension_numbers<[1], [0], [0], [1], [0, 0, 1, 1], [], []>} : vector<256x128xbf16>, vector<128x128xbf16>, vector<256x128xf32> -> vector<256x128xf32>
    %71 = arith.addf %65, %70 : vector<256x128xf32>
    %c25 = arith.constant 25 : index
    %c0_41 = arith.constant 0 : index
    %72 = vector.load %arg9[%c25, %c0_41] : memref<304x128xf32, #tpu.memory_space<vmem>>, vector<256x128xf32>
    %c14_i32_42 = arith.constant 14 : i32
    %73 = vector.broadcast %c14_i32_42 : i32 to vector<256x128xi32>
    %74 = arith.cmpi sle, %28, %73 : vector<256x128xi32>
    %cst_43 = arith.constant 0.000000e+00 : f32
    %75 = vector.broadcast %cst_43 : f32 to vector<256x128xf32>
    %76 = arith.select %74, %72, %75 : vector<256x128xi1>, vector<256x128xf32>
    %77 = arith.truncf %76 : vector<256x128xf32> to vector<256x128xbf16>
    %c5 = arith.constant 5 : index
    %c0_44 = arith.constant 0 : index
    %c0_45 = arith.constant 0 : index
    %78 = vector.load %arg4[%c5, %c0_44, %c0_45] : memref<9x128x128xbf16, #tpu.memory_space<vmem>>, vector<1x128x128xbf16>
    %79 = vector.shape_cast %78 : vector<1x128x128xbf16> to vector<128x128xbf16>
    %cst_46 = arith.constant dense<0.000000e+00> : vector<256x128xf32>
    %80 = tpu.matmul %77, %79, %cst_46 {dimension_numbers = #tpu.dot_dimension_numbers<[1], [0], [0], [1], [0, 0, 1, 1], [], []>} : vector<256x128xbf16>, vector<128x128xbf16>, vector<256x128xf32> -> vector<256x128xf32>
    %81 = arith.addf %71, %80 : vector<256x128xf32>
    %c39 = arith.constant 39 : index
    %c0_47 = arith.constant 0 : index
    %82 = vector.load %arg9[%c39, %c0_47] : memref<304x128xf32, #tpu.memory_space<vmem>>, vector<256x128xf32>
    %c1_i32_48 = arith.constant 1 : i32
    %83 = vector.broadcast %c1_i32_48 : i32 to vector<256x128xi32>
    %84 = arith.cmpi sge, %28, %83 : vector<256x128xi32>
    %cst_49 = arith.constant 0.000000e+00 : f32
    %85 = vector.broadcast %cst_49 : f32 to vector<256x128xf32>
    %86 = arith.select %84, %82, %85 : vector<256x128xi1>, vector<256x128xf32>
    %87 = arith.truncf %86 : vector<256x128xf32> to vector<256x128xbf16>
    %c6 = arith.constant 6 : index
    %c0_50 = arith.constant 0 : index
    %c0_51 = arith.constant 0 : index
    %88 = vector.load %arg4[%c6, %c0_50, %c0_51] : memref<9x128x128xbf16, #tpu.memory_space<vmem>>, vector<1x128x128xbf16>
    %89 = vector.shape_cast %88 : vector<1x128x128xbf16> to vector<128x128xbf16>
    %cst_52 = arith.constant dense<0.000000e+00> : vector<256x128xf32>
    %90 = tpu.matmul %87, %89, %cst_52 {dimension_numbers = #tpu.dot_dimension_numbers<[1], [0], [0], [1], [0, 0, 1, 1], [], []>} : vector<256x128xbf16>, vector<128x128xbf16>, vector<256x128xf32> -> vector<256x128xf32>
    %91 = arith.addf %81, %90 : vector<256x128xf32>
    %c40 = arith.constant 40 : index
    %c0_53 = arith.constant 0 : index
    %92 = vector.load %arg9[%c40, %c0_53] : memref<304x128xf32, #tpu.memory_space<vmem>>, vector<256x128xf32>
    %93 = arith.truncf %92 : vector<256x128xf32> to vector<256x128xbf16>
    %c7_54 = arith.constant 7 : index
    %c0_55 = arith.constant 0 : index
    %c0_56 = arith.constant 0 : index
    %94 = vector.load %arg4[%c7_54, %c0_55, %c0_56] : memref<9x128x128xbf16, #tpu.memory_space<vmem>>, vector<1x128x128xbf16>
    %95 = vector.shape_cast %94 : vector<1x128x128xbf16> to vector<128x128xbf16>
    %cst_57 = arith.constant dense<0.000000e+00> : vector<256x128xf32>
    %96 = tpu.matmul %93, %95, %cst_57 {dimension_numbers = #tpu.dot_dimension_numbers<[1], [0], [0], [1], [0, 0, 1, 1], [], []>} : vector<256x128xbf16>, vector<128x128xbf16>, vector<256x128xf32> -> vector<256x128xf32>
    %97 = arith.addf %91, %96 : vector<256x128xf32>
    %c41 = arith.constant 41 : index
    %c0_58 = arith.constant 0 : index
    %98 = vector.load %arg9[%c41, %c0_58] : memref<304x128xf32, #tpu.memory_space<vmem>>, vector<256x128xf32>
    %c14_i32_59 = arith.constant 14 : i32
    %99 = vector.broadcast %c14_i32_59 : i32 to vector<256x128xi32>
    %100 = arith.cmpi sle, %28, %99 : vector<256x128xi32>
    %cst_60 = arith.constant 0.000000e+00 : f32
    %101 = vector.broadcast %cst_60 : f32 to vector<256x128xf32>
    %102 = arith.select %100, %98, %101 : vector<256x128xi1>, vector<256x128xf32>
    %103 = arith.truncf %102 : vector<256x128xf32> to vector<256x128xbf16>
    %c8_61 = arith.constant 8 : index
    %c0_62 = arith.constant 0 : index
    %c0_63 = arith.constant 0 : index
    %104 = vector.load %arg4[%c8_61, %c0_62, %c0_63] : memref<9x128x128xbf16, #tpu.memory_space<vmem>>, vector<1x128x128xbf16>
    %105 = vector.shape_cast %104 : vector<1x128x128xbf16> to vector<128x128xbf16>
    %cst_64 = arith.constant dense<0.000000e+00> : vector<256x128xf32>
    %106 = tpu.matmul %103, %105, %cst_64 {dimension_numbers = #tpu.dot_dimension_numbers<[1], [0], [0], [1], [0, 0, 1, 1], [], []>} : vector<256x128xbf16>, vector<128x128xbf16>, vector<256x128xf32> -> vector<256x128xf32>
    %107 = arith.addf %97, %106 : vector<256x128xf32>
    %c0_65 = arith.constant 0 : index
    %c0_66 = arith.constant 0 : index
    %108 = vector.load %arg5[%c0_65, %c0_66] : memref<1x128xf32, #tpu.memory_space<vmem>>, vector<1x128xf32>
    %109 = vector.broadcast %108 : vector<1x128xf32> to vector<256x128xf32>
    %110 = arith.addf %107, %109 : vector<256x128xf32>
    %cst_67 = arith.constant 0.000000e+00 : f32
    %111 = vector.broadcast %cst_67 : f32 to vector<256x128xf32>
    %112 = arith.maximumf %110, %111 : vector<256x128xf32>
    %113 = arith.truncf %112 : vector<256x128xf32> to vector<256x128xbf16>
    %c0_68 = arith.constant 0 : index
    %c0_69 = arith.constant 0 : index
    %114 = vector.load %arg6[%c0_68, %c0_69] : memref<128x256xbf16, #tpu.memory_space<vmem>>, vector<128x256xbf16>
    %cst_70 = arith.constant dense<0.000000e+00> : vector<256x256xf32>
    %115 = tpu.matmul %113, %114, %cst_70 {dimension_numbers = #tpu.dot_dimension_numbers<[1], [0], [0], [1], [0, 0, 1, 1], [], []>} : vector<256x128xbf16>, vector<128x256xbf16>, vector<256x256xf32> -> vector<256x256xf32>
    %c0_71 = arith.constant 0 : index
    %c0_72 = arith.constant 0 : index
    %116 = vector.load %arg7[%c0_71, %c0_72] : memref<1x256xf32, #tpu.memory_space<vmem>>, vector<1x256xf32>
    %117 = vector.broadcast %116 : vector<1x256xf32> to vector<256x256xf32>
    %118 = arith.addf %115, %117 : vector<256x256xf32>
    %c0_73 = arith.constant 0 : index
    %c0_74 = arith.constant 0 : index
    %119 = vector.load %arg1[%c0_73, %c0_74] : memref<256x256xf32, #tpu.memory_space<vmem>>, vector<256x256xf32>
    %120 = arith.addf %118, %119 : vector<256x256xf32>
    %cst_75 = arith.constant 0.000000e+00 : f32
    %121 = vector.broadcast %cst_75 : f32 to vector<256x256xf32>
    %122 = arith.maximumf %120, %121 : vector<256x256xf32>
    %c0_76 = arith.constant 0 : index
    %c0_77 = arith.constant 0 : index
    %123 = vector.load %arg8[%c0_76, %c0_77] : memref<256x256xf32, #tpu.memory_space<vmem>>, vector<256x256xf32>
    tpu.vector_store %arg8[%c0_76, %c0_77], %122 {strides = array<i32>} : memref<256x256xf32, #tpu.memory_space<vmem>>, vector<256x256xf32>,
    return
  }
  func.func @transform_0(%arg0: i32) -> (i32, i32) {
    %c0_i32 = arith.constant 0 : i32
    %c0_i32_0 = arith.constant 0 : i32
    return %arg0, %c0_i32 : i32, i32
  }
  func.func @transform_1(%arg0: i32) -> (i32, i32) {
    %c0_i32 = arith.constant 0 : i32
    %c0_i32_0 = arith.constant 0 : i32
    %c0_i32_1 = arith.constant 0 : i32
    return %c0_i32, %c0_i32_0 : i32, i32
  }
  func.func @transform_2(%arg0: i32) -> (i32, i32) {
    %c0_i32 = arith.constant 0 : i32
    %c0_i32_0 = arith.constant 0 : i32
    %c0_i32_1 = arith.constant 0 : i32
    return %c0_i32, %c0_i32_0 : i32, i32
  }
  func.func @transform_3(%arg0: i32) -> (i32, i32, i32) {
    %c0_i32 = arith.constant 0 : i32
    %c0_i32_0 = arith.constant 0 : i32
    %c0_i32_1 = arith.constant 0 : i32
    %c0_i32_2 = arith.constant 0 : i32
    return %c0_i32, %c0_i32_0, %c0_i32_1 : i32, i32, i32
  }
  func.func @transform_4(%arg0: i32) -> (i32, i32) {
    %c0_i32 = arith.constant 0 : i32
    %c0_i32_0 = arith.constant 0 : i32
    %c0_i32_1 = arith.constant 0 : i32
    return %c0_i32, %c0_i32_0 : i32, i32
  }
  func.func @transform_5(%arg0: i32) -> (i32, i32) {
    %c0_i32 = arith.constant 0 : i32
    %c0_i32_0 = arith.constant 0 : i32
    %c0_i32_1 = arith.constant 0 : i32
    return %c0_i32, %c0_i32_0 : i32, i32
  }
  func.func @transform_6(%arg0: i32) -> (i32, i32) {
    %c0_i32 = arith.constant 0 : i32
    %c0_i32_0 = arith.constant 0 : i32
    %c0_i32_1 = arith.constant 0 : i32
    return %c0_i32, %c0_i32_0 : i32, i32
  }
  func.func @transform_7(%arg0: i32) -> (i32, i32) {
    %c0_i32 = arith.constant 0 : i32
    %c0_i32_0 = arith.constant 0 : i32
    return %arg0, %c0_i32 : i32, i32
  }
}

</mosaic_0001>

<bundles_post_ra>
// kernel: bottleneck_forward.1
= control target key start
LH: loop header
LB: loop body
LE: loop exit
PB: predicated region body
PF: predicated region fallthrough
CT: control target
= control target key end

     0   :  { %12 = vsyncpa [#allocation4], 0  ;;  %s8245_s0 = inlined_call_operand.hbm [shape: f32[512,256], index: 0, kind: input, shape index: {}]   ;;  %s8246_s1 = inlined_call_operand.hbm [shape: bf16[256,128], index: 1, kind: input, shape index: {}]   ;;  %s8247_s2 = inlined_call_operand.vmem [shape: f32[1,128], index: 2, kind: input, shape index: {}]   ;;  %s8248_s3 = inlined_call_operand.hbm [shape: bf16[9,128,128], index: 3, kind: input, shape index: {}]   ;;  %s8249_s4 = inlined_call_operand.vmem [shape: f32[1,128], index: 4, kind: input, shape index: {}]   ;;  %s8250_s5 = inlined_call_operand.hbm [shape: bf16[128,256], index: 5, kind: input, shape index: {}]   ;;  %s8251_s6 = inlined_call_operand.vmem [shape: f32[1,256], index: 6, kind: input, shape index: {}]   ;;  %s8252_s7 = inlined_call_operand.hbm [shape: f32[512,256], index: 7, kind: output, shape index: {}]  }
   0x1   :  { %14 = vsyncpa [#allocation4 + $0x1], 0 }
   0x2   :  { %15 = vsyncpa [#allocation7], 0 }
   0x3   :  { %16 = vsyncpa [#allocation10], 0 }
   0x4   :  { %17 = vsyncpa [#allocation5], 0 }
   0x5   :  { %19 = vsyncpa [#allocation5 + $0x1], 0  ;;  %s6862_s24 = smov 0   ;;  %s6864_s25 = smov 0  }
   0x6   :  { %s6866_s26 = smov 0   ;;  %s6868_s27 = smov 0  }
   0x7 LB: > { %s6883_s28 = sadd.s32 4294967295, %s6803_s27   ;;  %s4962_s29 = sadd.s32 4294967294, %s6803_s27   ;;  %s6803_s27 = sphi %s6868_s27, %s8458_s27   ;;  %s6799_s26 = sphi %s6866_s26, %s8457_s26   ;;  %s6795_s25 = sphi %s6864_s25, %s8456_s25   ;;  %s6791_s24 = sphi %s6862_s24, %s8455_s24  }
   0x8   : > { %p45_p0 = scmp.ne.s32.totalorder %s6795_s25, %s6791_s24  ;;  %p8253_p1 = scmp.eq.s32.totalorder %s6883_s28, 0 }
   0x9   : > { %p201_p3 = scmp.eq.s32.totalorder %s4962_s29, 1  ;;  %p4963_p5 = scmp.ge.s32.totalorder %s6803_s27, 1 }
   0xa   : > { %p6892_p4 = por %p8253_p1, %p45_p0  ;;  %p208_p7 = scmp.lt.s32.totalorder %s6803_s27, 3 }
   0xb   : > { %p6897_p6 = por %p201_p3, %p45_p0  ;;  %s6805_s10 = smov [#allocation6]  }
   0xc   : > { %s8301_s30 = scalar_select %p6892_p4, 1, 0 }
   0xd   : > { %s8302_s8 = scalar_select %p6897_p6, 1, 0 }
   0xe   : > { %p6902_p8 = pnand %p4963_p5, %p208_p7  ;;  %s220_s11 = sshll.u32 %s6805_s10, 4  ;;  %s6906_s11 = int_to_ptr.vmem [resolvable:$true] %s220_s11 }
   0xf   : > { %8303 = sst [smem:[#allocation16_spill]] %s8302_s8  ;;  %s6806_s13 = smov [#allocation8]  }
  0x10   : > { %s8304_s9 = scalar_select %p6902_p8, 1, 0 }
  0x11   : > { %p6430_p9 = pneg %p6902_p8  ;;  %s236_s14 = sshll.u32 %s6806_s13, 4  ;;  %s6917_s14 = int_to_ptr.vmem [resolvable:$true] %s236_s14 }
  0x12   : > { %s6807_s15 = smov [#allocation9]   ;;  %s6615_s19 = scalar_lea.hbm %s8246_s1, 2048 }
  0x13   : > { %p6913_p11 = pnand %p6430_p9, %p8253_p1  ;;  %s6919_s16 = sshll.u32 %s6807_s15, 4  ;;  %s253_s16 = int_to_ptr.vmem [resolvable:$true] %s6919_s16 }
  0x14   : > { %p6616_p12 = scmp.ne.s32.totalorder %s8246_s1, %s6615_s19  ;;  %p6622_p5 = scmp.lt.u32.totalorder %s6615_s19, %s8246_s1 }
  0x15   : > { %p6929_p13 = pneg %p6913_p11 }
  0x17   : > { %p6618_p0 = pnand %p6929_p13, %p6616_p12 }
  0x19   : > { %p6619_p3 = pneg %p6618_p0 }
  0x1b   : > { %p6624_p7 = pnand %p6622_p5, %p6619_p3 }
  0x1d   : > { %6627 = shalt.err (!%p6624_p7)
}
  0x1e   : > { %s6628_s10 = scalar_lea.vmem %s6906_s11, 2048  ;;  %p6636_p2 = scmp.lt.s32.totalorder %s6906_s11, %s6906_s11 }
  0x1f   : > { %p6629_p9 = scmp.ne.s32.totalorder %s6906_s11, %s6628_s10  ;;  %p6637_p6 = scmp.lt.s32.totalorder %s6628_s10, %s6628_s10 }
  0x21   : > { %p6631_p10 = pnand %p6629_p9, %p6929_p13  ;;  %p6638_p12 = por %p6637_p6, %p6636_p2 }
  0x23   : > { %p6632_p1 = pneg %p6631_p10 }
  0x25   : > { %p6639_p0 = pnand %p6638_p12, %p6632_p1 }
  0x27   : > { %6642 = shalt.err (!%p6639_p0)
}
  0x28   : > { %s6808_s13 = smov 64   ;;  %s6809_s15 = smov 4  }
  0x29   : > { %6433 = dma.hbm_to_vmem [thread:$0]  (!%p6913_p11), %s8246_s1, 2048, %s6906_s11, [#allocation7], %s6808_s13, %s6808_s13, %s6809_s15  }
  0x2a   : > { %s6643_s21 = scalar_lea.hbm %s8248_s3, 9216 }
  0x2b   : > { %p6644_p2 = scmp.ne.s32.totalorder %s8248_s3, %s6643_s21  ;;  %p6650_p10 = scmp.lt.u32.totalorder %s6643_s21, %s8248_s3 }
  0x2d   : > { %p6646_p1 = pnand %p6644_p2, %p6929_p13 }
  0x2f   : > { %p6647_p6 = pneg %p6646_p1 }
  0x31   : > { %p6652_p3 = pnand %p6650_p10, %p6647_p6 }
  0x33   : > { %6655 = shalt.err (!%p6652_p3)
}
  0x34   : > { %s6656_s11 = scalar_lea.vmem %s6917_s14, 9216  ;;  %p6664_p12 = scmp.lt.s32.totalorder %s6917_s14, %s6917_s14 }
  0x35   : > { %p6657_p5 = scmp.ne.s32.totalorder %s6917_s14, %s6656_s11  ;;  %p6665_p0 = scmp.lt.s32.totalorder %s6656_s11, %s6656_s11 }
  0x37   : > { %p6659_p7 = pnand %p6657_p5, %p6929_p13  ;;  %p6666_p2 = por %p6665_p0, %p6664_p12 }
  0x39   : > { %p6660_p9 = pneg %p6659_p7 }
  0x3b   : > { %p6667_p1 = pnand %p6666_p2, %p6660_p9 }
  0x3d   : > { %6670 = shalt.err (!%p6667_p1)
}
  0x3e   : > { %6436 = dma.hbm_to_vmem [thread:$0]  (!%p6913_p11), %s8248_s3, 9216, %s6917_s14, [#allocation7], %s6808_s13, %s6808_s13, %s6809_s15  }
  0x3f   : > { %s6671_s20 = scalar_lea.hbm %s8250_s5, 2048 }
  0x40   : > { %p6672_p6 = scmp.ne.s32.totalorder %s8250_s5, %s6671_s20  ;;  %p6678_p5 = scmp.lt.u32.totalorder %s6671_s20, %s8250_s5 }
  0x42   : > { %p6674_p10 = pnand %p6672_p6, %p6929_p13 }
  0x44   : > { %p6675_p3 = pneg %p6674_p10 }
  0x46   : > { %p6680_p7 = pnand %p6678_p5, %p6675_p3 }
  0x48   : > { %6683 = shalt.err (!%p6680_p7)
}
  0x49   : > { %s6684_s11 = scalar_lea.vmem %s253_s16, 2048  ;;  %p6692_p2 = scmp.lt.s32.totalorder %s253_s16, %s253_s16 }
  0x4a   : > { %p6685_p9 = scmp.ne.s32.totalorder %s253_s16, %s6684_s11  ;;  %p6693_p1 = scmp.lt.s32.totalorder %s6684_s11, %s6684_s11 }
  0x4c   : > { %p6687_p12 = pnand %p6685_p9, %p6929_p13  ;;  %p6694_p4 = por %p6693_p1, %p6692_p2 }
  0x4e   : > { %p6688_p0 = pneg %p6687_p12 }
  0x50   : > { %p6695_p8 = pnand %p6694_p4, %p6688_p0 }
  0x52   : > { %6698 = shalt.err (!%p6695_p8)
}
  0x53   : > { %s6810_s14 = smov 128   ;;  %s6811_s22 = smov 8  }
  0x54   : > { %6439 = dma.hbm_to_vmem [thread:$0]  (!%p6913_p11), %s8250_s5, 2048, %s253_s16, [#allocation10], %s6810_s14, %s6810_s14, %s6811_s22  }
  0x55   : > { %s6993_s8 = sadd.s32 1, %s6803_s27   ;;  %s32_s18 = sadd.s32 1, %s6799_s26 }
  0x56   : > { %s29_s17 = ssub.s32 %s6803_s27, %s6993_s8  ;;  %p39_p8 = scmp.ne.s32.totalorder %s6799_s26, %s6795_s25 }
  0x57   : > { %p30_p4 = scmp.eq.s32.totalorder %s29_s17, 0  ;;  %p40_p13 = scmp.eq.s32.totalorder %s6803_s27, 0 }
  0x58   : > { %p6451_p6 = scmp.lt.s32.totalorder %s6803_s27, 2  ;;  %p8307_p3 = scmp.eq.s32.totalorder %s6883_s28, 1 }
  0x59   : > { %s7003_s19 = scalar_select %p30_p4, %s6799_s26, %s32_s18  }
  0x5a   : > { %p41_p10 = por %p40_p13, %p39_p8  ;;  %p7007_p5 = por %p8307_p3, %p39_p8 }
  0x5b   : > { %s269_s12 = sand.u32 1, %s6799_s26   ;;  %s5379_s21 = sshll.u32 %s6803_s27, 13 }
  0x5c   : > { %s4968_s16 = sshll.u32 %s269_s12, 9  ;;  %s7016_s10 = scalar_lea.hbm %s8245_s0, %s5379_s21 }
  0x5d   : > { %s273_s11 = scalar_lea.vmem [#allocation3], %s4968_s16  ;;  %p7018_p11 = pnand %p6451_p6, %p41_p10 }
  0x5e   : > { %s281_s14 = sshll.u32 %s273_s11, 4  ;;  %s7024_s13 = scalar_lea.sflag [#allocation4], %s269_s12  ;;  %s7022_s14 = int_to_ptr.vmem [resolvable:$true] %s281_s14 }
  0x5f   : > { %s6699_s15 = scalar_lea.hbm %s7016_s10, 8192  ;;  %p6701_p9 = pneg %p7018_p11 }
  0x60   : > { %p6700_p7 = scmp.ne.s32.totalorder %s7016_s10, %s6699_s15  ;;  %s6704_s21 = scalar_lea.hbm %s8245_s0, 16384 }
  0x61   : > { %p6705_p2 = scmp.lt.u32.totalorder %s7016_s10, %s8245_s0  ;;  %p6706_p1 = scmp.lt.u32.totalorder %s6704_s21, %s6699_s15 }
  0x62   : > { %p6702_p12 = pnand %p6701_p9, %p6700_p7  ;;  %p6708_p8 = scmp.lt.u32.totalorder %s6699_s15, %s7016_s10 }
  0x63   : > { %p6707_p4 = por %p6706_p1, %p6705_p2 }
  0x64   : > { %p6703_p0 = pneg %p6702_p12 }
  0x65   : > { %p6709_p13 = por %p6708_p8, %p6707_p4 }
  0x67   : > { %p6710_p6 = pnand %p6709_p13, %p6703_p0 }
  0x69   : > { %6713 = shalt.err (!%p6710_p6)
}
  0x6a   : > { %s6714_s12 = scalar_lea.vmem %s7022_s14, 8192  ;;  %s6812_s29 = smov [#allocation3]  }
  0x6b   : > { %p6715_p10 = scmp.ne.s32.totalorder %s7022_s14, %s6714_s12  ;;  %s6719_s11 = sshll.u32 %s6812_s29, 4  ;;  %s6720_s11 = int_to_ptr.vmem [resolvable:$false] %s6719_s11 }
  0x6c   : > { %s6721_s17 = scalar_lea.vmem %s6720_s11, 16384  ;;  %p6722_p12 = scmp.lt.s32.totalorder %s7022_s14, %s6720_s11 }
  0x6d   : > { %p6717_p3 = pnand %p6715_p10, %p6701_p9  ;;  %p6723_p2 = scmp.lt.s32.totalorder %s6721_s17, %s6714_s12 }
  0x6f   : > { %p6718_p7 = pneg %p6717_p3  ;;  %p6724_p1 = por %p6723_p2, %p6722_p12 }
  0x71   : > { %p6725_p4 = pnand %p6724_p1, %p6718_p7 }
  0x73   : > { %6728 = shalt.err (!%p6725_p4)
}
  0x74   : > { %s6813_s15 = smov 256   ;;  %s6814_s18 = smov 16  }
  0x75   : > { %6443 = dma.hbm_to_vmem [thread:$0]  (!%p7018_p11), %s7016_s10, 8192, %s7022_s14, %s7024_s13, %s6813_s15, %s6813_s15, %s6814_s18  }
  0x76   : > { %p8310_p9 = scmp.ne.s32.totalorder %s8304_s9, 0 }
  0x78   : > { %293 = sbr.rel (%p8310_p9) target bundleno = 1427 (0x593), region = 48 }
  0x7f   : > { %s7055_s21 = sand.u32 1, %s6795_s25   ;;  %p8311_p0 = scmp.ne.s32.totalorder %s8301_s30, 0 }
  0x80   : > { %s4973_s16 = sshll.u32 %s7055_s21, 9  ;;  %s296_s23 = scalar_lea.sflag [#allocation4], %s7055_s21 }
  0x81   : > { %s7061_s12 = scalar_lea.vmem [#allocation3], %s4973_s16 }
  0x82   : > { %6774 = dma.done.wait (%p8311_p0), %s296_s23, 8192  }
  0x83   : > { %6776 = vsyncadd (%p8311_p0), %s296_s23, 4294959104  ;;  %p8312_p11 = scmp.eq.s32.totalorder %s6883_s28, 0 }
  0x85   : > { %6778 = dma.done.wait (%p8312_p11), [#allocation7], 11264   ;;  %p8313_p8 = pmov %p8312_p11 }
  0x87   : > { %6780 = vsyncadd (%p8313_p8), [#allocation7], 4294956032  ;;  %p8314_p13 = pmov %p8313_p8 }
  0x88   : > { %p8315_p6 = pmov %p8313_p8 }
  0x89   : > { %6782 = dma.done.wait (%p8314_p13), [#allocation10], 2048  }
  0x8a   : > { %6784 = vsyncadd (%p8315_p6), [#allocation10], 4294965248  ;;  %v6502_v0 = vld [vmem:[#allocation6 + $0x40] sm:$0xff]   ;;  %v6504_v2 = vld [vmem:[#allocation6 + $0x48] sm:$0xff]   ;;  %vm6817_vm1 = vmmov 1   ;;  %s8008_s29 = scalar_lea.vmem [#allocation11], %s4973_s16 }
  0x8b   : > { %v6503_v1 = vld [vmem:[#allocation6] sm:$0xff]   ;;  %5382 = vmatprep.subr.bf16.mxu0 %v6502_v0  ;;  %v6505_v3 = vld [vmem:[#allocation6 + $0x8] sm:$0xff]   ;;  %v6506_v4 = vld [vmem:[#allocation6 + $0x50] sm:$0xff]   ;;  %s5381_s11 = sshll.u32 %s6883_s28, 13  ;;  %s4860_s17 = sshll.u32 %s8008_s29, 4  ;;  %s8198_s17 = int_to_ptr.vmem [resolvable:$true] %s4860_s17 }
  0x8c   : > { %5383 = vmatpush3.bf16.msra.mxu0 %v6503_v1  ;;  %v6507_v5 = vld [vmem:[#allocation6 + $0x10] sm:$0xff]   ;;  %v6508_v6 = vld [vmem:[#allocation6 + $0x58] sm:$0xff]   ;;  %v6510_v8 = vld [vmem:[#allocation6 + $0x60] sm:$0xff]   ;;  %s8196_s16 = scalar_lea.hbm %s8252_s7, %s5381_s11  ;;  %s4846_s28 = scalar_lea.sflag [#allocation5], %s7055_s21 }
  0x8d   : > { %5384 = vmatprep.subr.bf16.mxu0 %v6504_v2  ;;  %v6509_v7 = vld [vmem:[#allocation6 + $0x18] sm:$0xff]   ;;  %v6511_v9 = vld [vmem:[#allocation6 + $0x20] sm:$0xff]   ;;  %v6512_v10 = vld [vmem:[#allocation6 + $0x68] sm:$0xff]   ;;  %s6729_s23 = scalar_lea.vmem %s8198_s17, 8192 }
  0x8e   : > { %v346_v11 = vld [vmem:[%s7061_s12 + $0x8] sm:$0xff]  ;;  %v348_v12 = vld [vmem:[%s7061_s12 + $0x18] sm:$0xff]  ;;  %v6514_v15 = vld [vmem:[#allocation6 + $0x70] sm:$0xff]   ;;  %p6730_p10 = scmp.ne.s32.totalorder %s8198_s17, %s6729_s23 }
  0x8f   : > { %v410_v13 = vpack.c.bf16 %v348_v12, %v346_v11  ;;  %v6513_v14 = vld [vmem:[#allocation6 + $0x28] sm:$0xff]   ;;  %v6515_v16 = vld [vmem:[#allocation6 + $0x30] sm:$0xff]   ;;  %v6516_v17 = vld [vmem:[#allocation6 + $0x78] sm:$0xff]  }
  0x90   : > { %5385 = vmatpush3.bf16.msra.mxu0 %v6505_v3  ;;  %v6517_v18 = vld [vmem:[#allocation6 + $0x38] sm:$0xff]   ;;  %v345_v19 = vld [vmem:[%s7061_s12] sm:$0xff]  ;;  %v347_v20 = vld [vmem:[%s7061_s12 + $0x10] sm:$0xff]  ;;  %p6731_p3 = pnand %p6730_p10, %p7007_p5 }
  0x91   : > { %5386 = vmatprep.subr.bf16.mxu0 %v6506_v4  ;;  %608 = vmatprep.mubr.bf16.mxu0 %v410_v13  ;;  %v350_v21 = vld [vmem:[%s7061_s12 + $0x28] sm:$0xff]  ;;  %v352_v22 = vld [vmem:[%s7061_s12 + $0x38] sm:$0xff]  ;;  %v409_v23 = vpack.c.bf16 %v347_v20, %v345_v19  ;;  %v349_v25 = vld [vmem:[%s7061_s12 + $0x20] sm:$0xff] }
  0x92   : > { %v412_v24 = vpack.c.bf16 %v352_v22, %v350_v21  ;;  %v351_v26 = vld [vmem:[%s7061_s12 + $0x30] sm:$0xff]  ;;  %v354_v27 = vld [vmem:[%s7061_s12 + $0x48] sm:$0xff]  ;;  %v356_v28 = vld [vmem:[%s7061_s12 + $0x58] sm:$0xff]  ;;  %p6732_p7 = pneg %p6731_p3 }
  0x93   : > { %v411_v29 = vpack.c.bf16 %v351_v26, %v349_v25  ;;  %v6518_v30 = vld [vmem:[#allocation8 + $0x40] sm:$0xff]   ;;  %v414_v31 = vpack.c.bf16 %v356_v28, %v354_v27  ;;  %v6519_v32 = vld [vmem:[#allocation8 + $0x48] sm:$0xff]   ;;  %v6520_v33 = vld [vmem:[#allocation8 + $0x50] sm:$0xff]  }
  0x94   : > { %5387 = vmatpush3.bf16.msra.mxu0 %v6507_v5  ;;  %v353_v34 = vld [vmem:[%s7061_s12 + $0x40] sm:$0xff]  ;;  %v355_v35 = vld [vmem:[%s7061_s12 + $0x50] sm:$0xff]  ;;  %v358_v36 = vld [vmem:[%s7061_s12 + $0x68] sm:$0xff] }
  0x95   : > { %5388 = vmatprep.subr.bf16.mxu0 %v6508_v6  ;;  %v360_v37 = vld [vmem:[%s7061_s12 + $0x78] sm:$0xff]  ;;  %v413_v38 = vpack.c.bf16 %v355_v35, %v353_v34  ;;  %v357_v40 = vld [vmem:[%s7061_s12 + $0x60] sm:$0xff]  ;;  %v359_v41 = vld [vmem:[%s7061_s12 + $0x70] sm:$0xff] }
  0x96   : > { %v416_v39 = vpack.c.bf16 %v360_v37, %v358_v36  ;;  %v362_v42 = vld [vmem:[%s7061_s12 + $0x88] sm:$0xff]  ;;  %v364_v43 = vld [vmem:[%s7061_s12 + $0x98] sm:$0xff]  ;;  %v415_v44 = vpack.c.bf16 %v359_v41, %v357_v40  ;;  %v361_v46 = vld [vmem:[%s7061_s12 + $0x80] sm:$0xff] }
  0x97   : > { %v418_v45 = vpack.c.bf16 %v364_v43, %v362_v42  ;;  %v363_v47 = vld [vmem:[%s7061_s12 + $0x90] sm:$0xff]  ;;  %v366_v48 = vld [vmem:[%s7061_s12 + $0xa8] sm:$0xff]  ;;  %v368_v49 = vld [vmem:[%s7061_s12 + $0xb8] sm:$0xff] }
  0x98   : > { %5389 = vmatpush3.bf16.msra.mxu0 %v6509_v7  ;;  %v417_v50 = vpack.c.bf16 %v363_v47, %v361_v46  ;;  %v420_v51 = vpack.c.bf16 %v368_v49, %v366_v48  ;;  %v365_v52 = vld [vmem:[%s7061_s12 + $0xa0] sm:$0xff]  ;;  %v367_v53 = vld [vmem:[%s7061_s12 + $0xb0] sm:$0xff]  ;;  %v370_v54 = vld [vmem:[%s7061_s12 + $0xc8] sm:$0xff] }
  0x99   : > { %5390 = vmatprep.subr.bf16.mxu0 %v6510_v8  ;;  %v372_v55 = vld [vmem:[%s7061_s12 + $0xd8] sm:$0xff]  ;;  %v419_v56 = vpack.c.bf16 %v367_v53, %v365_v52  ;;  %v369_v58 = vld [vmem:[%s7061_s12 + $0xc0] sm:$0xff]  ;;  %v371_v59 = vld [vmem:[%s7061_s12 + $0xd0] sm:$0xff] }
  0x9a   : > { %v422_v57 = vpack.c.bf16 %v372_v55, %v370_v54  ;;  %v374_v60 = vld [vmem:[%s7061_s12 + $0xe8] sm:$0xff]  ;;  %v376_v61 = vld [vmem:[%s7061_s12 + $0xf8] sm:$0xff]  ;;  %v421_v62 = vpack.c.bf16 %v371_v59, %v369_v58  ;;  %v373_v0 = vld [vmem:[%s7061_s12 + $0xe0] sm:$0xff] }
  0x9b   : > { %v424_v63 = vpack.c.bf16 %v376_v61, %v374_v60  ;;  %v375_v1 = vld [vmem:[%s7061_s12 + $0xf0] sm:$0xff]  ;;  %v378_v2 = vld [vmem:[%s7061_s12 + $0x108] sm:$0xff]  ;;  %v380_v3 = vld [vmem:[%s7061_s12 + $0x118] sm:$0xff] }
  0x9c   : > { %5391 = vmatpush3.bf16.msra.mxu0 %v6511_v9  ;;  %v423_v4 = vpack.c.bf16 %v375_v1, %v373_v0  ;;  %v426_v5 = vpack.c.bf16 %v380_v3, %v378_v2  ;;  %v377_v6 = vld [vmem:[%s7061_s12 + $0x100] sm:$0xff]  ;;  %v379_v7 = vld [vmem:[%s7061_s12 + $0x110] sm:$0xff]  ;;  %v382_v8 = vld [vmem:[%s7061_s12 + $0x128] sm:$0xff] }
  0x9d   : > { %5392 = vmatprep.subr.bf16.mxu0 %v6512_v10  ;;  %v384_v9 = vld [vmem:[%s7061_s12 + $0x138] sm:$0xff]  ;;  %v425_v10 = vpack.c.bf16 %v379_v7, %v377_v6  ;;  %v381_v12 = vld [vmem:[%s7061_s12 + $0x120] sm:$0xff]  ;;  %v383_v13 = vld [vmem:[%s7061_s12 + $0x130] sm:$0xff] }
  0x9e   : > { %v428_v11 = vpack.c.bf16 %v384_v9, %v382_v8  ;;  %v387_v19 = vld [vmem:[%s7061_s12 + $0x150] sm:$0xff]  ;;  %v6521_v20 = vld [vmem:[#allocation8 + $0x58] sm:$0xff]   ;;  %v390_v21 = vld [vmem:[%s7061_s12 + $0x168] sm:$0xff] }
  0x9f   : > { %v392_v22 = vld [vmem:[%s7061_s12 + $0x178] sm:$0xff]  ;;  %v6522_v25 = vld [vmem:[#allocation8 + $0x60] sm:$0xff]   ;;  %v391_v27 = vld [vmem:[%s7061_s12 + $0x170] sm:$0xff] }
  0xa0   : > { %5393 = vmatpush3.bf16.msra.mxu0 %v6513_v14  ;;  %v386_v14 = vld [vmem:[%s7061_s12 + $0x148] sm:$0xff]  ;;  %v389_v26 = vld [vmem:[%s7061_s12 + $0x160] sm:$0xff]  ;;  %v395_v35 = vld [vmem:[%s7061_s12 + $0x190] sm:$0xff] }
  0xa1   : > { %5394 = vmatprep.subr.bf16.mxu0 %v6514_v15  ;;  %v388_v15 = vld [vmem:[%s7061_s12 + $0x158] sm:$0xff]  ;;  %v6523_v28 = vld [vmem:[#allocation8 + $0x68] sm:$0xff]   ;;  %v393_v34 = vld [vmem:[%s7061_s12 + $0x180] sm:$0xff] }
  0xa2   : > { %v6525_v36 = vld [vmem:[#allocation8 + $0x78] sm:$0xff]   ;;  %v398_v37 = vld [vmem:[%s7061_s12 + $0x1a8] sm:$0xff]  ;;  %v433_v40 = vpack.c.bf16 %v395_v35, %v393_v34  ;;  %v397_v42 = vld [vmem:[%s7061_s12 + $0x1a0] sm:$0xff] }
  0xa3   : > { %v399_v43 = vld [vmem:[%s7061_s12 + $0x1b0] sm:$0xff]  ;;  %v401_v48 = vld [vmem:[%s7061_s12 + $0x1c0] sm:$0xff]  ;;  %v7143_v59 = vld [vmem:[#allocation8 + $0x88] sm:$0xff]  }
  0xa4   : > { %5395 = vmatpush3.bf16.msra.mxu0 %v6515_v16  ;;  %v427_v16 = vpack.c.bf16 %v383_v13, %v381_v12  ;;  %v435_v46 = vpack.c.bf16 %v399_v43, %v397_v42  ;;  %v403_v49 = vld [vmem:[%s7061_s12 + $0x1d0] sm:$0xff]  ;;  %v405_v54 = vld [vmem:[%s7061_s12 + $0x1e0] sm:$0xff]  ;;  %v7151_v61 = vld [vmem:[#allocation8 + $0x98] sm:$0xff]  }
  0xa5   : > { %5396 = vmatprep.subr.bf16.mxu0 %v6516_v17  ;;  %v430_v17 = vpack.c.bf16 %v388_v15, %v386_v14  ;;  %v437_v52 = vpack.c.bf16 %v403_v49, %v401_v48  ;;  %v407_v55 = vld [vmem:[%s7061_s12 + $0x1f0] sm:$0xff]  ;;  %v7139_v58 = vld [vmem:[#allocation8 + $0x80] sm:$0xff]   ;;  %v7167_v1 = vld [vmem:[#allocation8 + $0xb8] sm:$0xff]  }
  0xa6   : > { %6142 = vmatprep.subr.bf16.mxu1 %v7139_v58  ;;  %v7147_v60 = vld [vmem:[#allocation8 + $0x90] sm:$0xff]   ;;  %v6534_v2 = vld [vmem:[#allocation8] sm:$0xff]  }
  0xa7   : > { %6150 = vmatpush3.bf16.msra.mxu1 %v7139_v58  ;;  %v7163_v0 = vld [vmem:[#allocation8 + $0xb0] sm:$0xff]   ;;  %v7171_v3 = vld [vmem:[#allocation8 + $0xc0] sm:$0xff]  }
  0xa8   : > { %5397 = vmatpush3.bf16.msra.mxu0 %v6517_v18  ;;  %v385_v18 = vld [vmem:[%s7061_s12 + $0x140] sm:$0xff]  ;;  %6143 = vmatprep.subr.bf16.mxu1 %v7143_v59 }
  0xa9   : > { %5710 = vmatprep.subr.bf16.mxu0 %v6518_v30 }
  0xab   : > { %609 = vmatmul.mubr.bf16.vlgmr.msra.gmra.mrb[0].mxu0 %v409_v23  ;;  %v429_v23 = vpack.c.bf16 %v387_v19, %v385_v18  ;;  %6151 = vmatpush3.bf16.msra.mxu1 %v7143_v59 }
  0xac   : > { %616 = vmatprep.mubr.bf16.mxu0 %v412_v24  ;;  %5711 = vmatpush3.bf16.msra.mxu0 %v6518_v30  ;;  %v432_v24 = vpack.c.bf16 %v392_v22, %v390_v21  ;;  %v396_v30 = vld [vmem:[%s7061_s12 + $0x198] sm:$0xff] }
  0xad   : > { %5712 = vmatprep.subr.bf16.mxu0 %v6519_v32  ;;  %6144 = vmatprep.subr.bf16.mxu1 %v7147_v60 }
  0xaf   : > { %6152 = vmatpush3.bf16.msra.mxu1 %v7147_v60 }
  0xb0   : > { %5713 = vmatpush3.bf16.msra.mxu0 %v6519_v32  ;;  %6145 = vmatprep.subr.bf16.mxu1 %v7151_v61 }
  0xb1   : > { %5714 = vmatprep.subr.bf16.mxu0 %v6520_v33 }
  0xb3   : > { %617 = vmatmul.mubr.bf16.gmra.mrb[4].mxu0 %v411_v29  ;;  %v394_v29 = vld [vmem:[%s7061_s12 + $0x188] sm:$0xff]  ;;  %6153 = vmatpush3.bf16.msra.mxu1 %v7151_v61 }
  0xb4   : > { %624 = vmatprep.mubr.bf16.mxu0 %v414_v31  ;;  %5715 = vmatpush3.bf16.msra.mxu0 %v6520_v33  ;;  %v431_v31 = vpack.c.bf16 %v391_v27, %v389_v26  ;;  %v434_v32 = vpack.c.bf16 %v396_v30, %v394_v29  ;;  %v6524_v33 = vld [vmem:[#allocation8 + $0x70] sm:$0xff]  }
  0xb5   : > { %5716 = vmatprep.subr.bf16.mxu0 %v6521_v20  ;;  %v6537_v26 = vld [vmem:[#allocation8 + $0x10] sm:$0xff]  }
  0xb8   : > { %5717 = vmatpush3.bf16.msra.mxu0 %v6521_v20  ;;  %v6535_v20 = vld [vmem:[#allocation8 + $0x8] sm:$0xff]  }
  0xb9   : > { %5718 = vmatprep.subr.bf16.mxu0 %v6522_v25 }
  0xbb   : > { %625 = vmatmul.mubr.bf16.gmra.mrb[8].mxu0 %v413_v38  ;;  %v400_v38 = vld [vmem:[%s7061_s12 + $0x1b8] sm:$0xff] }
  0xbc   : > { %632 = vmatprep.mubr.bf16.mxu0 %v416_v39  ;;  %5719 = vmatpush3.bf16.msra.mxu0 %v6522_v25  ;;  %v6815_v39 = vmov 0.0   ;;  %v436_v41 = vpack.c.bf16 %v400_v38, %v398_v37 }
  0xbd   : > { %5720 = vmatprep.subr.bf16.mxu0 %v6523_v28  ;;  %769 = vst [vmem:[#allocation2] sm:$0xff] %v6815_v39  ;;  %770 = vst [vmem:[#allocation2 + $0x8] sm:$0xff] %v6815_v39 }
  0xbe   : > { %771 = vst [vmem:[#allocation2 + $0x10] sm:$0xff] %v6815_v39  ;;  %804 = vst [vmem:[#allocation2 + $0x118] sm:$0xff] %v6815_v39 }
  0xbf   : > { %805 = vst [vmem:[#allocation2 + $0x120] sm:$0xff] %v6815_v39  ;;  %806 = vst [vmem:[#allocation2 + $0x128] sm:$0xff] %v6815_v39  ;;  %v6541_v39 = vld [vmem:[#allocation8 + $0x20] sm:$0xff]  }
  0xc0   : > { %5721 = vmatpush3.bf16.msra.mxu0 %v6523_v28 }
  0xc1   : > { %5722 = vmatprep.subr.bf16.mxu0 %v6524_v33 }
  0xc3   : > { %633 = vmatmul.mubr.bf16.gmra.mrb[12].mxu0 %v415_v44  ;;  %v402_v44 = vld [vmem:[%s7061_s12 + $0x1c8] sm:$0xff] }
  0xc4   : > { %640 = vmatprep.mubr.bf16.mxu0 %v418_v45  ;;  %5723 = vmatpush3.bf16.msra.mxu0 %v6524_v33  ;;  %v404_v45 = vld [vmem:[%s7061_s12 + $0x1d8] sm:$0xff] }
  0xc5   : > { %5724 = vmatprep.subr.bf16.mxu0 %v6525_v36  ;;  %v438_v47 = vpack.c.bf16 %v404_v45, %v402_v44  ;;  %v6539_v33 = vld [vmem:[#allocation8 + $0x18] sm:$0xff]  }
  0xc8   : > { %5725 = vmatpush3.bf16.msra.mxu0 %v6525_v36 }
  0xc9   : > { %5758 = vmatprep.subr.bf16.mxu0 %v6534_v2 }
  0xcb   : > { %641 = vmatmul.mubr.bf16.gmra.mrb[16].mxu0 %v417_v50  ;;  %v406_v50 = vld [vmem:[%s7061_s12 + $0x1e8] sm:$0xff] }
  0xcc   : > { %648 = vmatprep.mubr.bf16.mxu0 %v420_v51  ;;  %v408_v51 = vld [vmem:[%s7061_s12 + $0x1f8] sm:$0xff] }
  0xcd   : > { %v440_v53 = vpack.c.bf16 %v408_v51, %v406_v50 }
  0xd3   : > { %649 = vmatmul.mubr.bf16.gmra.mrb[20].mxu0 %v419_v56  ;;  %v439_v56 = vpack.c.bf16 %v407_v55, %v405_v54 }
  0xd4   : > { %656 = vmatprep.mubr.bf16.mxu0 %v422_v57  ;;  %v6816_v57 = vmov 0.0|0.0  }
  0xdb   : > { %657 = vmatmul.mubr.bf16.gmra.mrb[24].mxu0 %v421_v62  ;;  %v7155_v62 = vld [vmem:[#allocation8 + $0xa0] sm:$0xff]  }
  0xdc   : > { %664 = vmatprep.mubr.bf16.mxu0 %v424_v63  ;;  %6146 = vmatprep.subr.bf16.mxu1 %v7155_v62  ;;  %v7159_v63 = vld [vmem:[#allocation8 + $0xa8] sm:$0xff]  }
  0xdd   : > { %6154 = vmatpush3.bf16.msra.mxu1 %v7155_v62 }
  0xde   : > { %6147 = vmatprep.subr.bf16.mxu1 %v7159_v63 }
  0xe1   : > { %6155 = vmatpush3.bf16.msra.mxu1 %v7159_v63 }
  0xe2   : > { %6148 = vmatprep.subr.bf16.mxu1 %v7163_v0 }
  0xe3   : > { %665 = vmatmul.mubr.bf16.gmra.mrb[28].mxu0 %v423_v4 }
  0xe4   : > { %672 = vmatprep.mubr.bf16.mxu0 %v426_v5  ;;  %v7177_v5 = vld [vmem:[%s8247_s2] ss:$0 sm:$0xff] }
  0xe5   : > { %6156 = vmatpush3.bf16.msra.mxu1 %v7163_v0 }
  0xe6   : > { %6149 = vmatprep.subr.bf16.mxu1 %v7167_v1 }
  0xe9   : > { %6157 = vmatpush3.bf16.msra.mxu1 %v7167_v1 }
  0xea   : > { %5854 = vmatprep.subr.bf16.mxu1 %v7171_v3 }
  0xeb   : > { %673 = vmatmul.mubr.bf16.gmra.mrb[32].mxu0 %v425_v10 }
  0xec   : > { %680 = vmatprep.mubr.bf16.mxu0 %v428_v11 }
  0xf3   : > { %681 = vmatmul.mubr.bf16.gmra.mrb[36].mxu0 %v427_v16 }
  0xf4   : > { %688 = vmatprep.mubr.bf16.mxu0 %v430_v17 }
  0xfb   : > { %689 = vmatmul.mubr.bf16.gmra.mrb[40].mxu0 %v429_v23 }
  0xfc   : > { %696 = vmatprep.mubr.bf16.mxu0 %v432_v24 }
 0x103   : > { %697 = vmatmul.mubr.bf16.gmra.mrb[44].mxu0 %v431_v31 }
 0x104   : > { %704 = vmatprep.mubr.bf16.mxu0 %v434_v32 }
 0x10b   : > { %705 = vmatmul.mubr.bf16.gmra.mrb[48].mxu0 %v433_v40 }
 0x10c   : > { %712 = vmatprep.mubr.bf16.mxu0 %v436_v41 }
 0x113   : > { %713 = vmatmul.mubr.bf16.gmra.mrb[52].mxu0 %v435_v46  ;;  %v6543_v46 = vld [vmem:[#allocation8 + $0x28] sm:$0xff]  }
 0x114   : > { %720 = vmatprep.mubr.bf16.mxu0 %v438_v47 }
 0x11b   : > { %721 = vmatmul.mubr.bf16.gmra.mrb[56].mxu0 %v437_v52  ;;  %v6545_v52 = vld [vmem:[#allocation8 + $0x30] sm:$0xff]  }
 0x11c   : > { %728 = vmatprep.mubr.bf16.mxu0 %v440_v53 }
 0x123   : > { %729 = vmatmul.mubr.bf16.gmra.mrb[60].mxu0 %v439_v56 }
 0x124   : > { %5726 = vmatprep.mubr.bf16.mxu0 %v6816_v57 }
 0x17e   : > { %v5398_v4 = vpop.f32.mrb[0].mxu0 }
 0x17f   : > { %v5399_v6 = vpop.f32.mrb[1].mxu0 }
 0x180   : > { %v5400_v7 = vadd.f32 %v5399_v6, %v5398_v4  ;;  %v5401_v8 = vpop.f32.mrb[2].mxu0  ;;  %v6547_v4 = vld [vmem:[#allocation8 + $0x38] sm:$0xff]  }
 0x181   : > { %v5402_v9 = vpop.f32.mrb[3].mxu0 }
 0x182   : > { %v611_v10 = vadd.f32 %v5400_v7, %v7177_v5  ;;  %v5403_v11 = vadd.f32 %v5402_v9, %v5401_v8 }
 0x184   : > { %v737_v12 = vmax.f32 %v611_v10, 0.0  ;;  %v614_v13 = vadd.f32 %v5403_v11, %v7177_v5 }
 0x186   : > { %807 = vst [vmem:[#allocation2 + $0x18] sm:$0xff] %v737_v12  ;;  %v738_v14 = vmax.f32 %v614_v13, 0.0  ;;  %v5404_v15 = vpop.f32.mrb[4].mxu0 }
 0x187   : > { %v5405_v16 = vpop.f32.mrb[5].mxu0 }
 0x188   : > { %808 = vst [vmem:[#allocation2 + $0x20] sm:$0xff] %v738_v14  ;;  %v5406_v17 = vadd.f32 %v5405_v16, %v5404_v15  ;;  %v5407_v18 = vpop.f32.mrb[6].mxu0  ;;  %v1417_v19 = vpack.c.bf16 %v738_v14, %v737_v12 }
 0x189   : > { %v5408_v21 = vpop.f32.mrb[7].mxu0 }
 0x18a   : > { %v619_v22 = vadd.f32 %v5406_v17, %v7177_v5  ;;  %v5409_v23 = vadd.f32 %v5408_v21, %v5407_v18  ;;  %5727 = vmatmul.mubr.bf16.vlgmr.msra.gmra.mrb[64].mxu0 %v1417_v19 }
 0x18b   : > { %5759 = vmatpush3.bf16.msra.mxu0 %v6534_v2 }
 0x18c   : > { %v739_v24 = vmax.f32 %v619_v22, 0.0  ;;  %v622_v25 = vadd.f32 %v5409_v23, %v7177_v5  ;;  %5760 = vmatprep.subr.bf16.mxu0 %v6535_v20 }
 0x18e   : > { %809 = vst [vmem:[#allocation2 + $0x28] sm:$0xff] %v739_v24  ;;  %v740_v27 = vmax.f32 %v622_v25, 0.0  ;;  %v5410_v28 = vpop.f32.mrb[8].mxu0 }
 0x18f   : > { %v5411_v29 = vpop.f32.mrb[9].mxu0  ;;  %5761 = vmatpush3.bf16.msra.mxu0 %v6535_v20 }
 0x190   : > { %810 = vst [vmem:[#allocation2 + $0x30] sm:$0xff] %v740_v27  ;;  %v5412_v30 = vadd.f32 %v5411_v29, %v5410_v28  ;;  %v5413_v31 = vpop.f32.mrb[10].mxu0  ;;  %v1418_v32 = vpack.c.bf16 %v740_v27, %v739_v24  ;;  %5762 = vmatprep.subr.bf16.mxu0 %v6537_v26 }
 0x191   : > { %v5414_v34 = vpop.f32.mrb[11].mxu0 }
 0x192   : > { %v627_v35 = vadd.f32 %v5412_v30, %v7177_v5  ;;  %v5415_v36 = vadd.f32 %v5414_v34, %v5413_v31  ;;  %5730 = vmatprep.mubr.bf16.mxu0 %v1418_v32 }
 0x193   : > { %5763 = vmatpush3.bf16.msra.mxu0 %v6537_v26 }
 0x194   : > { %v741_v37 = vmax.f32 %v627_v35, 0.0  ;;  %v630_v38 = vadd.f32 %v5415_v36, %v7177_v5  ;;  %5764 = vmatprep.subr.bf16.mxu0 %v6539_v33 }
 0x196   : > { %811 = vst [vmem:[#allocation2 + $0x38] sm:$0xff] %v741_v37  ;;  %v742_v40 = vmax.f32 %v630_v38, 0.0  ;;  %v5416_v41 = vpop.f32.mrb[12].mxu0 }
 0x197   : > { %v5417_v42 = vpop.f32.mrb[13].mxu0  ;;  %5765 = vmatpush3.bf16.msra.mxu0 %v6539_v33 }
 0x198   : > { %812 = vst [vmem:[#allocation2 + $0x40] sm:$0xff] %v742_v40  ;;  %v5418_v43 = vadd.f32 %v5417_v42, %v5416_v41  ;;  %v5419_v44 = vpop.f32.mrb[14].mxu0  ;;  %v1419_v45 = vpack.c.bf16 %v742_v40, %v741_v37  ;;  %5766 = vmatprep.subr.bf16.mxu0 %v6541_v39  ;;  %v839_v42 = vlaneseq }
 0x199   : > { %v5420_v47 = vpop.f32.mrb[15].mxu0 }
 0x19a   : > { %v635_v48 = vadd.f32 %v5418_v43, %v7177_v5  ;;  %v5421_v49 = vadd.f32 %v5420_v47, %v5419_v44  ;;  %5731 = vmatmul.mubr.bf16.gmra.mrb[68].mxu0 %v1419_v45  ;;  %v7196_v47 = vshrl.u32 %v839_v42, 7 }
 0x19b   : > { %5767 = vmatpush3.bf16.msra.mxu0 %v6541_v39 }
 0x19c   : > { %v743_v50 = vmax.f32 %v635_v48, 0.0  ;;  %v638_v51 = vadd.f32 %v5421_v49, %v7177_v5  ;;  %5768 = vmatprep.subr.bf16.mxu0 %v6543_v46  ;;  %8316 = vst [vmem:[#allocation17_spill] sm:$0xff] %v7196_v47 }
 0x19e   : > { %813 = vst [vmem:[#allocation2 + $0x48] sm:$0xff] %v743_v50  ;;  %v744_v53 = vmax.f32 %v638_v51, 0.0  ;;  %v5422_v54 = vpop.f32.mrb[16].mxu0 }
 0x19f   : > { %v5423_v55 = vpop.f32.mrb[17].mxu0  ;;  %5769 = vmatpush3.bf16.msra.mxu0 %v6543_v46 }
 0x1a0   : > { %814 = vst [vmem:[#allocation2 + $0x50] sm:$0xff] %v744_v53  ;;  %v5424_v56 = vadd.f32 %v5423_v55, %v5422_v54  ;;  %v5425_v57 = vpop.f32.mrb[18].mxu0  ;;  %v1420_v2 = vpack.c.bf16 %v744_v53, %v743_v50  ;;  %5770 = vmatprep.subr.bf16.mxu0 %v6545_v52  ;;  %v857_v55 = vadd.s32 136, %v7196_v47 }
 0x1a1   : > { %v5426_v6 = vpop.f32.mrb[19].mxu0 }
 0x1a2   : > { %v643_v7 = vadd.f32 %v5424_v56, %v7177_v5  ;;  %v5427_v8 = vadd.f32 %v5426_v6, %v5425_v57  ;;  %5734 = vmatprep.mubr.bf16.mxu0 %v1420_v2  ;;  %v995_v6 = vand.u32 15, %v857_v55 }
 0x1a3   : > { %5771 = vmatpush3.bf16.msra.mxu0 %v6545_v52 }
 0x1a4   : > { %v745_v9 = vmax.f32 %v643_v7, 0.0  ;;  %v646_v10 = vadd.f32 %v5427_v8, %v7177_v5  ;;  %5772 = vmatprep.subr.bf16.mxu0 %v6547_v4  ;;  %vm1916_vm0 = vcmp.le.s32.totalorder %v995_v6, 14  ;;  %v6542_v6 = vld [vmem:[#allocation8 + $0xd8] sm:$0xff]  }
 0x1a5   : > { %vm7205_vm2 = vmpackc.low %vm1916_vm0, %vm6817_vm1 }
 0x1a6   : > { %815 = vst [vmem:[#allocation2 + $0x58] sm:$0xff] %v745_v9  ;;  %v746_v11 = vmax.f32 %v646_v10, 0.0  ;;  %v5428_v12 = vpop.f32.mrb[20].mxu0 }
 0x1a7   : > { %v5429_v13 = vpop.f32.mrb[21].mxu0  ;;  %5773 = vmatpush3.bf16.msra.mxu0 %v6547_v4 }
 0x1a8   : > { %816 = vst [vmem:[#allocation2 + $0x60] sm:$0xff] %v746_v11  ;;  %v5430_v14 = vadd.f32 %v5429_v13, %v5428_v12  ;;  %v5431_v15 = vpop.f32.mrb[22].mxu0  ;;  %v1421_v16 = vpack.c.bf16 %v746_v11, %v745_v9  ;;  %5806 = vmatprep.subr.bf16.mxu0 %v7139_v58 }
 0x1a9   : > { %v5432_v17 = vpop.f32.mrb[23].mxu0 }
 0x1aa   : > { %v651_v18 = vadd.f32 %v5430_v14, %v7177_v5  ;;  %v5433_v19 = vadd.f32 %v5432_v17, %v5431_v15  ;;  %5735 = vmatmul.mubr.bf16.gmra.mrb[72].mxu0 %v1421_v16  ;;  %v859_v14 = vadd.s32 152, %v7196_v47 }
 0x1ac   : > { %v747_v20 = vmax.f32 %v651_v18, 0.0  ;;  %v654_v21 = vadd.f32 %v5433_v19, %v7177_v5  ;;  %v8317_v19 = vmov 0 }
 0x1ad   : > { %v8318_v19 = vsel %vm7205_vm2, 4294967295, %v8317_v19 }
 0x1ae   : > { %817 = vst [vmem:[#allocation2 + $0x68] sm:$0xff] %v747_v20  ;;  %v748_v22 = vmax.f32 %v654_v21, 0.0  ;;  %v5434_v23 = vpop.f32.mrb[24].mxu0  ;;  %8319 = vst [vmem:[#allocation18_spill] sm:$0xff] %v8318_v19 }
 0x1af   : > { %v5435_v24 = vpop.f32.mrb[25].mxu0 }
 0x1b0   : > { %818 = vst [vmem:[#allocation2 + $0x70] sm:$0xff] %v748_v22  ;;  %v5436_v25 = vadd.f32 %v5435_v24, %v5434_v23  ;;  %v5437_v26 = vpop.f32.mrb[26].mxu0  ;;  %v1422_v27 = vpack.c.bf16 %v748_v22, %v747_v20  ;;  %v1009_v23 = vand.u32 15, %v859_v14  ;;  %v865_v14 = vadd.s32 200, %v7196_v47 }
 0x1b1   : > { %v5438_v28 = vpop.f32.mrb[27].mxu0 }
 0x1b2   : > { %v659_v29 = vadd.f32 %v5436_v25, %v7177_v5  ;;  %v5439_v30 = vadd.f32 %v5438_v28, %v5437_v26  ;;  %5738 = vmatprep.mubr.bf16.mxu0 %v1422_v27  ;;  %vm1918_vm3 = vcmp.le.s32.totalorder %v1009_v23, 14 }
 0x1b3   : > { %vm7215_vm4 = vmpackc.low %vm1918_vm3, %vm6817_vm1 }
 0x1b4   : > { %v749_v31 = vmax.f32 %v659_v29, 0.0  ;;  %v662_v32 = vadd.f32 %v5439_v30, %v7177_v5 }
 0x1b6   : > { %819 = vst [vmem:[#allocation2 + $0x78] sm:$0xff] %v749_v31  ;;  %v750_v33 = vmax.f32 %v662_v32, 0.0  ;;  %v5440_v34 = vpop.f32.mrb[28].mxu0 }
 0x1b7   : > { %v5441_v35 = vpop.f32.mrb[29].mxu0 }
 0x1b8   : > { %820 = vst [vmem:[#allocation2 + $0x80] sm:$0xff] %v750_v33  ;;  %v5442_v36 = vadd.f32 %v5441_v35, %v5440_v34  ;;  %v5443_v37 = vpop.f32.mrb[30].mxu0  ;;  %v1423_v38 = vpack.c.bf16 %v750_v33, %v749_v31  ;;  %v861_v31 = vadd.s32 168, %v7196_v47 }
 0x1b9   : > { %v5444_v39 = vpop.f32.mrb[31].mxu0 }
 0x1ba   : > { %v667_v40 = vadd.f32 %v5442_v36, %v7177_v5  ;;  %v5445_v41 = vadd.f32 %v5444_v39, %v5443_v37  ;;  %5739 = vmatmul.mubr.bf16.gmra.mrb[76].mxu0 %v1423_v38  ;;  %v8320_v36 = vmov 0 }
 0x1bb   : > { %v8321_v36 = vsel %vm7215_vm4, 4294967295, %v8320_v36 }
 0x1bc   : > { %v751_v43 = vmax.f32 %v667_v40, 0.0  ;;  %v670_v44 = vadd.f32 %v5445_v41, %v7177_v5  ;;  %8322 = vst [vmem:[#allocation19_spill] sm:$0xff] %v8321_v36  ;;  %v1023_v40 = vand.u32 15, %v861_v31  ;;  %v6538_v41 = vld [vmem:[#allocation8 + $0xc8] sm:$0xff]  }
 0x1be   : > { %821 = vst [vmem:[#allocation2 + $0x88] sm:$0xff] %v751_v43  ;;  %v752_v45 = vmax.f32 %v670_v44, 0.0  ;;  %v5446_v46 = vpop.f32.mrb[32].mxu0  ;;  %vm1920_vm5 = vcmp.le.s32.totalorder %v1023_v40, 14 }
 0x1bf   : > { %v5447_v48 = vpop.f32.mrb[33].mxu0  ;;  %vm7226_vm6 = vmpackc.low %vm1920_vm5, %vm6817_vm1 }
 0x1c0   : > { %822 = vst [vmem:[#allocation2 + $0x90] sm:$0xff] %v752_v45  ;;  %v5448_v49 = vadd.f32 %v5447_v48, %v5446_v46  ;;  %v5449_v50 = vpop.f32.mrb[34].mxu0  ;;  %v1424_v51 = vpack.c.bf16 %v752_v45, %v751_v43 }
 0x1c1   : > { %v5450_v52 = vpop.f32.mrb[35].mxu0 }
 0x1c2   : > { %v675_v53 = vadd.f32 %v5448_v49, %v7177_v5  ;;  %v5451_v54 = vadd.f32 %v5450_v52, %v5449_v50  ;;  %5742 = vmatprep.mubr.bf16.mxu0 %v1424_v51  ;;  %v863_v50 = vadd.s32 184, %v7196_v47  ;;  %v6540_v51 = vld [vmem:[#allocation8 + $0xd0] sm:$0xff]  }
 0x1c4   : > { %v753_v56 = vmax.f32 %v675_v53, 0.0  ;;  %v678_v57 = vadd.f32 %v5451_v54, %v7177_v5 }
 0x1c6   : > { %823 = vst [vmem:[#allocation2 + $0x98] sm:$0xff] %v753_v56  ;;  %v754_v2 = vmax.f32 %v678_v57, 0.0  ;;  %v5452_v4 = vpop.f32.mrb[36].mxu0 }
 0x1c7   : > { %v5453_v7 = vpop.f32.mrb[37].mxu0  ;;  %v1883_v17 = vld [vmem:[#allocation2 + $0x89] sm:$0xff] }
 0x1c8   : > { %824 = vst [vmem:[#allocation2 + $0xa0] sm:$0xff] %v754_v2  ;;  %v5454_v8 = vadd.f32 %v5453_v7, %v5452_v4  ;;  %v5455_v9 = vpop.f32.mrb[38].mxu0  ;;  %v1425_v10 = vpack.c.bf16 %v754_v2, %v753_v56  ;;  %v8323_v56 = vmov 0  ;;  %v1037_v4 = vand.u32 15, %v863_v50 }
 0x1c9   : > { %v5456_v11 = vpop.f32.mrb[39].mxu0  ;;  %v8324_v56 = vsel %vm7226_vm6, 4294967295, %v8323_v56 }
 0x1ca   : > { %v683_v12 = vadd.f32 %v5454_v8, %v7177_v5  ;;  %v5457_v13 = vadd.f32 %v5456_v11, %v5455_v9  ;;  %5743 = vmatmul.mubr.bf16.gmra.mrb[80].mxu0 %v1425_v10  ;;  %8325 = vst [vmem:[#allocation20_spill] sm:$0xff] %v8324_v56  ;;  %vm1922_vm7 = vcmp.le.s32.totalorder %v1037_v4, 14 }
 0x1cb   : > { %vm7236_vm8 = vmpackc.low %vm1922_vm7, %vm6817_vm1 }
 0x1cc   : > { %v755_v15 = vmax.f32 %v683_v12, 0.0  ;;  %v686_v16 = vadd.f32 %v5457_v13, %v7177_v5 }
 0x1cd   : > { %v1884_v18 = vld [vmem:[#allocation2 + $0x91] sm:$0xff] }
 0x1ce   : > { %825 = vst [vmem:[#allocation2 + $0xa8] sm:$0xff] %v755_v15  ;;  %v756_v20 = vmax.f32 %v686_v16, 0.0  ;;  %v5458_v21 = vpop.f32.mrb[40].mxu0  ;;  %v5092_v22 = vpack.c.bf16 %v1884_v18, %v1883_v17 }
 0x1cf   : > { %v5459_v24 = vpop.f32.mrb[41].mxu0  ;;  %v1885_v34 = vld [vmem:[#allocation2 + $0x99] sm:$0xff] }
 0x1d0   : > { %826 = vst [vmem:[#allocation2 + $0xb0] sm:$0xff] %v756_v20  ;;  %v5460_v25 = vadd.f32 %v5459_v24, %v5458_v21  ;;  %v5461_v26 = vpop.f32.mrb[42].mxu0  ;;  %5838 = vmatprep.mubr.msk.bf16.mxu1 %vm7205_vm2, %v5092_v22  ;;  %v1426_v27 = vpack.c.bf16 %v756_v20, %v755_v15  ;;  %v6544_v15 = vld [vmem:[#allocation8 + $0xe0] sm:$0xff]  }
 0x1d1   : > { %v5462_v28 = vpop.f32.mrb[43].mxu0  ;;  %v6610_v21 = vld [vmem:[#allocation9 + $0x64] ss:$8 sps:$4 sm:$0xff]  }
 0x1d2   : > { %v691_v29 = vadd.f32 %v5460_v25, %v7177_v5  ;;  %v5463_v30 = vadd.f32 %v5462_v28, %v5461_v26  ;;  %5746 = vmatprep.mubr.bf16.mxu0 %v1426_v27  ;;  %v1051_v25 = vand.u32 15, %v865_v14  ;;  %v6546_v26 = vld [vmem:[#allocation8 + $0xe8] sm:$0xff]   ;;  %v844_v14 = vadd.s32 32, %v7196_v47 }
 0x1d4   : > { %v757_v32 = vmax.f32 %v691_v29, 0.0  ;;  %v694_v33 = vadd.f32 %v5463_v30, %v7177_v5  ;;  %vm1924_vm9 = vcmp.le.s32.totalorder %v1051_v25, 14  ;;  %v8334_v25 = vmov 0 }
 0x1d5   : > { %v1886_v35 = vld [vmem:[#allocation2 + $0xa1] sm:$0xff]  ;;  %vm7246_vm10 = vmpackc.low %vm1924_vm9, %vm6817_vm1 }
 0x1d6   : > { %827 = vst [vmem:[#allocation2 + $0xb8] sm:$0xff] %v757_v32  ;;  %v758_v37 = vmax.f32 %v694_v33, 0.0  ;;  %v5464_v38 = vpop.f32.mrb[44].mxu0  ;;  %v5095_v39 = vpack.c.bf16 %v1886_v35, %v1885_v34  ;;  %v867_v34 = vadd.s32 216, %v7196_v47  ;;  %v6548_v35 = vld [vmem:[#allocation8 + $0xf0] sm:$0xff]  }
 0x1d7   : > { %v5465_v42 = vpop.f32.mrb[45].mxu0  ;;  %v1887_v54 = vld [vmem:[#allocation2 + $0xa9] sm:$0xff] }
 0x1d8   : > { %828 = vst [vmem:[#allocation2 + $0xc0] sm:$0xff] %v758_v37  ;;  %v5466_v43 = vadd.f32 %v5465_v42, %v5464_v38  ;;  %v5467_v44 = vpop.f32.mrb[46].mxu0  ;;  %5839 = vmatmul.mubr.msk.bf16.vlgmr.msra.gmra.mrb[0].mxu1 %vm7215_vm4, %v5095_v39  ;;  %v1427_v45 = vpack.c.bf16 %v758_v37, %v757_v32 }
 0x1d9   : > { %v5468_v46 = vpop.f32.mrb[47].mxu0  ;;  %5855 = vmatpush3.bf16.msra.mxu1 %v7171_v3 }
 0x1da   : > { %v699_v48 = vadd.f32 %v5466_v43, %v7177_v5  ;;  %v5469_v49 = vadd.f32 %v5468_v46, %v5467_v44  ;;  %5747 = vmatmul.mubr.bf16.gmra.mrb[84].mxu0 %v1427_v45  ;;  %5856 = vmatprep.subr.bf16.mxu1 %v6538_v41  ;;  %v1065_v45 = vand.u32 15, %v867_v34  ;;  %v6549_v46 = vld [vmem:[#allocation8 + $0xf8] sm:$0xff]   ;;  %v8336_v34 = vmov 0 }
 0x1dc   : > { %v759_v52 = vmax.f32 %v699_v48, 0.0  ;;  %v702_v53 = vadd.f32 %v5469_v49, %v7177_v5  ;;  %vm1926_vm11 = vcmp.le.s32.totalorder %v1065_v45, 14  ;;  %v1261_v45 = vld [vmem:[#allocation2 + $0x2f] sm:$0xff] }
 0x1dd   : > { %v1888_v55 = vld [vmem:[#allocation2 + $0xb1] sm:$0xff]  ;;  %5857 = vmatpush3.bf16.msra.mxu1 %v6538_v41  ;;  %v8328_v41 = vmov 0  ;;  %vm7260_vm12 = vmpackc.low %vm1926_vm11, %vm6817_vm1 }
 0x1de   : > { %829 = vst [vmem:[#allocation2 + $0xc8] sm:$0xff] %v759_v52  ;;  %v760_v3 = vmax.f32 %v702_v53, 0.0  ;;  %v5470_v57 = vpop.f32.mrb[48].mxu0  ;;  %v5098_v2 = vpack.c.bf16 %v1888_v55, %v1887_v54  ;;  %5858 = vmatprep.subr.bf16.mxu1 %v6540_v51  ;;  %v8329_v41 = vsel %vm7246_vm10, 4294967295, %v8328_v41  ;;  %v869_v53 = vadd.s32 232, %v7196_v47 }
 0x1df   : > { %v5471_v7 = vpop.f32.mrb[49].mxu0  ;;  %v1889_v18 = vld [vmem:[#allocation2 + $0xb9] sm:$0xff]  ;;  %v876_v54 = vand.u32 15, %v7196_v47 }
 0x1e0   : > { %830 = vst [vmem:[#allocation2 + $0xd0] sm:$0xff] %v760_v3  ;;  %v5472_v8 = vadd.f32 %v5471_v7, %v5470_v57  ;;  %v5473_v9 = vpop.f32.mrb[50].mxu0  ;;  %5842 = vmatprep.mubr.msk.bf16.mxu1 %vm7226_vm6, %v5098_v2  ;;  %v1428_v10 = vpack.c.bf16 %v760_v3, %v759_v52  ;;  %v7255_v57 = vld [vmem:[#allocation8 + $0x100] sm:$0xff]  }
 0x1e1   : > { %v5474_v11 = vpop.f32.mrb[51].mxu0  ;;  %5859 = vmatpush3.bf16.msra.mxu1 %v6540_v51  ;;  %v1257_v7 = vld [vmem:[#allocation2 + $0xf] sm:$0xff]  ;;  %vm7264_vm13 = vcmp.ge.s32.totalorder %v876_v54, 1 }
 0x1e2   : > { %v707_v12 = vadd.f32 %v5472_v8, %v7177_v5  ;;  %v5475_v13 = vadd.f32 %v5474_v11, %v5473_v9  ;;  %5750 = vmatprep.mubr.bf16.mxu0 %v1428_v10  ;;  %5860 = vmatprep.subr.bf16.mxu1 %v6542_v6  ;;  %v842_v8 = vadd.s32 16, %v7196_v47  ;;  %v8330_v11 = vmov 0  ;;  %vm7275_vm14 = vmpackc.low %vm6817_vm1, %vm7264_vm13 }
 0x1e3   : > { %v8331_v11 = vsel %vm7260_vm12, 4294967295, %v8330_v11  ;;  %v8335_v25 = vsel %vm7275_vm14, 4294967295, %v8334_v25 }
 0x1e4   : > { %v761_v16 = vmax.f32 %v707_v12, 0.0  ;;  %v710_v17 = vadd.f32 %v5475_v13, %v7177_v5  ;;  %v1079_v12 = vand.u32 15, %v869_v53  ;;  %v1264_v13 = vld [vmem:[#allocation2 + $0x47] sm:$0xff] }
 0x1e5   : > { %v1890_v20 = vld [vmem:[#allocation2 + $0xc1] sm:$0xff]  ;;  %5861 = vmatpush3.bf16.msra.mxu1 %v6542_v6 }
 0x1e6   : > { %831 = vst [vmem:[#allocation2 + $0xd8] sm:$0xff] %v761_v16  ;;  %v762_v22 = vmax.f32 %v710_v17, 0.0  ;;  %v5476_v23 = vpop.f32.mrb[52].mxu0  ;;  %v5101_v24 = vpack.c.bf16 %v1890_v20, %v1889_v18  ;;  %5862 = vmatprep.subr.bf16.mxu1 %v6544_v15  ;;  %v1256_v6 = vld [vmem:[#allocation2 + $0x7] sm:$0xff]  ;;  %vm1928_vm15 = vcmp.le.s32.totalorder %v1079_v12, 14 }
 0x1e7   : > { %v5477_v27 = vpop.f32.mrb[53].mxu0  ;;  %v1891_v39 = vld [vmem:[#allocation2 + $0xc9] sm:$0xff]  ;;  %v5012_v20 = vpack.c.bf16 %v1257_v7, %v1256_v6  ;;  %vm7285_vm0 = vmpackc.low %vm1928_vm15, %vm6817_vm1  ;;  %v2242_v6 = vld [vmem:[#allocation2 + $0x3f] sm:$0xff]  ;;  %v852_v7 = vadd.s32 96, %v7196_v47 }
 0x1e8   : > { %832 = vst [vmem:[#allocation2 + $0xe0] sm:$0xff] %v762_v22  ;;  %v5478_v28 = vadd.f32 %v5477_v27, %v5476_v23  ;;  %v5479_v29 = vpop.f32.mrb[54].mxu0  ;;  %5843 = vmatmul.mubr.msk.bf16.gmra.mrb[4].mxu1 %vm7236_vm8, %v5101_v24  ;;  %v1429_v30 = vpack.c.bf16 %v762_v22, %v761_v16  ;;  %v8337_v34 = vsel %vm7285_vm0, 4294967295, %v8336_v34  ;;  %v2903_v19 = vld [vmem:[#allocation2 + $0xc9] sm:$0xff] }
 0x1e9   : > { %v5480_v31 = vpop.f32.mrb[55].mxu0  ;;  %5863 = vmatpush3.bf16.msra.mxu1 %v6544_v15 }
 0x1ea   : > { %v715_v32 = vadd.f32 %v5478_v28, %v7177_v5  ;;  %v5481_v33 = vadd.f32 %v5480_v31, %v5479_v29  ;;  %5751 = vmatmul.mubr.bf16.gmra.mrb[88].mxu0 %v1429_v30  ;;  %5864 = vmatprep.subr.bf16.mxu1 %v6546_v26  ;;  %v871_v28 = vadd.s32 248, %v7196_v47  ;;  %v904_v29 = vand.u32 15, %v844_v14 }
 0x1eb   : > { %v8346_v14 = vmov 0 }
 0x1ec   : > { %v763_v37 = vmax.f32 %v715_v32, 0.0  ;;  %v718_v38 = vadd.f32 %v5481_v33, %v7177_v5  ;;  %vm1292_vm5 = vcmp.ge.s32.totalorder %v904_v29, 1 }
 0x1ed   : > { %v1892_v40 = vld [vmem:[#allocation2 + $0xd1] sm:$0xff]  ;;  %5865 = vmatpush3.bf16.msra.mxu1 %v6546_v26  ;;  %v890_v26 = vand.u32 15, %v842_v8  ;;  %vm7299_vm9 = vmpackc.low %vm6817_vm1, %vm1292_vm5 }
 0x1ee   : > { %833 = vst [vmem:[#allocation2 + $0xe8] sm:$0xff] %v763_v37  ;;  %v764_v42 = vmax.f32 %v718_v38, 0.0  ;;  %v5482_v43 = vpop.f32.mrb[56].mxu0  ;;  %v5104_v44 = vpack.c.bf16 %v1892_v40, %v1891_v39  ;;  %5866 = vmatprep.subr.bf16.mxu1 %v6548_v35  ;;  %v1093_v39 = vand.u32 15, %v871_v28  ;;  %v2238_v40 = vld [vmem:[#allocation2 + $0x1f] sm:$0xff]  ;;  %v8350_v28 = vmov 0 }
 0x1ef   : > { %v5483_v48 = vpop.f32.mrb[57].mxu0  ;;  %v1893_v9 = vld [vmem:[#allocation2 + $0xd9] sm:$0xff]  ;;  %vm1290_vm3 = vcmp.ge.s32.totalorder %v890_v26, 1  ;;  %v8348_v26 = vmov 0 }
 0x1f0   : > { %834 = vst [vmem:[#allocation2 + $0xf0] sm:$0xff] %v764_v42  ;;  %v5484_v49 = vadd.f32 %v5483_v48, %v5482_v43  ;;  %v5485_v50 = vpop.f32.mrb[58].mxu0  ;;  %5846 = vmatprep.mubr.msk.bf16.mxu1 %vm7246_vm10, %v5104_v44  ;;  %v1430_v51 = vpack.c.bf16 %v764_v42, %v763_v37  ;;  %v848_v42 = vadd.s32 64, %v7196_v47  ;;  %vm7292_vm7 = vmpackc.low %vm6817_vm1, %vm1290_vm3  ;;  %vm1930_vm11 = vcmp.le.s32.totalorder %v1093_v39, 14 }
 0x1f1   : > { %v5486_v52 = vpop.f32.mrb[59].mxu0  ;;  %5867 = vmatpush3.bf16.msra.mxu1 %v6548_v35  ;;  %v846_v35 = vadd.s32 48, %v7196_v47  ;;  %vm7314_vm13 = vmpackc.low %vm1930_vm11, %vm6817_vm1  ;;  %v8352_v39 = vmov 0 }
 0x1f2   : > { %v723_v55 = vadd.f32 %v5484_v49, %v7177_v5  ;;  %v5487_v3 = vadd.f32 %v5486_v52, %v5485_v50  ;;  %5754 = vmatprep.mubr.bf16.mxu0 %v1430_v51  ;;  %5868 = vmatprep.subr.bf16.mxu1 %v6549_v46  ;;  %v1260_v49 = vld [vmem:[#allocation2 + $0x27] sm:$0xff]  ;;  %v8340_v50 = vmov 0  ;;  %v932_v54 = vand.u32 15, %v848_v42 }
 0x1f3   : > { %v8341_v50 = vsel %vm7299_vm9, 4294967295, %v8340_v50  ;;  %v918_v51 = vand.u32 15, %v846_v35  ;;  %v7305_v53 = vpack.c.bf16 %v1261_v45, %v1260_v49  ;;  %v1273_v35 = vld [vmem:[#allocation2 + $0x8f] sm:$0xff]  ;;  %v8354_v42 = vmov 0 }
 0x1f4   : > { %v765_v2 = vmax.f32 %v723_v55, 0.0  ;;  %v726_v4 = vadd.f32 %v5487_v3, %v7177_v5  ;;  %v8342_v55 = vmov 0  ;;  %v850_v3 = vadd.s32 80, %v7196_v47  ;;  %v6554_v45 = vld [vmem:[#allocation8 + $0x120] sm:$0xff]  }
 0x1f5   : > { %v1894_v10 = vld [vmem:[#allocation2 + $0xe1] sm:$0xff]  ;;  %5869 = vmatpush3.bf16.msra.mxu1 %v6549_v46  ;;  %v8338_v46 = vmov 0  ;;  %v8343_v55 = vsel %vm7314_vm13, 4294967295, %v8342_v55  ;;  %vm1294_vm15 = vcmp.ge.s32.totalorder %v918_v51, 1  ;;  %vm1296_vm3 = vcmp.ge.s32.totalorder %v932_v54, 1  ;;  %v1277_v51 = vld [vmem:[#allocation2 + $0xaf] sm:$0xff] }
 0x1f6   : > { %835 = vst [vmem:[#allocation2 + $0xf8] sm:$0xff] %v765_v2  ;;  %v766_v15 = vmax.f32 %v726_v4, 0.0  ;;  %v5488_v16 = vpop.f32.mrb[60].mxu0  ;;  %v5107_v17 = vpack.c.bf16 %v1894_v10, %v1893_v9  ;;  %5902 = vmatprep.subr.bf16.mxu1 %v7255_v57  ;;  %v8339_v46 = vsel %vm7292_vm7, 4294967295, %v8338_v46  ;;  %v1265_v9 = vld [vmem:[#allocation2 + $0x4f] sm:$0xff]  ;;  %v2241_v10 = vld [vmem:[#allocation2 + $0x37] sm:$0xff]  ;;  %vm7322_vm5 = vmpackc.low %vm6817_vm1, %vm1294_vm15 }
 0x1f7   : > { %v5489_v18 = vpop.f32.mrb[61].mxu0  ;;  %v1895_v37 = vld [vmem:[#allocation2 + $0xe9] sm:$0xff]  ;;  %v7329_v12 = vpack.c.bf16 %v2242_v6, %v2241_v10  ;;  %vm7332_vm11 = vmpackc.low %vm6817_vm1, %vm1296_vm3  ;;  %v864_v49 = vadd.s32 192, %v7196_v47  ;;  %v6555_v54 = vld [vmem:[#allocation8 + $0x128] sm:$0xff]   ;;  %v8358_v6 = vmov 0  ;;  %v866_v10 = vadd.s32 208, %v7196_v47 }
 0x1f8   : > { %836 = vst [vmem:[#allocation2 + $0x100] sm:$0xff] %v766_v15  ;;  %v5490_v22 = vadd.f32 %v5489_v18, %v5488_v16  ;;  %v5491_v23 = vpop.f32.mrb[62].mxu0  ;;  %5847 = vmatmul.mubr.msk.bf16.gmra.mrb[8].mxu1 %vm7260_vm12, %v5107_v17  ;;  %v1431_v24 = vpack.c.bf16 %v766_v15, %v765_v2  ;;  %v8347_v14 = vsel %vm7332_vm11, 4294967295, %v8346_v14  ;;  %v946_v15 = vand.u32 15, %v850_v3  ;;  %v2246_v18 = vld [vmem:[#allocation2 + $0x5f] sm:$0xff]  ;;  %v2253_v3 = vld [vmem:[#allocation2 + $0x97] sm:$0xff] }
 0x1f9   : > { %v5492_v27 = vpop.f32.mrb[63].mxu0  ;;  %v7339_v16 = vpack.c.bf16 %v1265_v9, %v1264_v13  ;;  %v854_v17 = vadd.s32 112, %v7196_v47  ;;  %v6556_v9 = vld [vmem:[#allocation8 + $0x130] sm:$0xff]  }
 0x1fa   : > { %v731_v30 = vadd.f32 %v5490_v22, %v7177_v5  ;;  %v5493_v31 = vadd.f32 %v5492_v27, %v5491_v23  ;;  %5755 = vmatmul.mubr.bf16.gmra.mrb[92].mxu0 %v1431_v24  ;;  %vm1298_vm15 = vcmp.ge.s32.totalorder %v946_v15, 1  ;;  %v6551_v22 = vld [vmem:[#allocation8 + $0x108] sm:$0xff]   ;;  %v1269_v23 = vld [vmem:[#allocation2 + $0x6f] sm:$0xff]  ;;  %v1268_v27 = vld [vmem:[#allocation2 + $0x67] sm:$0xff]  ;;  %v868_v15 = vadd.s32 224, %v7196_v47 }
 0x1fb   : > { %5774 = vmatprep.mubr.msk.bf16.mxu0 %vm7275_vm14, %v5012_v20  ;;  %v856_v20 = vadd.s32 128, %v7196_v47  ;;  %v2245_v24 = vld [vmem:[#allocation2 + $0x57] sm:$0xff]  ;;  %v974_v29 = vand.u32 15, %v854_v17  ;;  %v2258_v13 = vld [vmem:[#allocation2 + $0xbf] sm:$0xff]  ;;  %v6557_v17 = vld [vmem:[#allocation8 + $0x138] sm:$0xff]  }
 0x1fc   : > { %v767_v32 = vmax.f32 %v731_v30, 0.0  ;;  %v734_v33 = vadd.f32 %v5493_v31, %v7177_v5  ;;  %v2237_v5 = vld [vmem:[#allocation2 + $0x17] sm:$0xff]  ;;  %v6552_v31 = vld [vmem:[#allocation8 + $0x110] sm:$0xff]  }
 0x1fd   : > { %v1896_v38 = vld [vmem:[#allocation2 + $0xf1] sm:$0xff]  ;;  %v5124_v48 = vpack.c.bf16 %v2238_v40, %v2237_v5  ;;  %v988_v30 = vand.u32 15, %v856_v20  ;;  %v1272_v40 = vld [vmem:[#allocation2 + $0x87] sm:$0xff]  ;;  %v862_v5 = vadd.s32 176, %v7196_v47  ;;  %v8360_v20 = vmov 0 }
 0x1fe   : > { %837 = vst [vmem:[#allocation2 + $0x108] sm:$0xff] %v767_v32  ;;  %v768_v43 = vmax.f32 %v734_v33, 0.0  ;;  %v5110_v44 = vpack.c.bf16 %v1896_v38, %v1895_v37  ;;  %v860_v33 = vadd.s32 160, %v7196_v47  ;;  %v6553_v37 = vld [vmem:[#allocation8 + $0x118] sm:$0xff]   ;;  %v2249_v38 = vld [vmem:[#allocation2 + $0x77] sm:$0xff] }
 0x1ff   : > { %v1897_v2 = vld [vmem:[#allocation2 + $0xf9] sm:$0xff] }
 0x200   : > { %838 = vst [vmem:[#allocation2 + $0x110] sm:$0xff] %v768_v43  ;;  %5850 = vmatprep.mubr.msk.bf16.mxu1 %vm7285_vm0, %v5110_v44  ;;  %v7303_v52 = vpack.c.bf16 %v768_v43, %v767_v32  ;;  %v2250_v32 = vld [vmem:[#allocation2 + $0x7f] sm:$0xff]  ;;  %v1016_v44 = vand.u32 15, %v860_v33  ;;  %v841_v33 = vadd.s32 8, %v7196_v47 }
 0x201   : > { %v2909_v36 = vld [vmem:[#allocation2 + $0xf9] sm:$0xff] }
 0x202   : > { %5775 = vmatmul.mubr.msk.bf16.vlgmr.msra.gmra.mrb[64].mxu0 %vm7292_vm7, %v5124_v48 }
 0x203   : > { %5778 = vmatprep.mubr.msk.bf16.mxu0 %vm7299_vm9, %v7305_v53  ;;  %5807 = vmatpush3.bf16.msra.mxu0 %v7139_v58  ;;  %v8344_v58 = vmov 0 }
 0x204   : > { %5808 = vmatprep.subr.bf16.mxu0 %v7143_v59  ;;  %v8345_v58 = vsel %vm7322_vm5, 4294967295, %v8344_v58 }
 0x205   : > { %v1898_v4 = vld [vmem:[#allocation2 + $0x101] sm:$0xff] }
 0x206   : > { %v5113_v8 = vpack.c.bf16 %v1898_v4, %v1897_v2  ;;  %v8356_v2 = vmov 0  ;;  %v1276_v4 = vld [vmem:[#allocation2 + $0xa7] sm:$0xff] }
 0x207   : > { %5809 = vmatpush3.bf16.msra.mxu0 %v7143_v59  ;;  %v960_v59 = vand.u32 15, %v852_v7  ;;  %v1030_v7 = vand.u32 15, %v862_v5 }
 0x208   : > { %5851 = vmatmul.mubr.msk.bf16.gmra.mrb[12].mxu1 %vm7314_vm13, %v5113_v8  ;;  %5810 = vmatprep.subr.bf16.mxu0 %v7147_v60  ;;  %v7435_v8 = vpack.c.bf16 %v1277_v51, %v1276_v4  ;;  %v2266_v51 = vld [vmem:[#allocation2 + $0xff] sm:$0xff]  ;;  %v1868_v4 = vld [vmem:[#allocation2 + $0x11] sm:$0xff] }
 0x209   : > { %5870 = vmatprep.mubr.msk.bf16.mxu1 %vm7275_vm14, %v5124_v48  ;;  %vm1300_vm3 = vcmp.ge.s32.totalorder %v960_v59, 1  ;;  %vm7352_vm14 = vmpackc.low %vm6817_vm1, %vm1298_vm15  ;;  %vm1302_vm15 = vcmp.ge.s32.totalorder %v974_v29, 1  ;;  %v2254_v48 = vld [vmem:[#allocation2 + $0x9f] sm:$0xff]  ;;  %v1281_v59 = vld [vmem:[#allocation2 + $0xcf] sm:$0xff] }
 0x20a   : > { %5779 = vmatmul.mubr.msk.bf16.gmra.mrb[68].mxu0 %vm7322_vm5, %v7329_v12  ;;  %v8349_v26 = vsel %vm7352_vm14, 4294967295, %v8348_v26  ;;  %vm7363_vm13 = vmpackc.low %vm6817_vm1, %vm1300_vm3  ;;  %vm1304_vm3 = vcmp.ge.s32.totalorder %v988_v30, 1  ;;  %v1072_v30 = vand.u32 15, %v868_v15 }
 0x20b   : > { %5782 = vmatprep.mubr.msk.bf16.mxu0 %vm7332_vm11, %v7339_v16  ;;  %5811 = vmatpush3.bf16.msra.mxu0 %v7147_v60  ;;  %v7360_v60 = vpack.c.bf16 %v2246_v18, %v2245_v24  ;;  %v8351_v28 = vsel %vm7363_vm13, 4294967295, %v8350_v28  ;;  %v2257_v18 = vld [vmem:[#allocation2 + $0xb7] sm:$0xff]  ;;  %v8362_v24 = vmov 0 }
 0x20c   : > { %5812 = vmatprep.subr.bf16.mxu0 %v7151_v61 }
 0x20f   : > { %5813 = vmatpush3.bf16.msra.mxu0 %v7151_v61  ;;  %v7372_v61 = vpack.c.bf16 %v1269_v23, %v1268_v27  ;;  %v1280_v23 = vld [vmem:[#allocation2 + $0xc7] sm:$0xff]  ;;  %v1058_v27 = vand.u32 15, %v866_v10 }
 0x210   : > { %5871 = vmatmul.mubr.msk.bf16.vlgmr.msra.gmra.mrb[16].mxu1 %vm7292_vm7, %v7305_v53  ;;  %5814 = vmatprep.subr.bf16.mxu0 %v7155_v62  ;;  %vm7396_vm7 = vmpackc.low %vm6817_vm1, %vm1304_vm3  ;;  %vm1308_vm3 = vcmp.ge.s32.totalorder %v1016_v44, 1  ;;  %v7463_v29 = vpack.c.bf16 %v1281_v59, %v1280_v23  ;;  %v8367_v44 = vmov 0  ;;  %v849_v23 = vadd.s32 72, %v7196_v47 }
 0x211   : > { %5903 = vmatpush3.bf16.msra.mxu1 %v7255_v57  ;;  %5874 = vmatprep.mubr.msk.bf16.mxu1 %vm7299_vm9, %v7329_v12  ;;  %v858_v57 = vadd.s32 144, %v7196_v47  ;;  %vm7385_vm9 = vmpackc.low %vm6817_vm1, %vm1302_vm15  ;;  %v8355_v42 = vsel %vm7396_vm7, 4294967295, %v8354_v42 }
 0x212   : > { %5904 = vmatprep.subr.bf16.mxu1 %v6551_v22  ;;  %5783 = vmatmul.mubr.msk.bf16.gmra.mrb[72].mxu0 %vm7352_vm14, %v7360_v60  ;;  %v8353_v39 = vsel %vm7385_vm9, 4294967295, %v8352_v39 }
 0x213   : > { %5786 = vmatprep.mubr.msk.bf16.mxu0 %vm7363_vm13, %v7372_v61  ;;  %5815 = vmatpush3.bf16.msra.mxu0 %v7155_v62  ;;  %v7393_v62 = vpack.c.bf16 %v2250_v32, %v2249_v38  ;;  %v1002_v43 = vand.u32 15, %v858_v57  ;;  %v870_v57 = vadd.s32 240, %v7196_v47  ;;  %v2262_v32 = vld [vmem:[#allocation2 + $0xdf] sm:$0xff]  ;;  %v8364_v38 = vmov 0 }
 0x214   : > { %5816 = vmatprep.subr.bf16.mxu0 %v7159_v63 }
 0x215   : > { %5905 = vmatpush3.bf16.msra.mxu1 %v6551_v22  ;;  %vm1306_vm15 = vcmp.ge.s32.totalorder %v1002_v43, 1  ;;  %v7453_v22 = vpack.c.bf16 %v2258_v13, %v2257_v18  ;;  %v1284_v43 = vld [vmem:[#allocation2 + $0xe7] sm:$0xff] }
 0x216   : > { %5906 = vmatprep.subr.bf16.mxu1 %v6552_v31  ;;  %v1870_v18 = vld [vmem:[#allocation2 + $0x21] sm:$0xff] }
 0x217   : > { %5817 = vmatpush3.bf16.msra.mxu0 %v7159_v63  ;;  %v7404_v63 = vpack.c.bf16 %v1273_v35, %v1272_v40  ;;  %v1285_v35 = vld [vmem:[#allocation2 + $0xef] sm:$0xff] }
 0x218   : > { %5875 = vmatmul.mubr.msk.bf16.gmra.mrb[20].mxu1 %vm7322_vm5, %v7339_v16  ;;  %5818 = vmatprep.subr.bf16.mxu0 %v7163_v0  ;;  %vm7428_vm5 = vmpackc.low %vm6817_vm1, %vm1308_vm3  ;;  %v7494_v5 = vpack.c.bf16 %v1285_v35, %v1284_v43 }
 0x219   : > { %5878 = vmatprep.mubr.msk.bf16.mxu1 %vm7332_vm11, %v7360_v60  ;;  %5907 = vmatpush3.bf16.msra.mxu1 %v6552_v31  ;;  %vm7417_vm11 = vmpackc.low %vm6817_vm1, %vm1306_vm15  ;;  %v8359_v6 = vsel %vm7428_vm5, 4294967295, %v8358_v6  ;;  %vm1310_vm15 = vcmp.ge.s32.totalorder %v1030_v7, 1  ;;  %v7468_v31 = vld [vmem:[#allocation8 + $0x140] sm:$0xff]  }
 0x21a   : > { %5787 = vmatmul.mubr.msk.bf16.gmra.mrb[76].mxu0 %vm7385_vm9, %v7393_v62  ;;  %5908 = vmatprep.subr.bf16.mxu1 %v6553_v37  ;;  %v8357_v2 = vsel %vm7417_vm11, 4294967295, %v8356_v2  ;;  %v2265_v7 = vld [vmem:[#allocation2 + $0xf7] sm:$0xff] }
 0x21b   : > { %5790 = vmatprep.mubr.msk.bf16.mxu0 %vm7396_vm7, %v7404_v63  ;;  %5819 = vmatpush3.bf16.msra.mxu0 %v7163_v0  ;;  %v7425_v0 = vpack.c.bf16 %v2254_v48, %v2253_v3  ;;  %v883_v48 = vand.u32 15, %v841_v33  ;;  %v1867_v3 = vld [vmem:[#allocation2 + $0x9] sm:$0xff] }
 0x21c   : > { %5820 = vmatprep.subr.bf16.mxu0 %v7167_v1  ;;  %v5068_v15 = vpack.c.bf16 %v1868_v4, %v1867_v3  ;;  %v1871_v33 = vld [vmem:[#allocation2 + $0x29] sm:$0xff]  ;;  %v1874_v3 = vld [vmem:[#allocation2 + $0x41] sm:$0xff]  ;;  %v853_v4 = vadd.s32 104, %v7196_v47 }
 0x21d   : > { %5909 = vmatpush3.bf16.msra.mxu1 %v6553_v37  ;;  %v2261_v37 = vld [vmem:[#allocation2 + $0xd7] sm:$0xff] }
 0x21e   : > { %5910 = vmatprep.subr.bf16.mxu1 %v6554_v45  ;;  %v7484_v40 = vpack.c.bf16 %v2262_v32, %v2261_v37 }
 0x21f   : > { %5821 = vmatpush3.bf16.msra.mxu0 %v7167_v1  ;;  %v1044_v1 = vand.u32 15, %v864_v49  ;;  %v843_v49 = vadd.s32 24, %v7196_v47 }
 0x220   : > { %5879 = vmatmul.mubr.msk.bf16.gmra.mrb[24].mxu1 %vm7352_vm14, %v7372_v61 }
 0x221   : > { %5882 = vmatprep.mubr.msk.bf16.mxu1 %vm7363_vm13, %v7393_v62  ;;  %5911 = vmatpush3.bf16.msra.mxu1 %v6554_v45  ;;  %vm1312_vm3 = vcmp.ge.s32.totalorder %v1044_v1, 1  ;;  %vm7446_vm13 = vmpackc.low %vm6817_vm1, %vm1310_vm15  ;;  %vm1314_vm15 = vcmp.ge.s32.totalorder %v1058_v27, 1  ;;  %v1086_v45 = vand.u32 15, %v870_v57  ;;  %v8370_v1 = vmov 0  ;;  %v1872_v27 = vld [vmem:[#allocation2 + $0x31] sm:$0xff] }
 0x222   : > { %5791 = vmatmul.mubr.msk.bf16.gmra.mrb[80].mxu0 %vm7417_vm11, %v7425_v0  ;;  %5912 = vmatprep.subr.bf16.mxu1 %v6555_v54  ;;  %v8361_v20 = vsel %vm7446_vm13, 4294967295, %v8360_v20  ;;  %vm7456_vm14 = vmpackc.low %vm6817_vm1, %vm1312_vm3  ;;  %vm1316_vm3 = vcmp.ge.s32.totalorder %v1072_v30, 1  ;;  %v897_v13 = vand.u32 15, %v843_v49  ;;  %v1869_v30 = vld [vmem:[#allocation2 + $0x19] sm:$0xff]  ;;  %v7547_v43 = vpack.c.bf16 %v1872_v27, %v1871_v33  ;;  %v1875_v27 = vld [vmem:[#allocation2 + $0x49] sm:$0xff] }
 0x223   : > { %5794 = vmatprep.mubr.msk.bf16.mxu0 %vm7428_vm5, %v7435_v8  ;;  %v8363_v24 = vsel %vm7456_vm14, 4294967295, %v8362_v24  ;;  %v7537_v32 = vpack.c.bf16 %v1870_v18, %v1869_v30  ;;  %v2576_v49 = vld [vmem:[#allocation2 + $0x20] sm:$0xff] }
 0x225   : > { %5913 = vmatpush3.bf16.msra.mxu1 %v6555_v54  ;;  %v845_v54 = vadd.s32 40, %v7196_v47 }
 0x226   : > { %5914 = vmatprep.subr.bf16.mxu1 %v6556_v9 }
 0x227   : > { %v911_v59 = vand.u32 15, %v845_v54  ;;  %v2267_v54 = vld [vmem:[#allocation2 + $0x107] sm:$0xff] }
 0x228   : > { %5883 = vmatmul.mubr.msk.bf16.gmra.mrb[28].mxu1 %vm7385_vm9, %v7404_v63  ;;  %vm7487_vm9 = vmpackc.low %vm6817_vm1, %vm1316_vm3  ;;  %vm1900_vm3 = vcmp.le.s32.totalorder %v883_v48, 14  ;;  %v2268_v48 = vld [vmem:[#allocation2 + $0x10f] sm:$0xff] }
 0x229   : > { %5886 = vmatprep.mubr.msk.bf16.mxu1 %vm7396_vm7, %v7425_v0  ;;  %5915 = vmatpush3.bf16.msra.mxu1 %v6556_v9  ;;  %vm7477_vm7 = vmpackc.low %vm6817_vm1, %vm1314_vm15  ;;  %v8368_v44 = vsel %vm7487_vm9, 4294967295, %v8367_v44  ;;  %vm1318_vm15 = vcmp.ge.s32.totalorder %v1086_v45, 1  ;;  %v7512_v9 = vpack.c.bf16 %v2266_v51, %v2265_v7  ;;  %v939_v45 = vand.u32 15, %v849_v23 }
 0x22a   : > { %5795 = vmatmul.mubr.msk.bf16.gmra.mrb[84].mxu0 %vm7446_vm13, %v7453_v22  ;;  %5916 = vmatprep.subr.bf16.mxu1 %v6557_v17  ;;  %v8365_v38 = vsel %vm7477_vm7, 4294967295, %v8364_v38  ;;  %8369 = vst [vmem:[#allocation22_spill] sm:$0xff] %v8368_v44  ;;  %v851_v51 = vadd.s32 88, %v7196_v47  ;;  %v7557_v7 = vpack.c.bf16 %v2268_v48, %v2267_v54  ;;  %v2578_v48 = vld [vmem:[#allocation2 + $0x30] sm:$0xff]  ;;  %v855_v54 = vadd.s32 120, %v7196_v47 }
 0x22b   : > { %5798 = vmatprep.mubr.msk.bf16.mxu0 %vm7456_vm14, %v7463_v29  ;;  %8366 = vst [vmem:[#allocation21_spill] sm:$0xff] %v8365_v38  ;;  %8373 = vst [vmem:[#allocation24_spill] sm:$0xff] %v7512_v9  ;;  %v8394_v44 = vmov 0  ;;  %v2589_v38 = vld [vmem:[#allocation2 + $0x88] sm:$0xff] }
 0x22c   : > { %8380 = vst [vmem:[#allocation25_spill] sm:$0xff] %v7557_v7  ;;  %v953_v33 = vand.u32 15, %v851_v51 }
 0x22d   : > { %5917 = vmatpush3.bf16.msra.mxu1 %v6557_v17  ;;  %v847_v17 = vadd.s32 56, %v7196_v47  ;;  %v1879_v47 = vld [vmem:[#allocation2 + $0x69] sm:$0xff] }
 0x22e   : > { %5950 = vmatprep.subr.bf16.mxu1 %v7468_v31 }
 0x22f   : > { %v925_v37 = vand.u32 15, %v847_v17  ;;  %v1873_v17 = vld [vmem:[#allocation2 + $0x39] sm:$0xff] }
 0x230   : > { %5887 = vmatmul.mubr.msk.bf16.gmra.mrb[0].mxu1 %vm7417_vm11, %v7435_v8  ;;  %vm7515_vm11 = vmpackc.low %vm1900_vm3, %vm6817_vm1  ;;  %vm1904_vm3 = vcmp.le.s32.totalorder %v911_v59, 14  ;;  %v7567_v23 = vpack.c.bf16 %v1874_v3, %v1873_v17  ;;  %v2577_v3 = vld [vmem:[#allocation2 + $0x28] sm:$0xff] }
 0x231   : > { %5890 = vmatprep.mubr.msk.bf16.mxu1 %vm7428_vm5, %v7453_v22  ;;  %vm7505_vm5 = vmpackc.low %vm6817_vm1, %vm1318_vm15  ;;  %vm1902_vm15 = vcmp.le.s32.totalorder %v897_v13, 14  ;;  %v2575_v13 = vld [vmem:[#allocation2 + $0x18] sm:$0xff]  ;;  %v7583_v51 = vpack.c.bf16 %v2578_v48, %v2577_v3  ;;  %v981_v48 = vand.u32 15, %v855_v54  ;;  %v6560_v3 = vld [vmem:[#allocation8 + $0x150] sm:$0xff]  }
 0x232   : > { %5799 = vmatmul.mubr.msk.bf16.gmra.mrb[88].mxu0 %vm7477_vm7, %v7484_v40  ;;  %v8371_v1 = vsel %vm7505_vm5, 4294967295, %v8370_v1  ;;  %v2607_v59 = vpack.c.bf16 %v2576_v49, %v2575_v13  ;;  %v2580_v49 = vld [vmem:[#allocation2 + $0x40] sm:$0xff]  ;;  %v2581_v54 = vld [vmem:[#allocation2 + $0x48] sm:$0xff] }
 0x233   : > { %5802 = vmatprep.mubr.msk.bf16.mxu0 %vm7487_vm9, %v7494_v5  ;;  %8372 = vst [vmem:[#allocation23_spill] sm:$0xff] %v8371_v1  ;;  %v1878_v13 = vld [vmem:[#allocation2 + $0x61] sm:$0xff]  ;;  %8385 = vst [vmem:[#allocation26_spill] sm:$0xff] %v7583_v51  ;;  %v3893_v1 = vld [vmem:[#allocation2 + $0x119] sm:$0xff] }
 0x238   : > { %5891 = vmatmul.mubr.msk.bf16.gmra.mrb[4].mxu1 %vm7446_vm13, %v7463_v29  ;;  %vm7540_vm13 = vmpackc.low %vm1904_vm3, %vm6817_vm1  ;;  %vm1908_vm3 = vcmp.le.s32.totalorder %v939_v45, 14  ;;  %v967_v45 = vand.u32 15, %v853_v4  ;;  %v6559_v4 = vld [vmem:[#allocation8 + $0x148] sm:$0xff]  }
 0x239   : > { %5894 = vmatprep.mubr.msk.bf16.mxu1 %vm7456_vm14, %v7484_v40  ;;  %vm7530_vm14 = vmpackc.low %vm1902_vm15, %vm6817_vm1  ;;  %vm1906_vm15 = vcmp.le.s32.totalorder %v925_v37, 14 }
 0x23a   : > { %5803 = vmatmul.mubr.msk.bf16.gmra.mrb[92].mxu0 %vm7505_vm5, %v7512_v9 }
 0x23b   : > { %5822 = vmatprep.mubr.msk.bf16.mxu0 %vm7515_vm11, %v5068_v15  ;;  %v1876_v15 = vld [vmem:[#allocation2 + $0x51] sm:$0xff] }
 0x23c   : > { %v7574_v37 = vpack.c.bf16 %v1876_v15, %v1875_v27  ;;  %v2579_v15 = vld [vmem:[#allocation2 + $0x38] sm:$0xff] }
 0x23d   : > { %v7585_v17 = vpack.c.bf16 %v2580_v49, %v2579_v15  ;;  %v1877_v27 = vld [vmem:[#allocation2 + $0x59] sm:$0xff] }
 0x23e   : > { %v2584_v15 = vld [vmem:[#allocation2 + $0x60] sm:$0xff] }
 0x23f   : > { %8386 = vst [vmem:[#allocation27_spill] sm:$0xff] %v7585_v17 }
 0x240   : > { %5895 = vmatmul.mubr.msk.bf16.gmra.mrb[8].mxu1 %vm7477_vm7, %v7494_v5  ;;  %vm7570_vm7 = vmpackc.low %vm1908_vm3, %vm6817_vm1  ;;  %vm1912_vm3 = vcmp.le.s32.totalorder %v967_v45, 14  ;;  %v8389_v45 = vmov 0 }
 0x241   : > { %5898 = vmatprep.mubr.msk.bf16.mxu1 %vm7487_vm9, %v7512_v9  ;;  %vm7560_vm9 = vmpackc.low %vm1906_vm15, %vm6817_vm1  ;;  %vm1910_vm15 = vcmp.le.s32.totalorder %v953_v33, 14  ;;  %v7593_v33 = vpack.c.bf16 %v1878_v13, %v1877_v27  ;;  %v2582_v13 = vld [vmem:[#allocation2 + $0x50] sm:$0xff] }
 0x242   : > { %5823 = vmatmul.mubr.msk.bf16.vlgmr.msra.gmra.mrb[64].mxu0 %vm7530_vm14, %v7537_v32  ;;  %vm7596_vm0 = vmpackc.low %vm1912_vm3, %vm6817_vm1  ;;  %v7610_v27 = vpack.c.bf16 %v2582_v13, %v2581_v54  ;;  %v2588_v13 = vld [vmem:[#allocation2 + $0x80] sm:$0xff] }
 0x243   : > { %5826 = vmatprep.mubr.msk.bf16.mxu0 %vm7540_vm13, %v7547_v43  ;;  %v8390_v45 = vsel %vm7596_vm0, 4294967295, %v8389_v45 }
 0x244   : > { %8391 = vst [vmem:[#allocation28_spill] sm:$0xff] %v8390_v45  ;;  %8392 = vst [vmem:[#allocation29_spill] sm:$0xff] %v7610_v27  ;;  %v2901_v45 = vld [vmem:[#allocation2 + $0xb9] sm:$0xff] }
 0x248   : > { %5899 = vmatmul.mubr.msk.bf16.gmra.mrb[12].mxu1 %vm7505_vm5, %v7557_v7  ;;  %vm7588_vm5 = vmpackc.low %vm1910_vm15, %vm6817_vm1  ;;  %vm1914_vm15 = vcmp.le.s32.totalorder %v981_v48, 14  ;;  %v2586_v48 = vld [vmem:[#allocation2 + $0x70] sm:$0xff] }
 0x249   : > { %5918 = vmatprep.mubr.bf16.mxu1 %v2607_v59  ;;  %v1880_v59 = vld [vmem:[#allocation2 + $0x71] sm:$0xff]  ;;  %vm7615_vm3 = vmpackc.low %vm1914_vm15, %vm6817_vm1  ;;  %vm8403_vm1 = vnez %v8337_v34  ;;  %vm8404_vm15 = vnez %v8343_v55 }
 0x24a   : > { %5827 = vmatmul.mubr.msk.bf16.gmra.mrb[68].mxu0 %vm7560_vm9, %v7567_v23  ;;  %v7602_v49 = vpack.c.bf16 %v1880_v59, %v1879_v47  ;;  %v2583_v47 = vld [vmem:[#allocation2 + $0x58] sm:$0xff]  ;;  %v6561_v59 = vld [vmem:[#allocation8 + $0x158] sm:$0xff]   ;;  %v8395_v44 = vsel %vm7615_vm3, 4294967295, %v8394_v44 }
 0x24b   : > { %5830 = vmatprep.mubr.msk.bf16.mxu0 %vm7570_vm7, %v7574_v37  ;;  %8396 = vst [vmem:[#allocation31_spill] sm:$0xff] %v8395_v44 }
 0x250   : > { %5919 = vmatmul.mubr.bf16.vlgmr.msra.gmra.mrb[16].mxu1 %v7583_v51  ;;  %v1881_v51 = vld [vmem:[#allocation2 + $0x79] sm:$0xff] }
 0x251   : > { %5951 = vmatpush3.bf16.msra.mxu1 %v7468_v31  ;;  %5922 = vmatprep.mubr.bf16.mxu1 %v7585_v17  ;;  %v1882_v31 = vld [vmem:[#allocation2 + $0x81] sm:$0xff]  ;;  %v7612_v17 = vpack.c.bf16 %v2584_v15, %v2583_v47  ;;  %v2587_v47 = vld [vmem:[#allocation2 + $0x78] sm:$0xff] }
 0x252   : > { %5952 = vmatprep.subr.bf16.mxu1 %v6559_v4  ;;  %5831 = vmatmul.mubr.msk.bf16.gmra.mrb[72].mxu0 %vm7588_vm5, %v7593_v33  ;;  %v7620_v7 = vpack.c.bf16 %v1882_v31, %v1881_v51  ;;  %v2585_v15 = vld [vmem:[#allocation2 + $0x68] sm:$0xff]  ;;  %v7628_v51 = vpack.c.bf16 %v2588_v13, %v2587_v47  ;;  %v2590_v31 = vld [vmem:[#allocation2 + $0x90] sm:$0xff]  ;;  %v2596_v47 = vld [vmem:[#allocation2 + $0xc0] sm:$0xff] }
 0x253   : > { %5834 = vmatprep.mubr.msk.bf16.mxu0 %vm7596_vm0, %v7602_v49  ;;  %8393 = vst [vmem:[#allocation30_spill] sm:$0xff] %v7612_v17  ;;  %v7626_v54 = vpack.c.bf16 %v2586_v48, %v2585_v15  ;;  %v7632_v9 = vpack.c.bf16 %v2590_v31, %v2589_v38  ;;  %v6565_v48 = vld [vmem:[#allocation8 + $0x178] sm:$0xff]   ;;  %v2594_v13 = vld [vmem:[#allocation2 + $0xb0] sm:$0xff]  ;;  %v2595_v38 = vld [vmem:[#allocation2 + $0xb8] sm:$0xff] }
 0x254   : > { %8398 = vst [vmem:[#allocation33_spill] sm:$0xff] %v7628_v51  ;;  %v2600_v31 = vld [vmem:[#allocation2 + $0xe0] sm:$0xff] }
 0x255   : > { %5953 = vmatpush3.bf16.msra.mxu1 %v6559_v4  ;;  %v6562_v4 = vld [vmem:[#allocation8 + $0x160] sm:$0xff]   ;;  %8397 = vst [vmem:[#allocation32_spill] sm:$0xff] %v7626_v54  ;;  %8399 = vst [vmem:[#allocation34_spill] sm:$0xff] %v7632_v9 }
 0x256   : > { %5954 = vmatprep.subr.bf16.mxu1 %v6560_v3 }
 0x258   : > { %5923 = vmatmul.mubr.bf16.gmra.mrb[20].mxu1 %v7610_v27  ;;  %v6563_v27 = vld [vmem:[#allocation8 + $0x168] sm:$0xff]  }
 0x259   : > { %5926 = vmatprep.mubr.bf16.mxu1 %v7612_v17  ;;  %5955 = vmatpush3.bf16.msra.mxu1 %v6560_v3  ;;  %v6564_v3 = vld [vmem:[#allocation8 + $0x170] sm:$0xff]  }
 0x25a   : > { %5835 = vmatmul.mubr.msk.bf16.gmra.mrb[76].mxu0 %vm7615_vm3, %v7620_v7  ;;  %5956 = vmatprep.subr.bf16.mxu1 %v6561_v59  ;;  %v2592_v17 = vld [vmem:[#allocation2 + $0xa0] sm:$0xff] }
 0x25d   : > { %5957 = vmatpush3.bf16.msra.mxu1 %v6561_v59  ;;  %v2591_v59 = vld [vmem:[#allocation2 + $0x98] sm:$0xff] }
 0x25e   : > { %5958 = vmatprep.subr.bf16.mxu1 %v6562_v4  ;;  %v7634_v15 = vpack.c.bf16 %v2592_v17, %v2591_v59  ;;  %v2598_v17 = vld [vmem:[#allocation2 + $0xd0] sm:$0xff]  ;;  %v2597_v59 = vld [vmem:[#allocation2 + $0xc8] sm:$0xff] }
 0x260   : > { %5927 = vmatmul.mubr.bf16.gmra.mrb[24].mxu1 %v7626_v54  ;;  %8400 = vst [vmem:[#allocation35_spill] sm:$0xff] %v7634_v15 }
 0x261   : > { %5930 = vmatprep.mubr.bf16.mxu1 %v7628_v51  ;;  %5959 = vmatpush3.bf16.msra.mxu1 %v6562_v4  ;;  %v6566_v4 = vld [vmem:[#allocation8 + $0x180] sm:$0xff]   ;;  %v2593_v51 = vld [vmem:[#allocation2 + $0xa8] sm:$0xff] }
 0x262   : > { %5960 = vmatprep.subr.bf16.mxu1 %v6563_v27  ;;  %v7638_v54 = vpack.c.bf16 %v2594_v13, %v2593_v51  ;;  %v2602_v51 = vld [vmem:[#allocation2 + $0xf0] sm:$0xff]  ;;  %v2601_v13 = vld [vmem:[#allocation2 + $0xe8] sm:$0xff] }
 0x264   : > { %8401 = vst [vmem:[#allocation36_spill] sm:$0xff] %v7638_v54 }
 0x265   : > { %5961 = vmatpush3.bf16.msra.mxu1 %v6563_v27  ;;  %v7640_v27 = vpack.c.bf16 %v2596_v47, %v2595_v38  ;;  %v7650_v47 = vpack.c.bf16 %v2602_v51, %v2601_v13  ;;  %v2603_v38 = vld [vmem:[#allocation2 + $0xf8] sm:$0xff]  ;;  %v2898_v51 = vld [vmem:[#allocation2 + $0xa1] sm:$0xff] }
 0x266   : > { %5962 = vmatprep.subr.bf16.mxu1 %v6564_v3 }
 0x268   : > { %5931 = vmatmul.mubr.bf16.gmra.mrb[28].mxu1 %v7632_v9 }
 0x269   : > { %5934 = vmatprep.mubr.bf16.mxu1 %v7634_v15  ;;  %5963 = vmatpush3.bf16.msra.mxu1 %v6564_v3  ;;  %v7644_v3 = vpack.c.bf16 %v2598_v17, %v2597_v59  ;;  %v2599_v15 = vld [vmem:[#allocation2 + $0xd8] sm:$0xff]  ;;  %v6568_v17 = vld [vmem:[#allocation8 + $0x190] sm:$0xff]  }
 0x26a   : > { %5964 = vmatprep.subr.bf16.mxu1 %v6565_v48  ;;  %v7646_v9 = vpack.c.bf16 %v2600_v31, %v2599_v15  ;;  %v6567_v15 = vld [vmem:[#allocation8 + $0x188] sm:$0xff]   ;;  %v6569_v31 = vld [vmem:[#allocation8 + $0x198] sm:$0xff]  }
 0x26b   : > { %v2896_v59 = vld [vmem:[#allocation2 + $0x91] sm:$0xff] }
 0x26d   : > { %5965 = vmatpush3.bf16.msra.mxu1 %v6565_v48  ;;  %v2604_v48 = vld [vmem:[#allocation2 + $0x100] sm:$0xff] }
 0x26e   : > { %5998 = vmatprep.subr.bf16.mxu1 %v6566_v4 }
 0x270   : > { %5935 = vmatmul.mubr.bf16.gmra.mrb[0].mxu1 %v7638_v54  ;;  %v7652_v54 = vpack.c.bf16 %v2604_v48, %v2603_v38  ;;  %v2895_v48 = vld [vmem:[#allocation2 + $0x89] sm:$0xff]  ;;  %v2897_v38 = vld [vmem:[#allocation2 + $0x99] sm:$0xff] }
 0x271   : > { %5938 = vmatprep.mubr.bf16.mxu1 %v7640_v27  ;;  %v7678_v13 = vpack.c.bf16 %v2896_v59, %v2895_v48  ;;  %v2899_v59 = vld [vmem:[#allocation2 + $0xa9] sm:$0xff] }
 0x278   : > { %5939 = vmatmul.mubr.bf16.gmra.mrb[4].mxu1 %v7644_v3 }
 0x279   : > { %5942 = vmatprep.mubr.bf16.mxu1 %v7646_v9 }
 0x280   : > { %5943 = vmatmul.mubr.bf16.gmra.mrb[8].mxu1 %v7650_v47 }
 0x281   : > { %5946 = vmatprep.mubr.bf16.mxu1 %v7652_v54 }
 0x288   : > { %5947 = vmatmul.mubr.bf16.gmra.mrb[12].mxu1 %v7303_v52  ;;  %v6570_v52 = vld [vmem:[#allocation8 + $0x1a0] sm:$0xff]  }
 0x289   : > { %5966 = vmatprep.mubr.msk.bf16.mxu1 %vm7515_vm11, %v7537_v32  ;;  %v6571_v32 = vld [vmem:[#allocation8 + $0x1a8] sm:$0xff]  }
 0x290   : > { %5967 = vmatmul.mubr.msk.bf16.vlgmr.msra.gmra.mrb[16].mxu1 %vm7530_vm14, %v7547_v43 }
 0x291   : > { %5999 = vmatpush3.bf16.msra.mxu1 %v6566_v4  ;;  %5970 = vmatprep.mubr.msk.bf16.mxu1 %vm7540_vm13, %v7567_v23  ;;  %v6572_v4 = vld [vmem:[#allocation8 + $0x1b0] sm:$0xff]  }
 0x292   : > { %6000 = vmatprep.subr.bf16.mxu1 %v6567_v15 }
 0x295   : > { %6001 = vmatpush3.bf16.msra.mxu1 %v6567_v15  ;;  %v6573_v15 = vld [vmem:[#allocation8 + $0x1b8] sm:$0xff]  }
 0x296   : > { %6002 = vmatprep.subr.bf16.mxu1 %v6568_v17 }
 0x298   : > { %5971 = vmatmul.mubr.msk.bf16.gmra.mrb[20].mxu1 %vm7560_vm9, %v7574_v37 }
 0x299   : > { %5974 = vmatprep.mubr.msk.bf16.mxu1 %vm7570_vm7, %v7593_v33  ;;  %6003 = vmatpush3.bf16.msra.mxu1 %v6568_v17  ;;  %v7680_v17 = vpack.c.bf16 %v2898_v51, %v2897_v38  ;;  %v2906_v38 = vld [vmem:[#allocation2 + $0xe1] sm:$0xff] }
 0x29a   : > { %6004 = vmatprep.subr.bf16.mxu1 %v6569_v31 }
 0x29d   : > { %6005 = vmatpush3.bf16.msra.mxu1 %v6569_v31  ;;  %v6574_v31 = vld [vmem:[#allocation8 + $0x1c0] sm:$0xff]  }
 0x29e   : > { %6006 = vmatprep.subr.bf16.mxu1 %v6570_v52 }
 0x2a0   : > { %5975 = vmatmul.mubr.msk.bf16.gmra.mrb[24].mxu1 %vm7588_vm5, %v7602_v49 }
 0x2a1   : > { %5978 = vmatprep.mubr.msk.bf16.mxu1 %vm7596_vm0, %v7620_v7  ;;  %6007 = vmatpush3.bf16.msra.mxu1 %v6570_v52  ;;  %v2900_v52 = vld [vmem:[#allocation2 + $0xb1] sm:$0xff] }
 0x2a2   : > { %6008 = vmatprep.subr.bf16.mxu1 %v6571_v32  ;;  %v7688_v48 = vpack.c.bf16 %v2900_v52, %v2899_v59  ;;  %v2907_v59 = vld [vmem:[#allocation2 + $0xe9] sm:$0xff] }
 0x2a5   : > { %6009 = vmatpush3.bf16.msra.mxu1 %v6571_v32  ;;  %v2902_v32 = vld [vmem:[#allocation2 + $0xc1] sm:$0xff] }
 0x2a6   : > { %6010 = vmatprep.subr.bf16.mxu1 %v6572_v4  ;;  %v7690_v51 = vpack.c.bf16 %v2902_v32, %v2901_v45  ;;  %v2908_v45 = vld [vmem:[#allocation2 + $0xf1] sm:$0xff]  ;;  %v2910_v32 = vld [vmem:[#allocation2 + $0x101] sm:$0xff] }
 0x2a7   : > { %v7708_v56 = vpack.c.bf16 %v2908_v45, %v2907_v59  ;;  %v6577_v45 = vld [vmem:[#allocation8 + $0x1d8] sm:$0xff]  }
 0x2a8   : > { %5979 = vmatmul.mubr.msk.bf16.gmra.mrb[28].mxu1 %vm7615_vm3, %v7678_v13  ;;  %8402 = vst [vmem:[#allocation37_spill] sm:$0xff] %v7690_v51  ;;  %v6595_v59 = vld [vmem:[#allocation9 + $0x14] ss:$8 sps:$4 sm:$0xff]  }
 0x2a9   : > { %5982 = vmatprep.mubr.msk.bf16.mxu1 %vm7205_vm2, %v7680_v17  ;;  %6011 = vmatpush3.bf16.msra.mxu1 %v6572_v4  ;;  %v2904_v4 = vld [vmem:[#allocation2 + $0xd1] sm:$0xff] }
 0x2aa   : > { %6012 = vmatprep.subr.bf16.mxu1 %v6573_v15  ;;  %v7698_v44 = vpack.c.bf16 %v2904_v4, %v2903_v19  ;;  %v2911_v19 = vld [vmem:[#allocation2 + $0x109] sm:$0xff]  ;;  %v2912_v4 = vld [vmem:[#allocation2 + $0x111] sm:$0xff] }
 0x2ad   : > { %6013 = vmatpush3.bf16.msra.mxu1 %v6573_v15  ;;  %v2905_v15 = vld [vmem:[#allocation2 + $0xd9] sm:$0xff] }
 0x2ae   : > { %6046 = vmatprep.subr.bf16.mxu1 %v6574_v31  ;;  %v7700_v52 = vpack.c.bf16 %v2906_v38, %v2905_v15  ;;  %v7718_v38 = vpack.c.bf16 %v2912_v4, %v2911_v19  ;;  %v6576_v15 = vld [vmem:[#allocation8 + $0x1d0] sm:$0xff]   ;;  %v6598_v4 = vld [vmem:[#allocation9 + $0x24] ss:$8 sps:$4 sm:$0xff]  }
 0x2af   : > { %v6593_v19 = vld [vmem:[#allocation9 + $0x10] ss:$8 sps:$4 sm:$0xff]   ;;  %v8441_v35 = vld [vmem:[#allocation37_spill] sm:$0xff] }
 0x2b0   : > { %5983 = vmatmul.mubr.msk.bf16.gmra.mrb[0].mxu1 %vm7215_vm4, %v7688_v48 }
 0x2b1   : > { %5986 = vmatprep.mubr.msk.bf16.mxu1 %vm7226_vm6, %v7690_v51  ;;  %v7710_v51 = vpack.c.bf16 %v2910_v32, %v2909_v36  ;;  %v6575_v36 = vld [vmem:[#allocation8 + $0x1c8] sm:$0xff]  }
 0x2b2   : > { %v8426_v32 = vld [vmem:[#allocation26_spill] sm:$0xff] }
 0x2b8   : > { %5987 = vmatmul.mubr.msk.bf16.gmra.mrb[4].mxu1 %vm7236_vm8, %v7698_v44 }
 0x2b9   : > { %5990 = vmatprep.mubr.msk.bf16.mxu1 %vm7246_vm10, %v7700_v52  ;;  %vm8405_vm10 = vnez %v8335_v25  ;;  %v6578_v25 = vld [vmem:[#allocation8 + $0x1e0] sm:$0xff]  }
 0x2c0   : > { %5991 = vmatmul.mubr.msk.bf16.gmra.mrb[8].mxu1 %vm7260_vm12, %v7708_v56  ;;  %vm8406_vm12 = vnez %v8339_v46  ;;  %v6579_v46 = vld [vmem:[#allocation8 + $0x1e8] sm:$0xff]  }
 0x2c1   : > { %5994 = vmatprep.mubr.msk.bf16.mxu1 %vm8403_vm1, %v7710_v51  ;;  %vm8407_vm1 = vnez %v8341_v50  ;;  %v6580_v50 = vld [vmem:[#allocation8 + $0x1f0] sm:$0xff]  }
 0x2c8   : > { %5995 = vmatmul.mubr.msk.bf16.gmra.mrb[12].mxu1 %vm8404_vm15, %v7718_v38  ;;  %vm8408_vm15 = vnez %v8345_v58  ;;  %v6582_v58 = vld [vmem:[#allocation8 + $0x200] sm:$0xff]  }
 0x2c9   : > { %6014 = vmatprep.mubr.msk.bf16.mxu1 %vm8405_vm10, %v7305_v53  ;;  %vm8409_vm10 = vnez %v8347_v14  ;;  %v6581_v53 = vld [vmem:[#allocation8 + $0x1f8] sm:$0xff]  }
 0x2d0   : > { %6015 = vmatmul.mubr.msk.bf16.vlgmr.msra.gmra.mrb[16].mxu1 %vm8406_vm12, %v7329_v12  ;;  %vm8410_vm12 = vnez %v8349_v26 }
 0x2d1   : > { %6047 = vmatpush3.bf16.msra.mxu1 %v6574_v31  ;;  %6018 = vmatprep.mubr.msk.bf16.mxu1 %vm8407_vm1, %v7339_v16  ;;  %vm8411_vm1 = vnez %v8351_v28  ;;  %v6592_v31 = vld [vmem:[#allocation9 + $0x4] ss:$8 sps:$4 sm:$0xff]  }
 0x2d2   : > { %6048 = vmatprep.subr.bf16.mxu1 %v6575_v36  ;;  %4396 = vmatprep.subr.bf16.mxu0 %v6592_v31  ;;  %v6602_v31 = vld [vmem:[#allocation9 + $0x40] ss:$8 sps:$4 sm:$0xff]  }
 0x2d5   : > { %6049 = vmatpush3.bf16.msra.mxu1 %v6575_v36 }
 0x2d6   : > { %6050 = vmatprep.subr.bf16.mxu1 %v6576_v15 }
 0x2d8   : > { %6019 = vmatmul.mubr.msk.bf16.gmra.mrb[20].mxu1 %vm8408_vm15, %v7360_v60  ;;  %vm8412_vm15 = vnez %v8353_v39  ;;  %v8418_v39 = vld [vmem:[#allocation24_spill] sm:$0xff] }
 0x2d9   : > { %6022 = vmatprep.mubr.msk.bf16.mxu1 %vm8409_vm10, %v7372_v61  ;;  %6051 = vmatpush3.bf16.msra.mxu1 %v6576_v15  ;;  %vm8413_vm10 = vnez %v8355_v42 }
 0x2da   : > { %6052 = vmatprep.subr.bf16.mxu1 %v6577_v45 }
 0x2dd   : > { %6053 = vmatpush3.bf16.msra.mxu1 %v6577_v45  ;;  %v6583_v45 = vld [vmem:[#allocation8 + $0x208] sm:$0xff]  }
 0x2de   : > { %6054 = vmatprep.subr.bf16.mxu1 %v6578_v25 }
 0x2e0   : > { %6023 = vmatmul.mubr.msk.bf16.gmra.mrb[24].mxu1 %vm8410_vm12, %v7393_v62  ;;  %vm8414_vm12 = vnez %v8357_v2  ;;  %v8419_v62 = vld [vmem:[#allocation21_spill] sm:$0xff]  ;;  %v8422_v2 = vld [vmem:[#allocation22_spill] sm:$0xff] }
 0x2e1   : > { %6026 = vmatprep.mubr.msk.bf16.mxu1 %vm8411_vm1, %v7404_v63  ;;  %6055 = vmatpush3.bf16.msra.mxu1 %v6578_v25  ;;  %vm8415_vm1 = vnez %v8359_v6  ;;  %v8421_v63 = vld [vmem:[#allocation25_spill] sm:$0xff]  ;;  %v3250_v6 = vld [vmem:[#allocation2 + $0x11f] sm:$0xff] }
 0x2e2   : > { %6056 = vmatprep.subr.bf16.mxu1 %v6579_v46 }
 0x2e5   : > { %6057 = vmatpush3.bf16.msra.mxu1 %v6579_v46  ;;  %v6596_v46 = vld [vmem:[#allocation9 + $0x20] ss:$8 sps:$4 sm:$0xff]  }
 0x2e6   : > { %6058 = vmatprep.subr.bf16.mxu1 %v6580_v50 }
 0x2e8   : > { %6027 = vmatmul.mubr.msk.bf16.gmra.mrb[28].mxu1 %vm8412_vm15, %v7425_v0  ;;  %vm8416_vm15 = vnez %v8361_v20  ;;  %v3249_v0 = vld [vmem:[#allocation2 + $0x117] sm:$0xff] }
 0x2e9   : > { %6030 = vmatprep.mubr.msk.bf16.mxu1 %vm8413_vm10, %v7435_v8  ;;  %6059 = vmatpush3.bf16.msra.mxu1 %v6580_v50  ;;  %vm8417_vm10 = vnez %v8363_v24  ;;  %v5289_v20 = vpack.c.bf16 %v3250_v6, %v3249_v0  ;;  %v8429_v50 = vld [vmem:[#allocation27_spill] sm:$0xff]  ;;  %v6604_v0 = vld [vmem:[#allocation9 + $0x44] ss:$8 sps:$4 sm:$0xff]  }
 0x2ea   : > { %6060 = vmatprep.subr.bf16.mxu1 %v6581_v53 }
 0x2ed   : > { %6061 = vmatpush3.bf16.msra.mxu1 %v6581_v53 }
 0x2ee   : > { %6094 = vmatprep.subr.bf16.mxu1 %v6582_v58 }
 0x2f0   : > { %6031 = vmatmul.mubr.msk.bf16.gmra.mrb[0].mxu1 %vm8414_vm12, %v7453_v22  ;;  %vm8420_vm12 = vnez %v8419_v62  ;;  %v8431_v62 = vld [vmem:[#allocation29_spill] sm:$0xff] }
 0x2f1   : > { %6034 = vmatprep.mubr.msk.bf16.mxu1 %vm8415_vm1, %v7463_v29  ;;  %vm8423_vm1 = vnez %v8422_v2  ;;  %v8424_v29 = vld [vmem:[#allocation23_spill] sm:$0xff] }
 0x2f2   : > { %v6599_v2 = vld [vmem:[#allocation9 + $0x30] ss:$8 sps:$4 sm:$0xff]  }
 0x2f5   : > { %v7756_v12 = vpop.f32.mrb[80].mxu0 }
 0x2f6   : > { %v7758_v14 = vpop.f32.mrb[81].mxu0 }
 0x2f7   : > { %v7760_v16 = vpop.f32.mrb[82].mxu0 }
 0x2f8   : > { %6035 = vmatmul.mubr.msk.bf16.gmra.mrb[4].mxu1 %vm8416_vm15, %v7484_v40  ;;  %v7765_v26 = vpop.f32.mrb[83].mxu0  ;;  %vm8425_vm15 = vnez %v8424_v29  ;;  %v6585_v29 = vld [vmem:[#allocation8 + $0x218] sm:$0xff]  }
 0x2f9   : > { %6038 = vmatprep.mubr.msk.bf16.mxu1 %vm8417_vm10, %v7494_v5  ;;  %v6590_v5 = vld [vmem:[#allocation9] ss:$8 sps:$4 sm:$0xff]  }
 0x2fa   : > { %4397 = vmatpush1.bf16.msra.mxu0 %v6590_v5 }
 0x2fb   : > { %4398 = vmatprep.subr.bf16.mxu0 %v6595_v59  ;;  %v6607_v59 = vld [vmem:[#allocation9 + $0x54] ss:$8 sps:$4 sm:$0xff]  }
 0x2fd   : > { %v7770_v60 = vpop.f32.mrb[84].mxu0 }
 0x2fe   : > { %v7772_v28 = vpop.f32.mrb[85].mxu0  ;;  %4399 = vmatpush1.bf16.msra.mxu0 %v6593_v19  ;;  %v8433_v19 = vld [vmem:[#allocation32_spill] sm:$0xff] }
 0x2ff   : > { %v7774_v61 = vpop.f32.mrb[86].mxu0  ;;  %4400 = vmatprep.subr.bf16.mxu0 %v6598_v4  ;;  %v6586_v4 = vld [vmem:[#allocation8 + $0x220] sm:$0xff]  }
 0x300   : > { %6039 = vmatmul.mubr.msk.bf16.gmra.mrb[8].mxu1 %vm8420_vm12, %v8418_v39  ;;  %v7779_v42 = vpop.f32.mrb[87].mxu0  ;;  %v6601_v39 = vld [vmem:[#allocation9 + $0x34] ss:$8 sps:$4 sm:$0xff]  }
 0x301   : > { %6042 = vmatprep.mubr.msk.bf16.mxu1 %vm8423_vm1, %v8421_v63  ;;  %v6584_v63 = vld [vmem:[#allocation8 + $0x210] sm:$0xff]  }
 0x302   : > { %4401 = vmatpush1.bf16.msra.mxu0 %v6596_v46 }
 0x303   : > { %4402 = vmatprep.subr.bf16.mxu0 %v6601_v39  ;;  %v6587_v39 = vld [vmem:[#allocation8 + $0x228] sm:$0xff]  }
 0x305   : > { %v7784_v8 = vpop.f32.mrb[88].mxu0 }
 0x306   : > { %v7786_v22 = vpop.f32.mrb[89].mxu0  ;;  %4403 = vmatpush1.bf16.msra.mxu0 %v6599_v2  ;;  %v8434_v2 = vld [vmem:[#allocation33_spill] sm:$0xff] }
 0x307   : > { %v7788_v24 = vpop.f32.mrb[90].mxu0  ;;  %4404 = vmatprep.subr.bf16.mxu0 %v6604_v0 }
 0x308   : > { %6043 = vmatmul.mubr.msk.bf16.gmra.mrb[12].mxu1 %vm8425_vm15, %v5289_v20  ;;  %v7792_v40 = vpop.f32.mrb[91].mxu0 }
 0x309   : > { %6062 = vmatprep.mubr.bf16.mxu1 %v8426_v32 }
 0x30a   : > { %4405 = vmatpush1.bf16.msra.mxu0 %v6602_v31  ;;  %v6588_v31 = vld [vmem:[#allocation8 + $0x230] sm:$0xff]  }
 0x30b   : > { %4406 = vmatprep.subr.bf16.mxu0 %v6607_v59  ;;  %v6589_v59 = vld [vmem:[#allocation8 + $0x238] sm:$0xff]  }
 0x30d   : > { %v7795_v36 = vpop.f32.mrb[92].mxu0 }
 0x30e   : > { %v7797_v15 = vpop.f32.mrb[93].mxu0 }
 0x30f   : > { %8427 = vst [vmem:[#allocation24_spill] sm:$0xff] %v7797_v15  ;;  %v7799_v25 = vpop.f32.mrb[94].mxu0 }
 0x310   : > { %8428 = vst [vmem:[#allocation21_spill] sm:$0xff] %v7799_v25  ;;  %6063 = vmatmul.mubr.bf16.vlgmr.msra.gmra.mrb[16].mxu1 %v8429_v50  ;;  %v7802_v53 = vpop.f32.mrb[95].mxu0 }
 0x311   : > { %8430 = vst [vmem:[#allocation25_spill] sm:$0xff] %v7802_v53  ;;  %6095 = vmatpush3.bf16.msra.mxu1 %v6582_v58  ;;  %6066 = vmatprep.mubr.bf16.mxu1 %v8431_v62  ;;  %v8432_v58 = vld [vmem:[#allocation30_spill] sm:$0xff]  ;;  %v8436_v53 = vld [vmem:[#allocation35_spill] sm:$0xff] }
 0x312   : > { %6096 = vmatprep.subr.bf16.mxu1 %v6583_v45 }
 0x315   : > { %6097 = vmatpush3.bf16.msra.mxu1 %v6583_v45  ;;  %v7805_v6 = vpop.f32.mrb[64].mxu0  ;;  %v6605_v45 = vld [vmem:[#allocation9 + $0x50] ss:$8 sps:$4 sm:$0xff]  }
 0x316   : > { %v7807_v20 = vpop.f32.mrb[65].mxu0  ;;  %6098 = vmatprep.subr.bf16.mxu1 %v6584_v63  ;;  %4407 = vmatpush1.bf16.msra.mxu0 %v6605_v45 }
 0x317   : > { %v7809_v5 = vpop.f32.mrb[66].mxu0  ;;  %4408 = vmatprep.subr.bf16.mxu0 %v6610_v21 }
 0x318   : > { %6067 = vmatmul.mubr.bf16.gmra.mrb[20].mxu1 %v8432_v58  ;;  %v7812_v32 = vpop.f32.mrb[67].mxu0 }
 0x319   : > { %6070 = vmatprep.mubr.bf16.mxu1 %v8433_v19  ;;  %6099 = vmatpush3.bf16.msra.mxu1 %v6584_v63  ;;  %v8435_v63 = vld [vmem:[#allocation34_spill] sm:$0xff] }
 0x31a   : > { %6100 = vmatprep.subr.bf16.mxu1 %v6585_v29 }
 0x31d   : > { %v7815_v46 = vpop.f32.mrb[68].mxu0  ;;  %6101 = vmatpush3.bf16.msra.mxu1 %v6585_v29 }
 0x31e   : > { %v7817_v50 = vpop.f32.mrb[69].mxu0  ;;  %6102 = vmatprep.subr.bf16.mxu1 %v6586_v4 }
 0x31f   : > { %v7819_v62 = vpop.f32.mrb[70].mxu0 }
 0x320   : > { %6071 = vmatmul.mubr.bf16.gmra.mrb[24].mxu1 %v8434_v2  ;;  %v7822_v0 = vpop.f32.mrb[71].mxu0  ;;  %v8437_v2 = vld [vmem:[#allocation36_spill] sm:$0xff] }
 0x321   : > { %6074 = vmatprep.mubr.bf16.mxu1 %v8435_v63  ;;  %6103 = vmatpush3.bf16.msra.mxu1 %v6586_v4 }
 0x322   : > { %6104 = vmatprep.subr.bf16.mxu1 %v6587_v39 }
 0x325   : > { %v7825_v58 = vpop.f32.mrb[72].mxu0  ;;  %6105 = vmatpush3.bf16.msra.mxu1 %v6587_v39 }
 0x326   : > { %v7827_v29 = vpop.f32.mrb[73].mxu0  ;;  %6106 = vmatprep.subr.bf16.mxu1 %v6588_v31 }
 0x327   : > { %v7829_v19 = vpop.f32.mrb[74].mxu0 }
 0x328   : > { %6075 = vmatmul.mubr.bf16.gmra.mrb[28].mxu1 %v8436_v53  ;;  %v7832_v45 = vpop.f32.mrb[75].mxu0  ;;  %v3586_v53 = vld [vmem:[#allocation2 + $0x110] sm:$0xff] }
 0x329   : > { %6078 = vmatprep.mubr.bf16.mxu1 %v8437_v2  ;;  %6107 = vmatpush3.bf16.msra.mxu1 %v6588_v31  ;;  %v3585_v31 = vld [vmem:[#allocation2 + $0x108] sm:$0xff] }
 0x32a   : > { %6108 = vmatprep.subr.bf16.mxu1 %v6589_v59  ;;  %v3603_v2 = vpack.c.bf16 %v3586_v53, %v3585_v31 }
 0x32d   : > { %v7835_v4 = vpop.f32.mrb[76].mxu0  ;;  %6109 = vmatpush3.bf16.msra.mxu1 %v6589_v59  ;;  %v6614_v59 = vld [vmem:[#allocation2] sm:$0xff] }
 0x32e   : > { %v7837_v63 = vpop.f32.mrb[77].mxu0  ;;  %v3604_v15 = vpack.c.bf16 %v6614_v59, %v6614_v59 }
 0x32f   : > { %v7839_v39 = vpop.f32.mrb[78].mxu0 }
 0x330   : > { %6079 = vmatmul.mubr.bf16.gmra.mrb[0].mxu1 %v7640_v27  ;;  %v7842_v25 = vpop.f32.mrb[79].mxu0 }
 0x331   : > { %6082 = vmatprep.mubr.bf16.mxu1 %v7644_v3 }
 0x338   : > { %6083 = vmatmul.mubr.bf16.gmra.mrb[4].mxu1 %v7646_v9 }
 0x339   : > { %6086 = vmatprep.mubr.bf16.mxu1 %v7650_v47 }
 0x340   : > { %6087 = vmatmul.mubr.bf16.gmra.mrb[8].mxu1 %v7652_v54 }
 0x341   : > { %6090 = vmatprep.mubr.bf16.mxu1 %v3603_v2 }
 0x348   : > { %6091 = vmatmul.mubr.bf16.gmra.mrb[12].mxu1 %v3604_v15 }
 0x349   : > { %6110 = vmatprep.mubr.msk.bf16.mxu1 %vm7515_vm11, %v7547_v43 }
 0x350   : > { %6111 = vmatmul.mubr.msk.bf16.vlgmr.msra.gmra.mrb[16].mxu1 %vm7530_vm14, %v7567_v23  ;;  %vm8444_vm14 = vnez %v8329_v41  ;;  %v6613_v41 = vld [vmem:[#allocation9 + $0x74] ss:$8 sps:$4 sm:$0xff]  }
 0x351   : > { %6114 = vmatprep.mubr.msk.bf16.mxu1 %vm7540_vm13, %v7574_v37 }
 0x358   : > { %6115 = vmatmul.mubr.msk.bf16.gmra.mrb[20].mxu1 %vm7560_vm9, %v7593_v33 }
 0x359   : > { %6118 = vmatprep.mubr.msk.bf16.mxu1 %vm7570_vm7, %v7602_v49 }
 0x360   : > { %6119 = vmatmul.mubr.msk.bf16.gmra.mrb[24].mxu1 %vm7588_vm5, %v7620_v7  ;;  %v3894_v7 = vld [vmem:[#allocation2 + $0x121] sm:$0xff] }
 0x361   : > { %6122 = vmatprep.mubr.msk.bf16.mxu1 %vm7596_vm0, %v7678_v13  ;;  %vm8445_vm0 = vnez %v8331_v11  ;;  %v5353_v23 = vpack.c.bf16 %v3894_v7, %v3893_v1  ;;  %v6818_v11 = vmov 0  }
 0x362   : > { %4428 = vmatprep.mubr.bf16.mxu0 %v6818_v11 }
 0x368   : > { %6123 = vmatmul.mubr.msk.bf16.gmra.mrb[28].mxu1 %vm7615_vm3, %v7680_v17 }
 0x369   : > { %6126 = vmatprep.mubr.msk.bf16.mxu1 %vm7205_vm2, %v7688_v48  ;;  %vm8446_vm2 = vnez %v8337_v34  ;;  %v7899_v34 = vld [vmem:[%s8249_s4] ss:$0 sm:$0xff] }
 0x370   : > { %6127 = vmatmul.mubr.msk.bf16.gmra.mrb[0].mxu1 %vm7215_vm4, %v8441_v35  ;;  %vm8447_vm4 = vnez %v8343_v55 }
 0x371   : > { %6130 = vmatprep.mubr.msk.bf16.mxu1 %vm7226_vm6, %v7698_v44  ;;  %v6608_v44 = vld [vmem:[#allocation9 + $0x60] ss:$8 sps:$4 sm:$0xff]  }
 0x372   : > { %4409 = vmatpush1.bf16.msra.mxu0 %v6608_v44 }
 0x373   : > { %4410 = vmatprep.subr.bf16.mxu0 %v6613_v41 }
 0x378   : > { %6131 = vmatmul.mubr.msk.bf16.gmra.mrb[4].mxu1 %vm7236_vm8, %v7700_v52 }
 0x379   : > { %6134 = vmatprep.mubr.msk.bf16.mxu1 %vm8444_vm14, %v7708_v56  ;;  %v6611_v56 = vld [vmem:[#allocation9 + $0x70] ss:$8 sps:$4 sm:$0xff]  }
 0x37a   : > { %4411 = vmatpush1.bf16.msra.mxu0 %v6611_v56 }
 0x380   : > { %6135 = vmatmul.mubr.msk.bf16.gmra.mrb[8].mxu1 %vm8445_vm0, %v7710_v51 }
 0x381   : > { %6138 = vmatprep.mubr.msk.bf16.mxu1 %vm8446_vm2, %v7718_v38 }
 0x388   : > { %6139 = vmatmul.mubr.msk.bf16.gmra.mrb[12].mxu1 %vm8447_vm4, %v5353_v23 }
 0x423   : > { %v6112_v30 = vpop.f32.mrb[16].mxu1 }
 0x424   : > { %v6158_v55 = vadd.f32 %v6112_v30, %v7805_v6  ;;  %v4042_v37 = vpop.f32.mrb[17].mxu1 }
 0x425   : > { %v6159_v33 = vadd.f32 %v4042_v37, %v7807_v20  ;;  %v6113_v49 = vpop.f32.mrb[18].mxu1 }
 0x426   : > { %v4210_v54 = vadd.f32 %v6158_v55, %v7899_v34  ;;  %v6160_v27 = vadd.f32 %v6113_v49, %v7809_v5  ;;  %v4045_v3 = vpop.f32.mrb[19].mxu1 }
 0x427   : > { %v4208_v47 = vadd.f32 %v6159_v33, %v7899_v34  ;;  %v6161_v13 = vadd.f32 %v4045_v3, %v7812_v32 }
 0x428   : > { %v4211_v17 = vadd.f32 %v6160_v27, %v7899_v34  ;;  %v4242_v51 = vmax.f32 %v4210_v54, 0.0 }
 0x429   : > { %v4209_v48 = vadd.f32 %v6161_v13, %v7899_v34  ;;  %v4240_v38 = vmax.f32 %v4208_v47, 0.0 }
 0x42a   : > { %v4243_v52 = vmax.f32 %v4211_v17, 0.0 }
 0x42b   : > { %v4241_v15 = vmax.f32 %v4209_v48, 0.0  ;;  %v6116_v6 = vpop.f32.mrb[20].mxu1 }
 0x42c   : > { %v6162_v20 = vadd.f32 %v6116_v6, %v7815_v46  ;;  %v4058_v53 = vpop.f32.mrb[21].mxu1  ;;  %v4273_v31 = vpack.c.bf16 %v4243_v52, %v4242_v51 }
 0x42d   : > { %v4272_v2 = vpack.c.bf16 %v4241_v15, %v4240_v38  ;;  %v6163_v5 = vadd.f32 %v4058_v53, %v7817_v50  ;;  %v6117_v59 = vpop.f32.mrb[22].mxu1 }
 0x42e   : > { %v4214_v9 = vadd.f32 %v6162_v20, %v7899_v34  ;;  %v6164_v32 = vadd.f32 %v6117_v59, %v7819_v62  ;;  %v4061_v10 = vpop.f32.mrb[23].mxu1 }
 0x42f   : > { %v4212_v57 = vadd.f32 %v6163_v5, %v7899_v34  ;;  %v6165_v35 = vadd.f32 %v4061_v10, %v7822_v0  ;;  %4429 = vmatmul.mubr.bf16.vlgmr.msra.gmra.mrb[96].mxu0 %v4272_v2 }
 0x430   : > { %v4215_v43 = vadd.f32 %v6164_v32, %v7899_v34  ;;  %4438 = vmatprep.mubr.bf16.mxu0 %v6818_v11  ;;  %v4246_v18 = vmax.f32 %v4214_v9, 0.0 }
 0x431   : > { %v4213_v46 = vadd.f32 %v6165_v35, %v7899_v34  ;;  %v4244_v50 = vmax.f32 %v4212_v57, 0.0 }
 0x432   : > { %v4247_v1 = vmax.f32 %v4215_v43, 0.0 }
 0x433   : > { %v4245_v7 = vmax.f32 %v4213_v46, 0.0  ;;  %v6120_v23 = vpop.f32.mrb[24].mxu1 }
 0x434   : > { %v6166_v21 = vadd.f32 %v6120_v23, %v7825_v58  ;;  %v4074_v62 = vpop.f32.mrb[25].mxu1  ;;  %v4275_v44 = vpack.c.bf16 %v4247_v1, %v4246_v18 }
 0x435   : > { %v6167_v41 = vadd.f32 %v4074_v62, %v7827_v29  ;;  %v6121_v56 = vpop.f32.mrb[26].mxu1  ;;  %v4274_v0 = vpack.c.bf16 %v4245_v7, %v4244_v50 }
 0x436   : > { %v4218_v30 = vadd.f32 %v6166_v21, %v7899_v34  ;;  %v6168_v55 = vadd.f32 %v6121_v56, %v7829_v19  ;;  %v4077_v37 = vpop.f32.mrb[27].mxu1 }
 0x437   : > { %v4216_v33 = vadd.f32 %v6167_v41, %v7899_v34  ;;  %v6169_v49 = vadd.f32 %v4077_v37, %v7832_v45  ;;  %4439 = vmatmul.mubr.bf16.gmra.mrb[100].mxu0 %v4273_v31 }
 0x438   : > { %v4219_v54 = vadd.f32 %v6168_v55, %v7899_v34  ;;  %4448 = vmatprep.mubr.bf16.mxu0 %v6818_v11  ;;  %v4250_v27 = vmax.f32 %v4218_v30, 0.0 }
 0x439   : > { %v4217_v58 = vadd.f32 %v6169_v49, %v7899_v34  ;;  %v4248_v3 = vmax.f32 %v4216_v33, 0.0 }
 0x43a   : > { %v4251_v29 = vmax.f32 %v4219_v54, 0.0 }
 0x43b   : > { %v4249_v47 = vmax.f32 %v4217_v58, 0.0  ;;  %v6124_v13 = vpop.f32.mrb[28].mxu1 }
 0x43c   : > { %v6170_v17 = vadd.f32 %v6124_v13, %v7835_v4  ;;  %v4090_v19 = vpop.f32.mrb[29].mxu1  ;;  %v7928_v48 = vpack.c.bf16 %v4251_v29, %v4250_v27 }
 0x43d   : > { %v6171_v51 = vadd.f32 %v4090_v19, %v7837_v63  ;;  %v6125_v45 = vpop.f32.mrb[30].mxu1  ;;  %v4276_v52 = vpack.c.bf16 %v4249_v47, %v4248_v3 }
 0x43e   : > { %v4222_v38 = vadd.f32 %v6170_v17, %v7899_v34  ;;  %v6172_v15 = vadd.f32 %v6125_v45, %v7839_v39  ;;  %v4093_v6 = vpop.f32.mrb[31].mxu1 }
 0x43f   : > { %v4220_v20 = vadd.f32 %v6171_v51, %v7899_v34  ;;  %v6173_v53 = vadd.f32 %v4093_v6, %v7842_v25  ;;  %4449 = vmatmul.mubr.bf16.gmra.mrb[104].mxu0 %v4274_v0 }
 0x440   : > { %v4223_v31 = vadd.f32 %v6172_v15, %v7899_v34  ;;  %4458 = vmatprep.mubr.bf16.mxu0 %v6818_v11  ;;  %v4254_v2 = vmax.f32 %v4222_v38, 0.0 }
 0x441   : > { %v4221_v4 = vadd.f32 %v6173_v53, %v7899_v34  ;;  %v4252_v5 = vmax.f32 %v4220_v20, 0.0 }
 0x442   : > { %v4255_v63 = vmax.f32 %v4223_v31, 0.0 }
 0x443   : > { %v4253_v59 = vmax.f32 %v4221_v4, 0.0  ;;  %v6128_v9 = vpop.f32.mrb[0].mxu1 }
 0x444   : > { %v6174_v32 = vadd.f32 %v6128_v9, %v7756_v12  ;;  %v4106_v39 = vpop.f32.mrb[1].mxu1  ;;  %v7939_v10 = vpack.c.bf16 %v4255_v63, %v4254_v2 }
 0x445   : > { %v6175_v57 = vadd.f32 %v4106_v39, %v7758_v14  ;;  %v6129_v25 = vpop.f32.mrb[2].mxu1  ;;  %v7942_v35 = vpack.c.bf16 %v4253_v59, %v4252_v5  ;;  %v8448_v59 = vld [vmem:[#allocation24_spill] sm:$0xff]  ;;  %v8449_v39 = vld [vmem:[#allocation21_spill] sm:$0xff] }
 0x446   : > { %v4226_v43 = vadd.f32 %v6174_v32, %v7899_v34  ;;  %v6176_v46 = vadd.f32 %v6129_v25, %v7760_v16  ;;  %v4109_v18 = vpop.f32.mrb[3].mxu1 }
 0x447   : > { %v4224_v1 = vadd.f32 %v6175_v57, %v7899_v34  ;;  %v6177_v50 = vadd.f32 %v4109_v18, %v7765_v26  ;;  %4459 = vmatmul.mubr.bf16.gmra.mrb[108].mxu0 %v4275_v44 }
 0x448   : > { %v4227_v12 = vadd.f32 %v6176_v46, %v7899_v34  ;;  %4468 = vmatprep.mubr.bf16.mxu0 %v6818_v11  ;;  %v4258_v14 = vmax.f32 %v4226_v43, 0.0  ;;  %v8450_v46 = vld [vmem:[#allocation25_spill] sm:$0xff] }
 0x449   : > { %v4225_v7 = vadd.f32 %v6177_v50, %v7899_v34  ;;  %v4256_v21 = vmax.f32 %v4224_v1, 0.0 }
 0x44a   : > { %v4259_v23 = vmax.f32 %v4227_v12, 0.0 }
 0x44b   : > { %v4257_v62 = vmax.f32 %v4225_v7, 0.0  ;;  %v6132_v41 = vpop.f32.mrb[4].mxu1 }
 0x44c   : > { %v6178_v56 = vadd.f32 %v6132_v41, %v7770_v60  ;;  %v4122_v16 = vpop.f32.mrb[5].mxu1  ;;  %v4281_v0 = vpack.c.bf16 %v4259_v23, %v4258_v14 }
 0x44d   : > { %v6179_v30 = vadd.f32 %v4122_v16, %v7772_v28  ;;  %v6133_v55 = vpop.f32.mrb[6].mxu1  ;;  %v4280_v26 = vpack.c.bf16 %v4257_v62, %v4256_v21 }
 0x44e   : > { %v4230_v44 = vadd.f32 %v6178_v56, %v7899_v34  ;;  %v6180_v37 = vadd.f32 %v6133_v55, %v7774_v61  ;;  %v4125_v33 = vpop.f32.mrb[7].mxu1  ;;  %v4590_v55 = vld [vmem:[%s7061_s12 + $0x8] sm:$0xff] }
 0x44f   : > { %v4228_v49 = vadd.f32 %v6179_v30, %v7899_v34  ;;  %v6181_v54 = vadd.f32 %v4125_v33, %v7779_v42  ;;  %4469 = vmatmul.mubr.bf16.gmra.mrb[112].mxu0 %v4276_v52 }
 0x450   : > { %v4231_v58 = vadd.f32 %v6180_v37, %v7899_v34  ;;  %4478 = vmatprep.mubr.bf16.mxu0 %v6818_v11  ;;  %v4262_v27 = vmax.f32 %v4230_v44, 0.0  ;;  %v4591_v37 = vld [vmem:[%s7061_s12 + $0x10] sm:$0xff] }
 0x451   : > { %v4229_v60 = vadd.f32 %v6181_v54, %v7899_v34  ;;  %v4260_v29 = vmax.f32 %v4228_v49, 0.0 }
 0x452   : > { %v4263_v28 = vmax.f32 %v4231_v58, 0.0  ;;  %v4592_v58 = vld [vmem:[%s7061_s12 + $0x18] sm:$0xff] }
 0x453   : > { %v4261_v3 = vmax.f32 %v4229_v60, 0.0  ;;  %v6136_v47 = vpop.f32.mrb[8].mxu1 }
 0x454   : > { %v6182_v13 = vadd.f32 %v6136_v47, %v7784_v8  ;;  %v4138_v61 = vpop.f32.mrb[9].mxu1  ;;  %v4283_v17 = vpack.c.bf16 %v4263_v28, %v4262_v27 }
 0x455   : > { %v6183_v19 = vadd.f32 %v4138_v61, %v7786_v22  ;;  %v6137_v51 = vpop.f32.mrb[10].mxu1  ;;  %v4282_v42 = vpack.c.bf16 %v4261_v3, %v4260_v29 }
 0x456   : > { %v4234_v45 = vadd.f32 %v6182_v13, %v7899_v34  ;;  %v6184_v52 = vadd.f32 %v6137_v51, %v7788_v24  ;;  %v4141_v38 = vpop.f32.mrb[11].mxu1 }
 0x457   : > { %v4232_v15 = vadd.f32 %v6183_v19, %v7899_v34  ;;  %v6185_v6 = vadd.f32 %v4141_v38, %v7792_v40  ;;  %4479 = vmatmul.mubr.bf16.gmra.mrb[116].mxu0 %v7928_v48  ;;  %v4593_v19 = vld [vmem:[%s7061_s12 + $0x20] sm:$0xff] }
 0x458   : > { %v4235_v20 = vadd.f32 %v6184_v52, %v7899_v34  ;;  %4488 = vmatprep.mubr.bf16.mxu0 %v6818_v11  ;;  %v4266_v22 = vmax.f32 %v4234_v45, 0.0  ;;  %v4594_v45 = vld [vmem:[%s7061_s12 + $0x28] sm:$0xff] }
 0x459   : > { %v4233_v8 = vadd.f32 %v6185_v6, %v7899_v34  ;;  %v4264_v31 = vmax.f32 %v4232_v15, 0.0  ;;  %v4595_v15 = vld [vmem:[%s7061_s12 + $0x30] sm:$0xff] }
 0x45a   : > { %v4267_v53 = vmax.f32 %v4235_v20, 0.0 }
 0x45b   : > { %v4265_v4 = vmax.f32 %v4233_v8, 0.0  ;;  %v6140_v2 = vpop.f32.mrb[12].mxu1 }
 0x45c   : > { %v6186_v24 = vadd.f32 %v6140_v2, %v7795_v36  ;;  %v4154_v63 = vpop.f32.mrb[13].mxu1  ;;  %v4285_v5 = vpack.c.bf16 %v4267_v53, %v4266_v22  ;;  %v4596_v22 = vld [vmem:[%s7061_s12 + $0x38] sm:$0xff] }
 0x45d   : > { %v6187_v9 = vadd.f32 %v4154_v63, %v8448_v59  ;;  %v6141_v40 = vpop.f32.mrb[14].mxu1  ;;  %v4284_v32 = vpack.c.bf16 %v4265_v4, %v4264_v31 }
 0x45e   : > { %v4238_v48 = vadd.f32 %v6186_v24, %v7899_v34  ;;  %v6188_v57 = vadd.f32 %v6141_v40, %v8449_v39  ;;  %v4157_v25 = vpop.f32.mrb[15].mxu1  ;;  %v4597_v40 = vld [vmem:[%s7061_s12 + $0x40] sm:$0xff]  ;;  %v4598_v39 = vld [vmem:[%s7061_s12 + $0x48] sm:$0xff] }
 0x45f   : > { %v4236_v43 = vadd.f32 %v6187_v9, %v7899_v34  ;;  %v6189_v18 = vadd.f32 %v4157_v25, %v8450_v46  ;;  %4489 = vmatmul.mubr.bf16.gmra.mrb[120].mxu0 %v7942_v35  ;;  %v4304_v35 = vld [vmem:[%s8251_s6] sm:$0x3] }
 0x460   : > { %v4239_v1 = vadd.f32 %v6188_v57, %v7899_v34  ;;  %4498 = vmatprep.mubr.bf16.mxu0 %v6818_v11  ;;  %v4270_v50 = vmax.f32 %v4238_v48, 0.0 }
 0x461   : > { %v4237_v36 = vadd.f32 %v6189_v18, %v7899_v34  ;;  %v4268_v7 = vmax.f32 %v4236_v43, 0.0  ;;  %v8451_v34 = vld [vmem:[#allocation17_spill] sm:$0xff]  ;;  %v4599_v43 = vld [vmem:[%s7061_s12 + $0x50] sm:$0xff] }
 0x462   : > { %v4271_v12 = vmax.f32 %v4239_v1, 0.0  ;;  %v4312_v62 = vsub.s32 1, %v8451_v34 }
 0x463   : > { %v4269_v14 = vmax.f32 %v4237_v36, 0.0  ;;  %v4600_v36 = vld [vmem:[%s7061_s12 + $0x58] sm:$0xff] }
 0x464   : > { %v4287_v23 = vpack.c.bf16 %v4271_v12, %v4270_v50  ;;  %v7996_v56 = vrot.slane %v4304_v35, %v4312_v62  ;;  %v4601_v62 = vld [vmem:[%s7061_s12 + $0x60] sm:$0xff] }
 0x465   : > { %v4286_v21 = vpack.c.bf16 %v4269_v14, %v4268_v7 }
 0x467   : > { %4499 = vmatmul.mubr.bf16.gmra.mrb[124].mxu0 %v7939_v10  ;;  %v4308_v10 = vsub.s32 0, %v8451_v34 }
 0x468   : > { %4508 = vmatprep.mubr.bf16.mxu0 %v6818_v11 }
 0x469   : > { %v7994_v41 = vrot.slane %v4304_v35, %v4308_v10 }
 0x46f   : > { %4509 = vmatmul.mubr.bf16.gmra.mrb[128].mxu0 %v4280_v26 }
 0x470   : > { %4518 = vmatprep.mubr.bf16.mxu0 %v6818_v11 }
 0x477   : > { %4519 = vmatmul.mubr.bf16.gmra.mrb[132].mxu0 %v4281_v0  ;;  %v4589_v0 = vld [vmem:[%s7061_s12] sm:$0xff] }
 0x478   : > { %4528 = vmatprep.mubr.bf16.mxu0 %v6818_v11 }
 0x47f   : > { %4529 = vmatmul.mubr.bf16.gmra.mrb[136].mxu0 %v4282_v42 }
 0x480   : > { %4538 = vmatprep.mubr.bf16.mxu0 %v6818_v11 }
 0x487   : > { %4539 = vmatmul.mubr.bf16.gmra.mrb[140].mxu0 %v4283_v17 }
 0x488   : > { %4548 = vmatprep.mubr.bf16.mxu0 %v6818_v11 }
 0x48f   : > { %4549 = vmatmul.mubr.bf16.gmra.mrb[144].mxu0 %v4284_v32 }
 0x490   : > { %4558 = vmatprep.mubr.bf16.mxu0 %v6818_v11 }
 0x497   : > { %4559 = vmatmul.mubr.bf16.gmra.mrb[148].mxu0 %v4285_v5 }
 0x498   : > { %4568 = vmatprep.mubr.bf16.mxu0 %v6818_v11 }
 0x49f   : > { %4569 = vmatmul.mubr.bf16.gmra.mrb[152].mxu0 %v4286_v21 }
 0x4a0   : > { %4578 = vmatprep.mubr.bf16.mxu0 %v6818_v11 }
 0x4a7   : > { %4579 = vmatmul.mubr.bf16.gmra.mrb[156].mxu0 %v4287_v23 }
 0x502   : > { %v4430_v16 = vpop.f32.mrb[96].mxu0 }
 0x503   : > { %v4431_v30 = vadd.f32 %v4430_v16, %v7994_v41  ;;  %v4432_v11 = vpop.f32.mrb[97].mxu0 }
 0x504   : > { %v4433_v26 = vadd.f32 %v4432_v11, %v7996_v56  ;;  %v4434_v44 = vpop.f32.mrb[98].mxu0 }
 0x505   : > { %v4653_v33 = vadd.f32 %v4589_v0, %v4431_v30  ;;  %v4435_v49 = vadd.f32 %v4434_v44, %v7994_v41  ;;  %v4436_v54 = vpop.f32.mrb[99].mxu0  ;;  %v4602_v30 = vld [vmem:[%s7061_s12 + $0x68] sm:$0xff] }
 0x506   : > { %v4654_v60 = vadd.f32 %v4590_v55, %v4433_v26  ;;  %v4437_v27 = vadd.f32 %v4436_v54, %v7996_v56  ;;  %v4603_v26 = vld [vmem:[%s7061_s12 + $0x70] sm:$0xff] }
 0x507   : > { %v4717_v28 = vmax.f32 %v4653_v33, 0.0  ;;  %v4655_v29 = vadd.f32 %v4591_v37, %v4435_v49  ;;  %v4604_v49 = vld [vmem:[%s7061_s12 + $0x78] sm:$0xff] }
 0x508   : > { %v4718_v3 = vmax.f32 %v4654_v60, 0.0  ;;  %v4656_v47 = vadd.f32 %v4592_v58, %v4437_v27 }
 0x509   : > { %4781 = vst [vmem:[%s8008_s29] sm:$0xff] %v4717_v28  ;;  %v4719_v13 = vmax.f32 %v4655_v29, 0.0 }
 0x50a   : > { %4782 = vst [vmem:[%s8008_s29 + $0x8] sm:$0xff] %v4718_v3  ;;  %v4720_v61 = vmax.f32 %v4656_v47, 0.0  ;;  %v4440_v17 = vpop.f32.mrb[100].mxu0 }
 0x50b   : > { %4783 = vst [vmem:[%s8008_s29 + $0x10] sm:$0xff] %v4719_v13  ;;  %v4441_v51 = vadd.f32 %v4440_v17, %v7994_v41  ;;  %v4442_v42 = vpop.f32.mrb[101].mxu0 }
 0x50c   : > { %4784 = vst [vmem:[%s8008_s29 + $0x18] sm:$0xff] %v4720_v61  ;;  %v4443_v52 = vadd.f32 %v4442_v42, %v7996_v56  ;;  %v4444_v38 = vpop.f32.mrb[102].mxu0  ;;  %v4605_v61 = vld [vmem:[%s7061_s12 + $0x80] sm:$0xff] }
 0x50d   : > { %v4657_v6 = vadd.f32 %v4593_v19, %v4441_v51  ;;  %v4445_v20 = vadd.f32 %v4444_v38, %v7994_v41  ;;  %v4446_v8 = vpop.f32.mrb[103].mxu0  ;;  %v4606_v51 = vld [vmem:[%s7061_s12 + $0x88] sm:$0xff] }
 0x50e   : > { %v4658_v53 = vadd.f32 %v4594_v45, %v4443_v52  ;;  %v4447_v31 = vadd.f32 %v4446_v8, %v7996_v56  ;;  %v4607_v52 = vld [vmem:[%s7061_s12 + $0x90] sm:$0xff] }
 0x50f   : > { %v4721_v4 = vmax.f32 %v4657_v6, 0.0  ;;  %v4659_v2 = vadd.f32 %v4595_v15, %v4445_v20  ;;  %v4608_v20 = vld [vmem:[%s7061_s12 + $0x98] sm:$0xff] }
 0x510   : > { %v4722_v24 = vmax.f32 %v4658_v53, 0.0  ;;  %v4660_v63 = vadd.f32 %v4596_v22, %v4447_v31 }
 0x511   : > { %4785 = vst [vmem:[%s8008_s29 + $0x20] sm:$0xff] %v4721_v4  ;;  %v4723_v5 = vmax.f32 %v4659_v2, 0.0 }
 0x512   : > { %4786 = vst [vmem:[%s8008_s29 + $0x28] sm:$0xff] %v4722_v24  ;;  %v4724_v59 = vmax.f32 %v4660_v63, 0.0  ;;  %v4450_v9 = vpop.f32.mrb[104].mxu0 }
 0x513   : > { %4787 = vst [vmem:[%s8008_s29 + $0x30] sm:$0xff] %v4723_v5  ;;  %v4451_v32 = vadd.f32 %v4450_v9, %v7994_v41  ;;  %v4452_v48 = vpop.f32.mrb[105].mxu0 }
 0x514   : > { %4788 = vst [vmem:[%s8008_s29 + $0x38] sm:$0xff] %v4724_v59  ;;  %v4453_v57 = vadd.f32 %v4452_v48, %v7996_v56  ;;  %v4454_v25 = vpop.f32.mrb[106].mxu0  ;;  %v4609_v59 = vld [vmem:[%s7061_s12 + $0xa0] sm:$0xff] }
 0x515   : > { %v4661_v46 = vadd.f32 %v4597_v40, %v4451_v32  ;;  %v4455_v18 = vadd.f32 %v4454_v25, %v7994_v41  ;;  %v4456_v1 = vpop.f32.mrb[107].mxu0  ;;  %v4610_v32 = vld [vmem:[%s7061_s12 + $0xa8] sm:$0xff] }
 0x516   : > { %v4662_v50 = vadd.f32 %v4598_v39, %v4453_v57  ;;  %v4457_v12 = vadd.f32 %v4456_v1, %v7996_v56  ;;  %v4611_v57 = vld [vmem:[%s7061_s12 + $0xb0] sm:$0xff] }
 0x517   : > { %v4725_v7 = vmax.f32 %v4661_v46, 0.0  ;;  %v4663_v14 = vadd.f32 %v4599_v43, %v4455_v18  ;;  %v4612_v18 = vld [vmem:[%s7061_s12 + $0xb8] sm:$0xff] }
 0x518   : > { %v4726_v23 = vmax.f32 %v4662_v50, 0.0  ;;  %v4664_v21 = vadd.f32 %v4600_v36, %v4457_v12 }
 0x519   : > { %4789 = vst [vmem:[%s8008_s29 + $0x40] sm:$0xff] %v4725_v7  ;;  %v4727_v34 = vmax.f32 %v4663_v14, 0.0 }
 0x51a   : > { %4790 = vst [vmem:[%s8008_s29 + $0x48] sm:$0xff] %v4726_v23  ;;  %v4728_v10 = vmax.f32 %v4664_v21, 0.0  ;;  %v4460_v35 = vpop.f32.mrb[108].mxu0 }
 0x51b   : > { %4791 = vst [vmem:[%s8008_s29 + $0x50] sm:$0xff] %v4727_v34  ;;  %v4461_v16 = vadd.f32 %v4460_v35, %v7994_v41  ;;  %v4462_v0 = vpop.f32.mrb[109].mxu0 }
 0x51c   : > { %4792 = vst [vmem:[%s8008_s29 + $0x58] sm:$0xff] %v4728_v10  ;;  %v4463_v11 = vadd.f32 %v4462_v0, %v7996_v56  ;;  %v4464_v55 = vpop.f32.mrb[110].mxu0  ;;  %v4613_v10 = vld [vmem:[%s7061_s12 + $0xc0] sm:$0xff] }
 0x51d   : > { %v4665_v44 = vadd.f32 %v4601_v62, %v4461_v16  ;;  %v4465_v37 = vadd.f32 %v4464_v55, %v7994_v41  ;;  %v4466_v33 = vpop.f32.mrb[111].mxu0  ;;  %v4614_v16 = vld [vmem:[%s7061_s12 + $0xc8] sm:$0xff] }
 0x51e   : > { %v4666_v54 = vadd.f32 %v4602_v30, %v4463_v11  ;;  %v4467_v58 = vadd.f32 %v4466_v33, %v7996_v56  ;;  %v4615_v11 = vld [vmem:[%s7061_s12 + $0xd0] sm:$0xff] }
 0x51f   : > { %v4729_v60 = vmax.f32 %v4665_v44, 0.0  ;;  %v4667_v27 = vadd.f32 %v4603_v26, %v4465_v37  ;;  %v4616_v37 = vld [vmem:[%s7061_s12 + $0xd8] sm:$0xff] }
 0x520   : > { %v4730_v28 = vmax.f32 %v4666_v54, 0.0  ;;  %v4668_v29 = vadd.f32 %v4604_v49, %v4467_v58 }
 0x521   : > { %4793 = vst [vmem:[%s8008_s29 + $0x60] sm:$0xff] %v4729_v60  ;;  %v4731_v3 = vmax.f32 %v4667_v27, 0.0 }
 0x522   : > { %4794 = vst [vmem:[%s8008_s29 + $0x68] sm:$0xff] %v4730_v28  ;;  %v4732_v47 = vmax.f32 %v4668_v29, 0.0  ;;  %v4470_v13 = vpop.f32.mrb[112].mxu0 }
 0x523   : > { %4795 = vst [vmem:[%s8008_s29 + $0x70] sm:$0xff] %v4731_v3  ;;  %v4471_v17 = vadd.f32 %v4470_v13, %v7994_v41  ;;  %v4472_v19 = vpop.f32.mrb[113].mxu0 }
 0x524   : > { %4796 = vst [vmem:[%s8008_s29 + $0x78] sm:$0xff] %v4732_v47  ;;  %v4473_v42 = vadd.f32 %v4472_v19, %v7996_v56  ;;  %v4474_v45 = vpop.f32.mrb[114].mxu0  ;;  %v4617_v47 = vld [vmem:[%s7061_s12 + $0xe0] sm:$0xff] }
 0x525   : > { %v4669_v38 = vadd.f32 %v4605_v61, %v4471_v17  ;;  %v4475_v15 = vadd.f32 %v4474_v45, %v7994_v41  ;;  %v4476_v6 = vpop.f32.mrb[115].mxu0  ;;  %v4618_v17 = vld [vmem:[%s7061_s12 + $0xe8] sm:$0xff] }
 0x526   : > { %v4670_v8 = vadd.f32 %v4606_v51, %v4473_v42  ;;  %v4477_v22 = vadd.f32 %v4476_v6, %v7996_v56  ;;  %v4619_v42 = vld [vmem:[%s7061_s12 + $0xf0] sm:$0xff] }
 0x527   : > { %v4733_v53 = vmax.f32 %v4669_v38, 0.0  ;;  %v4671_v31 = vadd.f32 %v4607_v52, %v4475_v15  ;;  %v4620_v15 = vld [vmem:[%s7061_s12 + $0xf8] sm:$0xff] }
 0x528   : > { %v4734_v4 = vmax.f32 %v4670_v8, 0.0  ;;  %v4672_v2 = vadd.f32 %v4608_v20, %v4477_v22 }
 0x529   : > { %4797 = vst [vmem:[%s8008_s29 + $0x80] sm:$0xff] %v4733_v53  ;;  %v4735_v24 = vmax.f32 %v4671_v31, 0.0 }
 0x52a   : > { %4798 = vst [vmem:[%s8008_s29 + $0x88] sm:$0xff] %v4734_v4  ;;  %v4736_v63 = vmax.f32 %v4672_v2, 0.0  ;;  %v4480_v5 = vpop.f32.mrb[116].mxu0 }
 0x52b   : > { %4799 = vst [vmem:[%s8008_s29 + $0x90] sm:$0xff] %v4735_v24  ;;  %v4481_v9 = vadd.f32 %v4480_v5, %v7994_v41  ;;  %v4482_v40 = vpop.f32.mrb[117].mxu0 }
 0x52c   : > { %4800 = vst [vmem:[%s8008_s29 + $0x98] sm:$0xff] %v4736_v63  ;;  %v4483_v48 = vadd.f32 %v4482_v40, %v7996_v56  ;;  %v4484_v39 = vpop.f32.mrb[118].mxu0  ;;  %v4621_v63 = vld [vmem:[%s7061_s12 + $0x100] sm:$0xff] }
 0x52d   : > { %v4673_v25 = vadd.f32 %v4609_v59, %v4481_v9  ;;  %v4485_v43 = vadd.f32 %v4484_v39, %v7994_v41  ;;  %v4486_v46 = vpop.f32.mrb[119].mxu0  ;;  %v4622_v9 = vld [vmem:[%s7061_s12 + $0x108] sm:$0xff] }
 0x52e   : > { %v4674_v1 = vadd.f32 %v4610_v32, %v4483_v48  ;;  %v4487_v36 = vadd.f32 %v4486_v46, %v7996_v56  ;;  %v4623_v48 = vld [vmem:[%s7061_s12 + $0x110] sm:$0xff] }
 0x52f   : > { %v4737_v50 = vmax.f32 %v4673_v25, 0.0  ;;  %v4675_v12 = vadd.f32 %v4611_v57, %v4485_v43  ;;  %v4624_v43 = vld [vmem:[%s7061_s12 + $0x118] sm:$0xff] }
 0x530   : > { %v4738_v7 = vmax.f32 %v4674_v1, 0.0  ;;  %v4676_v14 = vadd.f32 %v4612_v18, %v4487_v36 }
 0x531   : > { %4801 = vst [vmem:[%s8008_s29 + $0xa0] sm:$0xff] %v4737_v50  ;;  %v4739_v23 = vmax.f32 %v4675_v12, 0.0 }
 0x532   : > { %4802 = vst [vmem:[%s8008_s29 + $0xa8] sm:$0xff] %v4738_v7  ;;  %v4740_v21 = vmax.f32 %v4676_v14, 0.0  ;;  %v4490_v34 = vpop.f32.mrb[120].mxu0 }
 0x533   : > { %4803 = vst [vmem:[%s8008_s29 + $0xb0] sm:$0xff] %v4739_v23  ;;  %v4491_v35 = vadd.f32 %v4490_v34, %v7994_v41  ;;  %v4492_v62 = vpop.f32.mrb[121].mxu0 }
 0x534   : > { %4804 = vst [vmem:[%s8008_s29 + $0xb8] sm:$0xff] %v4740_v21  ;;  %v4493_v0 = vadd.f32 %v4492_v62, %v7996_v56  ;;  %v4494_v30 = vpop.f32.mrb[122].mxu0  ;;  %v4625_v21 = vld [vmem:[%s7061_s12 + $0x120] sm:$0xff] }
 0x535   : > { %v4677_v55 = vadd.f32 %v4613_v10, %v4491_v35  ;;  %v4495_v26 = vadd.f32 %v4494_v30, %v7994_v41  ;;  %v4496_v44 = vpop.f32.mrb[123].mxu0  ;;  %v4626_v35 = vld [vmem:[%s7061_s12 + $0x128] sm:$0xff] }
 0x536   : > { %v4678_v33 = vadd.f32 %v4614_v16, %v4493_v0  ;;  %v4497_v49 = vadd.f32 %v4496_v44, %v7996_v56  ;;  %v4627_v0 = vld [vmem:[%s7061_s12 + $0x130] sm:$0xff] }
 0x537   : > { %v4741_v54 = vmax.f32 %v4677_v55, 0.0  ;;  %v4679_v58 = vadd.f32 %v4615_v11, %v4495_v26  ;;  %v4628_v26 = vld [vmem:[%s7061_s12 + $0x138] sm:$0xff] }
 0x538   : > { %v4742_v60 = vmax.f32 %v4678_v33, 0.0  ;;  %v4680_v27 = vadd.f32 %v4616_v37, %v4497_v49 }
 0x539   : > { %4805 = vst [vmem:[%s8008_s29 + $0xc0] sm:$0xff] %v4741_v54  ;;  %v4743_v28 = vmax.f32 %v4679_v58, 0.0 }
 0x53a   : > { %4806 = vst [vmem:[%s8008_s29 + $0xc8] sm:$0xff] %v4742_v60  ;;  %v4744_v29 = vmax.f32 %v4680_v27, 0.0  ;;  %v4500_v3 = vpop.f32.mrb[124].mxu0 }
 0x53b   : > { %4807 = vst [vmem:[%s8008_s29 + $0xd0] sm:$0xff] %v4743_v28  ;;  %v4501_v13 = vadd.f32 %v4500_v3, %v7994_v41  ;;  %v4502_v61 = vpop.f32.mrb[125].mxu0 }
 0x53c   : > { %4808 = vst [vmem:[%s8008_s29 + $0xd8] sm:$0xff] %v4744_v29  ;;  %v4503_v19 = vadd.f32 %v4502_v61, %v7996_v56  ;;  %v4504_v51 = vpop.f32.mrb[126].mxu0  ;;  %v4629_v29 = vld [vmem:[%s7061_s12 + $0x140] sm:$0xff] }
 0x53d   : > { %v4681_v45 = vadd.f32 %v4617_v47, %v4501_v13  ;;  %v4505_v52 = vadd.f32 %v4504_v51, %v7994_v41  ;;  %v4506_v38 = vpop.f32.mrb[127].mxu0  ;;  %v4630_v13 = vld [vmem:[%s7061_s12 + $0x148] sm:$0xff] }
 0x53e   : > { %v4682_v6 = vadd.f32 %v4618_v17, %v4503_v19  ;;  %v4507_v20 = vadd.f32 %v4506_v38, %v7996_v56  ;;  %v4631_v19 = vld [vmem:[%s7061_s12 + $0x150] sm:$0xff] }
 0x53f   : > { %v4745_v8 = vmax.f32 %v4681_v45, 0.0  ;;  %v4683_v22 = vadd.f32 %v4619_v42, %v4505_v52  ;;  %v4632_v52 = vld [vmem:[%s7061_s12 + $0x158] sm:$0xff] }
 0x540   : > { %v4746_v53 = vmax.f32 %v4682_v6, 0.0  ;;  %v4684_v31 = vadd.f32 %v4620_v15, %v4507_v20 }
 0x541   : > { %4809 = vst [vmem:[%s8008_s29 + $0xe0] sm:$0xff] %v4745_v8  ;;  %v4747_v4 = vmax.f32 %v4683_v22, 0.0 }
 0x542   : > { %4810 = vst [vmem:[%s8008_s29 + $0xe8] sm:$0xff] %v4746_v53  ;;  %v4748_v2 = vmax.f32 %v4684_v31, 0.0  ;;  %v4510_v24 = vpop.f32.mrb[128].mxu0 }
 0x543   : > { %4811 = vst [vmem:[%s8008_s29 + $0xf0] sm:$0xff] %v4747_v4  ;;  %v4511_v5 = vadd.f32 %v4510_v24, %v7994_v41  ;;  %v4512_v59 = vpop.f32.mrb[129].mxu0 }
 0x544   : > { %4812 = vst [vmem:[%s8008_s29 + $0xf8] sm:$0xff] %v4748_v2  ;;  %v4513_v40 = vadd.f32 %v4512_v59, %v7996_v56  ;;  %v4514_v32 = vpop.f32.mrb[130].mxu0  ;;  %v4633_v2 = vld [vmem:[%s7061_s12 + $0x160] sm:$0xff] }
 0x545   : > { %v4685_v39 = vadd.f32 %v4621_v63, %v4511_v5  ;;  %v4515_v57 = vadd.f32 %v4514_v32, %v7994_v41  ;;  %v4516_v25 = vpop.f32.mrb[131].mxu0  ;;  %v4634_v5 = vld [vmem:[%s7061_s12 + $0x168] sm:$0xff] }
 0x546   : > { %v4686_v46 = vadd.f32 %v4622_v9, %v4513_v40  ;;  %v4517_v18 = vadd.f32 %v4516_v25, %v7996_v56  ;;  %v4635_v40 = vld [vmem:[%s7061_s12 + $0x170] sm:$0xff] }
 0x547   : > { %v4749_v1 = vmax.f32 %v4685_v39, 0.0  ;;  %v4687_v36 = vadd.f32 %v4623_v48, %v4515_v57  ;;  %v4636_v57 = vld [vmem:[%s7061_s12 + $0x178] sm:$0xff] }
 0x548   : > { %v4750_v50 = vmax.f32 %v4686_v46, 0.0  ;;  %v4688_v12 = vadd.f32 %v4624_v43, %v4517_v18 }
 0x549   : > { %4813 = vst [vmem:[%s8008_s29 + $0x100] sm:$0xff] %v4749_v1  ;;  %v4751_v7 = vmax.f32 %v4687_v36, 0.0 }
 0x54a   : > { %4814 = vst [vmem:[%s8008_s29 + $0x108] sm:$0xff] %v4750_v50  ;;  %v4752_v14 = vmax.f32 %v4688_v12, 0.0  ;;  %v4520_v23 = vpop.f32.mrb[132].mxu0 }
 0x54b   : > { %4815 = vst [vmem:[%s8008_s29 + $0x110] sm:$0xff] %v4751_v7  ;;  %v4521_v34 = vadd.f32 %v4520_v23, %v7994_v41  ;;  %v4522_v10 = vpop.f32.mrb[133].mxu0 }
 0x54c   : > { %4816 = vst [vmem:[%s8008_s29 + $0x118] sm:$0xff] %v4752_v14  ;;  %v4523_v62 = vadd.f32 %v4522_v10, %v7996_v56  ;;  %v4524_v16 = vpop.f32.mrb[134].mxu0  ;;  %v4637_v14 = vld [vmem:[%s7061_s12 + $0x180] sm:$0xff] }
 0x54d   : > { %v4689_v30 = vadd.f32 %v4625_v21, %v4521_v34  ;;  %v4525_v11 = vadd.f32 %v4524_v16, %v7994_v41  ;;  %v4526_v55 = vpop.f32.mrb[135].mxu0  ;;  %v4638_v34 = vld [vmem:[%s7061_s12 + $0x188] sm:$0xff] }
 0x54e   : > { %v4690_v44 = vadd.f32 %v4626_v35, %v4523_v62  ;;  %v4527_v37 = vadd.f32 %v4526_v55, %v7996_v56  ;;  %v4639_v62 = vld [vmem:[%s7061_s12 + $0x190] sm:$0xff] }
 0x54f   : > { %v4753_v33 = vmax.f32 %v4689_v30, 0.0  ;;  %v4691_v49 = vadd.f32 %v4627_v0, %v4525_v11  ;;  %v4640_v11 = vld [vmem:[%s7061_s12 + $0x198] sm:$0xff] }
 0x550   : > { %v4754_v54 = vmax.f32 %v4690_v44, 0.0  ;;  %v4692_v58 = vadd.f32 %v4628_v26, %v4527_v37 }
 0x551   : > { %4817 = vst [vmem:[%s8008_s29 + $0x120] sm:$0xff] %v4753_v33  ;;  %v4755_v60 = vmax.f32 %v4691_v49, 0.0 }
 0x552   : > { %4818 = vst [vmem:[%s8008_s29 + $0x128] sm:$0xff] %v4754_v54  ;;  %v4756_v27 = vmax.f32 %v4692_v58, 0.0  ;;  %v4530_v28 = vpop.f32.mrb[136].mxu0 }
 0x553   : > { %4819 = vst [vmem:[%s8008_s29 + $0x130] sm:$0xff] %v4755_v60  ;;  %v4531_v3 = vadd.f32 %v4530_v28, %v7994_v41  ;;  %v4532_v47 = vpop.f32.mrb[137].mxu0 }
 0x554   : > { %4820 = vst [vmem:[%s8008_s29 + $0x138] sm:$0xff] %v4756_v27  ;;  %v4533_v61 = vadd.f32 %v4532_v47, %v7996_v56  ;;  %v4534_v17 = vpop.f32.mrb[138].mxu0  ;;  %v4641_v27 = vld [vmem:[%s7061_s12 + $0x1a0] sm:$0xff] }
 0x555   : > { %v4693_v51 = vadd.f32 %v4629_v29, %v4531_v3  ;;  %v4535_v42 = vadd.f32 %v4534_v17, %v7994_v41  ;;  %v4536_v45 = vpop.f32.mrb[139].mxu0  ;;  %v4642_v3 = vld [vmem:[%s7061_s12 + $0x1a8] sm:$0xff] }
 0x556   : > { %v4694_v38 = vadd.f32 %v4630_v13, %v4533_v61  ;;  %v4537_v15 = vadd.f32 %v4536_v45, %v7996_v56  ;;  %v4643_v61 = vld [vmem:[%s7061_s12 + $0x1b0] sm:$0xff] }
 0x557   : > { %v4757_v6 = vmax.f32 %v4693_v51, 0.0  ;;  %v4695_v20 = vadd.f32 %v4631_v19, %v4535_v42  ;;  %v4644_v42 = vld [vmem:[%s7061_s12 + $0x1b8] sm:$0xff] }
 0x558   : > { %v4758_v8 = vmax.f32 %v4694_v38, 0.0  ;;  %v4696_v22 = vadd.f32 %v4632_v52, %v4537_v15 }
 0x559   : > { %4821 = vst [vmem:[%s8008_s29 + $0x140] sm:$0xff] %v4757_v6  ;;  %v4759_v53 = vmax.f32 %v4695_v20, 0.0 }
 0x55a   : > { %4822 = vst [vmem:[%s8008_s29 + $0x148] sm:$0xff] %v4758_v8  ;;  %v4760_v31 = vmax.f32 %v4696_v22, 0.0  ;;  %v4540_v4 = vpop.f32.mrb[140].mxu0 }
 0x55b   : > { %4823 = vst [vmem:[%s8008_s29 + $0x150] sm:$0xff] %v4759_v53  ;;  %v4541_v24 = vadd.f32 %v4540_v4, %v7994_v41  ;;  %v4542_v63 = vpop.f32.mrb[141].mxu0 }
 0x55c   : > { %4824 = vst [vmem:[%s8008_s29 + $0x158] sm:$0xff] %v4760_v31  ;;  %v4543_v59 = vadd.f32 %v4542_v63, %v7996_v56  ;;  %v4544_v9 = vpop.f32.mrb[142].mxu0  ;;  %v4645_v31 = vld [vmem:[%s7061_s12 + $0x1c0] sm:$0xff] }
 0x55d   : > { %v4697_v32 = vadd.f32 %v4633_v2, %v4541_v24  ;;  %v4545_v48 = vadd.f32 %v4544_v9, %v7994_v41  ;;  %v4546_v39 = vpop.f32.mrb[143].mxu0  ;;  %v4646_v24 = vld [vmem:[%s7061_s12 + $0x1c8] sm:$0xff] }
 0x55e   : > { %v4698_v25 = vadd.f32 %v4634_v5, %v4543_v59  ;;  %v4547_v43 = vadd.f32 %v4546_v39, %v7996_v56  ;;  %v4647_v59 = vld [vmem:[%s7061_s12 + $0x1d0] sm:$0xff] }
 0x55f   : > { %v4761_v46 = vmax.f32 %v4697_v32, 0.0  ;;  %v4699_v18 = vadd.f32 %v4635_v40, %v4545_v48  ;;  %v4648_v48 = vld [vmem:[%s7061_s12 + $0x1d8] sm:$0xff] }
 0x560   : > { %v4762_v1 = vmax.f32 %v4698_v25, 0.0  ;;  %v4700_v36 = vadd.f32 %v4636_v57, %v4547_v43 }
 0x561   : > { %4825 = vst [vmem:[%s8008_s29 + $0x160] sm:$0xff] %v4761_v46  ;;  %v4763_v50 = vmax.f32 %v4699_v18, 0.0 }
 0x562   : > { %4826 = vst [vmem:[%s8008_s29 + $0x168] sm:$0xff] %v4762_v1  ;;  %v4764_v12 = vmax.f32 %v4700_v36, 0.0  ;;  %v4550_v7 = vpop.f32.mrb[144].mxu0 }
 0x563   : > { %4827 = vst [vmem:[%s8008_s29 + $0x170] sm:$0xff] %v4763_v50  ;;  %v4551_v23 = vadd.f32 %v4550_v7, %v7994_v41  ;;  %v4552_v21 = vpop.f32.mrb[145].mxu0 }
 0x564   : > { %4828 = vst [vmem:[%s8008_s29 + $0x178] sm:$0xff] %v4764_v12  ;;  %v4553_v10 = vadd.f32 %v4552_v21, %v7996_v56  ;;  %v4554_v35 = vpop.f32.mrb[146].mxu0  ;;  %v4649_v12 = vld [vmem:[%s7061_s12 + $0x1e0] sm:$0xff] }
 0x565   : > { %v4701_v16 = vadd.f32 %v4637_v14, %v4551_v23  ;;  %v4555_v0 = vadd.f32 %v4554_v35, %v7994_v41  ;;  %v4556_v30 = vpop.f32.mrb[147].mxu0  ;;  %v4650_v23 = vld [vmem:[%s7061_s12 + $0x1e8] sm:$0xff] }
 0x566   : > { %v4702_v55 = vadd.f32 %v4638_v34, %v4553_v10  ;;  %v4557_v26 = vadd.f32 %v4556_v30, %v7996_v56  ;;  %v4651_v10 = vld [vmem:[%s7061_s12 + $0x1f0] sm:$0xff] }
 0x567   : > { %v4765_v44 = vmax.f32 %v4701_v16, 0.0  ;;  %v4703_v37 = vadd.f32 %v4639_v62, %v4555_v0  ;;  %v4652_v0 = vld [vmem:[%s7061_s12 + $0x1f8] sm:$0xff]  ;;  %s6819_s12 = smov [#allocation11]  }
 0x568   : > { %v4766_v33 = vmax.f32 %v4702_v55, 0.0  ;;  %v4704_v49 = vadd.f32 %v4640_v11, %v4557_v26  ;;  %s6733_s30 = sshll.u32 %s6819_s12, 4  ;;  %s6734_s30 = int_to_ptr.vmem [resolvable:$false] %s6733_s30 }
 0x569   : > { %4829 = vst [vmem:[%s8008_s29 + $0x180] sm:$0xff] %v4765_v44  ;;  %v4767_v54 = vmax.f32 %v4703_v37, 0.0  ;;  %s6735_s9 = scalar_lea.vmem %s6734_s30, 16384  ;;  %p6736_p12 = scmp.lt.s32.totalorder %s8198_s17, %s6734_s30 }
 0x56a   : > { %4830 = vst [vmem:[%s8008_s29 + $0x188] sm:$0xff] %v4766_v33  ;;  %v4768_v58 = vmax.f32 %v4704_v49, 0.0  ;;  %v4560_v60 = vpop.f32.mrb[148].mxu0  ;;  %p6737_p2 = scmp.lt.s32.totalorder %s6735_s9, %s6729_s23 }
 0x56b   : > { %4831 = vst [vmem:[%s8008_s29 + $0x190] sm:$0xff] %v4767_v54  ;;  %v4561_v28 = vadd.f32 %v4560_v60, %v7994_v41  ;;  %v4562_v29 = vpop.f32.mrb[149].mxu0 }
 0x56c   : > { %4832 = vst [vmem:[%s8008_s29 + $0x198] sm:$0xff] %v4768_v58  ;;  %v4563_v47 = vadd.f32 %v4562_v29, %v7996_v56  ;;  %v4564_v13 = vpop.f32.mrb[150].mxu0  ;;  %p6738_p1 = por %p6737_p2, %p6736_p12 }
 0x56d   : > { %v4705_v17 = vadd.f32 %v4641_v27, %v4561_v28  ;;  %v4565_v19 = vadd.f32 %v4564_v13, %v7994_v41  ;;  %v4566_v51 = vpop.f32.mrb[151].mxu0 }
 0x56e   : > { %v4706_v45 = vadd.f32 %v4642_v3, %v4563_v47  ;;  %v4567_v52 = vadd.f32 %v4566_v51, %v7996_v56  ;;  %p6739_p4 = pnand %p6738_p1, %p6732_p7 }
 0x56f   : > { %v4769_v38 = vmax.f32 %v4705_v17, 0.0  ;;  %v4707_v15 = vadd.f32 %v4643_v61, %v4565_v19 }
 0x570   : > { %v4770_v6 = vmax.f32 %v4706_v45, 0.0  ;;  %v4708_v20 = vadd.f32 %v4644_v42, %v4567_v52 }
 0x571   : > { %4833 = vst [vmem:[%s8008_s29 + $0x1a0] sm:$0xff] %v4769_v38  ;;  %v4771_v8 = vmax.f32 %v4707_v15, 0.0 }
 0x572   : > { %4834 = vst [vmem:[%s8008_s29 + $0x1a8] sm:$0xff] %v4770_v6  ;;  %v4772_v22 = vmax.f32 %v4708_v20, 0.0  ;;  %v4570_v53 = vpop.f32.mrb[152].mxu0 }
 0x573   : > { %4835 = vst [vmem:[%s8008_s29 + $0x1b0] sm:$0xff] %v4771_v8  ;;  %v4571_v4 = vadd.f32 %v4570_v53, %v7994_v41  ;;  %v4572_v2 = vpop.f32.mrb[153].mxu0 }
 0x574   : > { %4836 = vst [vmem:[%s8008_s29 + $0x1b8] sm:$0xff] %v4772_v22  ;;  %v4573_v63 = vadd.f32 %v4572_v2, %v7996_v56  ;;  %v4574_v5 = vpop.f32.mrb[154].mxu0 }
 0x575   : > { %v4709_v9 = vadd.f32 %v4645_v31, %v4571_v4  ;;  %v4575_v40 = vadd.f32 %v4574_v5, %v7994_v41  ;;  %v4576_v32 = vpop.f32.mrb[155].mxu0 }
 0x576   : > { %v4710_v39 = vadd.f32 %v4646_v24, %v4573_v63  ;;  %v4577_v57 = vadd.f32 %v4576_v32, %v7996_v56 }
 0x577   : > { %v4773_v25 = vmax.f32 %v4709_v9, 0.0  ;;  %v4711_v43 = vadd.f32 %v4647_v59, %v4575_v40 }
 0x578   : > { %v4774_v46 = vmax.f32 %v4710_v39, 0.0  ;;  %v4712_v18 = vadd.f32 %v4648_v48, %v4577_v57 }
 0x579   : > { %4837 = vst [vmem:[%s8008_s29 + $0x1c0] sm:$0xff] %v4773_v25  ;;  %v4775_v1 = vmax.f32 %v4711_v43, 0.0 }
 0x57a   : > { %4838 = vst [vmem:[%s8008_s29 + $0x1c8] sm:$0xff] %v4774_v46  ;;  %v4776_v36 = vmax.f32 %v4712_v18, 0.0  ;;  %v4580_v50 = vpop.f32.mrb[156].mxu0 }
 0x57b   : > { %4839 = vst [vmem:[%s8008_s29 + $0x1d0] sm:$0xff] %v4775_v1  ;;  %v4581_v7 = vadd.f32 %v4580_v50, %v7994_v41  ;;  %v4582_v14 = vpop.f32.mrb[157].mxu0 }
 0x57c   : > { %4840 = vst [vmem:[%s8008_s29 + $0x1d8] sm:$0xff] %v4776_v36  ;;  %v4583_v21 = vadd.f32 %v4582_v14, %v7996_v56  ;;  %v4584_v34 = vpop.f32.mrb[158].mxu0 }
 0x57d   : > { %v4713_v35 = vadd.f32 %v4649_v12, %v4581_v7  ;;  %v4585_v62 = vadd.f32 %v4584_v34, %v7994_v41  ;;  %v4586_v16 = vpop.f32.mrb[159].mxu0 }
 0x57e   : > { %v4714_v30 = vadd.f32 %v4650_v23, %v4583_v21  ;;  %v4587_v11 = vadd.f32 %v4586_v16, %v7996_v56 }
 0x57f   : > { %v4777_v55 = vmax.f32 %v4713_v35, 0.0  ;;  %v4715_v26 = vadd.f32 %v4651_v10, %v4585_v62 }
 0x580   : > { %v4778_v44 = vmax.f32 %v4714_v30, 0.0  ;;  %v4716_v37 = vadd.f32 %v4652_v0, %v4587_v11 }
 0x581   : > { %4841 = vst [vmem:[%s8008_s29 + $0x1e0] sm:$0xff] %v4777_v55  ;;  %v4779_v33 = vmax.f32 %v4715_v26, 0.0 }
 0x582   : > { %4842 = vst [vmem:[%s8008_s29 + $0x1e8] sm:$0xff] %v4778_v44  ;;  %v4780_v41 = vmax.f32 %v4716_v37, 0.0 }
 0x583   : > { %4843 = vst [vmem:[%s8008_s29 + $0x1f0] sm:$0xff] %v4779_v33 }
 0x584   : > { %4844 = vst [vmem:[%s8008_s29 + $0x1f8] sm:$0xff] %v4780_v41 }
 0x585   : > { %6742 = shalt.err (!%p6739_p4)
}
 0x586   : > { %s6743_s10 = scalar_lea.hbm %s8196_s16, 8192  ;;  %s6747_s13 = scalar_lea.hbm %s8252_s7, 16384 }
 0x587   : > { %p6744_p9 = scmp.ne.s32.totalorder %s8196_s16, %s6743_s10  ;;  %p6748_p8 = scmp.lt.u32.totalorder %s8196_s16, %s8252_s7 }
 0x588   : > { %p6749_p13 = scmp.lt.u32.totalorder %s6747_s13, %s6743_s10  ;;  %p6751_p10 = scmp.lt.u32.totalorder %s6743_s10, %s8196_s16 }
 0x589   : > { %p6745_p0 = pnand %p6744_p9, %p7007_p5 }
 0x58a   : > { %p6750_p6 = por %p6749_p13, %p6748_p8 }
 0x58b   : > { %p6746_p11 = pneg %p6745_p0 }
 0x58c   : > { %p6752_p3 = por %p6751_p10, %p6750_p6 }
 0x58e   : > { %p6753_p7 = pnand %p6752_p3, %p6746_p11 }
 0x590   : > { %6756 = shalt.err (!%p6753_p7)
}
 0x591   : > { %s6820_s15 = smov 256   ;;  %s6821_s18 = smov 16  }
 0x592   : > { %6428 = dma.vmem_to_hbm [thread:$0]  (%p7007_p5), %s8198_s17, 8192, %s8196_s16, %s4846_s28, %s6820_s15, %s6820_s15, %s6821_s18  }
 0x593 PF: > { %s8452_s23 = sld [smem:[#allocation16_spill]]  ;;  %s4875_s12 = sand.u32 1, %s6791_s24  }
 0x594   : > { %p8454_p2 = scmp.ge.s32.totalorder %s6803_s27, 2  ;;  %s4876_s30 = scalar_lea.sflag [#allocation5], %s4875_s12 }
 0x599   : > { %p8453_p12 = scmp.ne.s32.totalorder %s8452_s23, 0 }
 0x59b   : > { %p6445_p1 = pnand %p8454_p2, %p8453_p12 }
 0x59d   : > { %6786 = dma.done.wait (!%p6445_p1), %s4876_s30, 8192  }
 0x59e   : > { %6788 = vsyncadd (!%p6445_p1), %s4876_s30, 4294959104  ;;  %p22_p4 = scmp.ge.s32.totalorder %s6993_s8, 4   ;;  %s8455_s24 = smov %s6795_s25 }
 0x59f   : > { %s8456_s25 = smov %s6799_s26  ;;  %s8457_s26 = smov %s7003_s19 }
 0x5a0   : > { %s8458_s27 = smov %s6993_s8  ;;  %24 = sbr.rel (!%p22_p4) target bundleno = 7 (0x7), region = 113 }
 0x5a7   :  { %4881 = vsyncpa [#allocation4], 1 }
 0x5a8   :  { %4883 = vsyncpa [#allocation4 + $0x1], 1 }
 0x5a9   :  { %4884 = vsyncpa [#allocation7], 1 }
 0x5aa   :  { %4885 = vsyncpa [#allocation10], 1 }
 0x5ab   :  { %4886 = vsyncpa [#allocation5], 1 }
 0x5ac   :  { %4888 = vsyncpa [#allocation5 + $0x1], 1 }

</bundles_post_ra>
